<compile_context>
chip_gen: v5e
topology: v5e:2x2
jax: 0.10.0
libtpu: 0.0.40
codegen_flags: <defaults>
</compile_context>

<pallas_src>
import functools

import jax
import jax.numpy as jnp
from jax.experimental import pallas as pl
from jax.experimental.pallas import tpu as pltpu


# ----------------------------------------------------------------------------
# Kernel A: conv1d (K accumulated matmuls) + bias + ReLU + per-tile BN stats
# ----------------------------------------------------------------------------
def _conv_relu_bn_stats_kernel(x_ref, w_ref, b_ref, y_ref, stats_ref, *, tap_row_stride):
    # x_ref:    (R, Cin)         flattened time-major input rows (whole, resident)
    # w_ref:    (K, Cin, Fp)     per-tap conv weights (bf16)
    # b_ref:    (1, Fp)
    # y_ref:    (1, TT*B, Fp)    pre-BN activations for this time tile (bf16)
    # stats_ref:(1, 2, Fp)       per-tile [sum; sum of squares]
    _, ttb, fp = y_ref.shape
    k_taps, cin, _ = w_ref.shape

    r0 = pl.multiple_of(pl.program_id(0) * ttb, ttb)
    acc = jnp.zeros((ttb, fp), jnp.float32)
    for k in range(k_taps):                                   # K is small: static unroll
        xk = x_ref[pl.ds(r0 + k * tap_row_stride, ttb), :].astype(jnp.bfloat16)
        acc += jnp.dot(xk, w_ref[k], preferred_element_type=jnp.float32)

    y = jnp.maximum(acc + b_ref[...], 0.0)                    # bias + ReLU (f32)
    # Single pass partial stats (sum, sum of squares); global reduce is O(F) in the wrapper.
    s1 = jnp.sum(y, axis=0, keepdims=True)
    s2 = jnp.sum(y * y, axis=0, keepdims=True)
    stats_ref[0] = jnp.concatenate([s1, s2], axis=0)
    y_ref[0] = y.astype(y_ref.dtype)


# ----------------------------------------------------------------------------
# Kernel B: SkipLSTM recurrence streamed in time chunks, returns last hidden (B, Hp)
# ----------------------------------------------------------------------------
def _skip_lstm_kernel(seq_ref, scale_ref, shift_ref, wih_ref, whh_ref, b_ref,
                      wuh_ref, buh_ref, out_ref,
                      gx_sc, h_sc, c_sc, p_sc, cu_sc):
    b_sz, hp = out_ref.shape
    ttb = seq_ref.shape[1]
    tt = ttb // b_sz

    @pl.when(pl.program_id(0) == 0)
    def _init():
        h_sc[...] = jnp.zeros_like(h_sc)
        c_sc[...] = jnp.zeros_like(c_sc)
        p_sc[...] = jnp.ones_like(p_sc)      # update_prob_0 = 1 -> first step always updates
        cu_sc[...] = jnp.zeros_like(cu_sc)

    # BatchNorm (global batch stats folded into scale/shift) + batched input projection for
    # the whole chunk: one lane-dense MXU matmul instead of one tiny dot per timestep.
    yn = seq_ref[0].astype(jnp.float32) * scale_ref[...] + shift_ref[...]       # (TT*B, Fp)
    gx_sc[...] = jnp.dot(yn.astype(jnp.bfloat16), wih_ref[...],
                         preferred_element_type=jnp.float32) + b_ref[...]       # (TT*B, 4Hp)

    # time-invariant operands hoisted out of the serial recurrence
    whh = whh_ref[...]
    wuh = wuh_ref[...]            # (1, Hp)
    buh = buh_ref[...]            # (1, 1)

    def step(t, carry):
        h, c, p, cu = carry
        gx = gx_sc[pl.ds(t * b_sz, b_sz), :]                                    # (B, 4Hp)
        gates = gx + jnp.dot(h.astype(jnp.bfloat16), whh,
                             preferred_element_type=jnp.float32)
        i = jax.nn.sigmoid(gates[:, 0 * hp:1 * hp])
        f = jax.nn.sigmoid(gates[:, 1 * hp:2 * hp])
        g = jnp.tanh(gates[:, 2 * hp:3 * hp])
        o = jax.nn.sigmoid(gates[:, 3 * hp:4 * hp])
        c_t = f * c + i * g
        h_t = o * jnp.tanh(c_t)

        # skip gating
        cum = cu + jnp.minimum(p, 1.0 - cu)
        gate = (cum >= 0.5).astype(jnp.float32)               # binarized update gate
        # (Hp,1)-wide matmul replaced by VPU multiply + row reduce (MXU stays free).
        p_t = jax.nn.sigmoid(jnp.sum(c_t * wuh, axis=-1, keepdims=True) + buh)  # (B, 1)

        h_n = gate * h_t + (1.0 - gate) * h
        c_n = gate * c_t + (1.0 - gate) * c
        p_n = gate * p_t + (1.0 - gate) * p
        cu_n = (1.0 - gate) * cum
        return h_n, c_n, p_n, cu_n

    carry0 = (h_sc[...], c_sc[...], p_sc[...], cu_sc[...])
    unroll = True if tt <= 8 else 1
    h, c, p, cu = jax.lax.fori_loop(0, tt, step, carry0, unroll=unroll)
    h_sc[...] = h
    c_sc[...] = c
    p_sc[...] = p
    cu_sc[...] = cu
    out_ref[...] = h


# ----------------------------------------------------------------------------
# Wrapper: full conv_lstm forward
# ----------------------------------------------------------------------------
def _round_up(n, m):
    return ((n + m - 1) // m) * m


def _pick_tile(n, target):
    t = max(1, min(n, target))
    while n % t:
        t -= 1
    return t


def conv_lstm_forward(x, params, kernel, stride, *, time_tile=128):
    B, T, Cin = x.shape
    F_ = params["w_conv"].shape[0]
    H = params["w_hh"].shape[0]
    K, S = kernel, stride
    Tp = (T - K) // S + 1

    Fp = _round_up(F_, 128)                 # lane-dense feature width
    Hp = _round_up(H, 128)                  # lane-dense hidden width (full-vreg gate slices)
    TT = _pick_tile(Tp, time_tile)          # exact divisor so BN stats cover exactly Tp*B rows
    nt = Tp // TT
    TTB = TT * B

    f32, bf16 = jnp.float32, jnp.bfloat16

    # ---- one-time parameter repacking (tiny, outside the hot path) ----------------
    w_taps = jnp.zeros((K, Cin, Fp), f32).at[:, :, :F_].set(
        jnp.transpose(params["w_conv"], (2, 1, 0))).astype(bf16)          # (K, Cin, Fp)
    b_conv = jnp.zeros((1, Fp), f32).at[0, :F_].set(params["b_conv"])
    gamma = jnp.zeros((Fp,), f32).at[:F_].set(params["gamma"])
    beta = jnp.zeros((Fp,), f32).at[:F_].set(params["beta"])

    # LSTM weights padded per-gate so every gate slice is a full 128-lane block.
    w_ih = jnp.zeros((Fp, 4, Hp), f32).at[:F_, :, :H].set(
        params["w_ih"].reshape(F_, 4, H)).reshape(Fp, 4 * Hp).astype(bf16)
    w_hh = jnp.zeros((Hp, 4, Hp), f32).at[:H, :, :H].set(
        params["w_hh"].reshape(H, 4, H)).reshape(Hp, 4 * Hp).astype(bf16)
    b_lstm = jnp.zeros((4, Hp), f32).at[:, :H].set(
        params["b_lstm"].reshape(4, H)).reshape(1, 4 * Hp)
    w_uh = jnp.zeros((1, Hp), f32).at[0, :H].set(params["w_uh"].reshape(H))
    b_uh = params["b_uh"].reshape(1, 1).astype(f32)

    # ---- input layout: time-major, flattened (time*batch, Cin) rows ---------------
    # (transposing the tiny Cin-wide input is cheap; the wide feature tensor is never
    #  transposed between the two kernels — Kernel A writes it time-major directly)
    x_tm = jnp.transpose(x, (1, 0, 2)).astype(f32)                        # (T, B, Cin)
    if S == 1:
        x2d = x_tm.reshape(T * B, Cin)          # zero-copy: no im2col duplication at all
        tap_row_stride = B
    else:
        # TODO(synk): stride>1 falls back to per-tap decimated copies (~K/S x input bytes).
        taps = [x_tm[k:k + S * (Tp - 1) + 1:S] for k in range(K)]
        x2d = jnp.concatenate(taps, axis=0).reshape(K * Tp * B, Cin)
        tap_row_stride = Tp * B
    R = x2d.shape[0]

    # ---- Kernel A: conv + ReLU + per-tile BN partial stats (parallel time grid) ----
    y_seq, part_stats = pl.pallas_call(
        functools.partial(_conv_relu_bn_stats_kernel, tap_row_stride=tap_row_stride),
        grid=(nt,),
        in_specs=[
            pl.BlockSpec((R, Cin), lambda t: (0, 0)),        # small raw input stays resident
            pl.BlockSpec((K, Cin, Fp), lambda t: (0, 0, 0)),
            pl.BlockSpec((1, Fp), lambda t: (0, 0)),
        ],
        out_specs=[
            pl.BlockSpec((1, TTB, Fp), lambda t: (t, 0, 0)),
            pl.BlockSpec((1, 2, Fp), lambda t: (t, 0, 0)),
        ],
        out_shape=[
            jax.ShapeDtypeStruct((nt, TTB, Fp), bf16),       # pre-BN features, time-major
            jax.ShapeDtypeStruct((nt, 2, Fp), f32),          # per-tile [sum; sumsq]
        ],
        compiler_params=pltpu.CompilerParams(dimension_semantics=("parallel",)),
    )(x2d, w_taps, b_conv)

    # ---- BN finalize: O(F) work, done in the wrapper (negligible) ------------------
    s = jnp.sum(part_stats, axis=0)                          # (2, Fp)
    n_rows = float(Tp * B)
    mean = s[0] / n_rows
    var = s[1] / n_rows - mean * mean                        # E[y^2] - mean^2 (train-mode BN)
    inv_std = jax.lax.rsqrt(var + 1e-5)
    bn_scale = (gamma * inv_std).reshape(1, Fp)
    bn_shift = (beta - mean * gamma * inv_std).reshape(1, Fp)

    # ---- Kernel B: SkipLSTM, sequence streamed in time chunks ----------------------
    h_full = pl.pallas_call(
        _skip_lstm_kernel,
        grid=(nt,),
        in_specs=[
            pl.BlockSpec((1, TTB, Fp), lambda t: (t, 0, 0)),     # streamed time chunk
            pl.BlockSpec((1, Fp), lambda t: (0, 0)),
            pl.BlockSpec((1, Fp), lambda t: (0, 0)),
            pl.BlockSpec((Fp, 4 * Hp), lambda t: (0, 0)),
            pl.BlockSpec((Hp, 4 * Hp), lambda t: (0, 0)),
            pl.BlockSpec((1, 4 * Hp), lambda t: (0, 0)),
            pl.BlockSpec((1, Hp), lambda t: (0, 0)),
            pl.BlockSpec((1, 1), lambda t: (0, 0)),
        ],
        out_specs=pl.BlockSpec((B, Hp), lambda t: (0, 0)),
        out_shape=jax.ShapeDtypeStruct((B, Hp), f32),
        scratch_shapes=[
            pltpu.VMEM((TTB, 4 * Hp), f32),    # per-chunk precomputed input gates
            pltpu.VMEM((B, Hp), f32),          # h carry
            pltpu.VMEM((B, Hp), f32),          # c carry
            pltpu.VMEM((B, 1), f32),           # update prob carry
            pltpu.VMEM((B, 1), f32),           # cumulative update prob carry
        ],
        compiler_params=pltpu.CompilerParams(dimension_semantics=("arbitrary",)),
    )(y_seq, bn_scale, bn_shift, w_ih, w_hh, b_lstm, w_uh, b_uh)

    return h_full[:, :H]                                     # drop lane padding -> (B, H)


if __name__ == "__main__":
    # Small, deterministic configuration
    B, T, Cin = 2, 16, 4          # input_size = 4
    K, S = 3, 1                   # kernel, stride
    F_ = 8                        # nb_filter
    H = 32                        # hidden_size

    key = jax.random.PRNGKey(0)
    ks = jax.random.split(key, 10)

    x = jax.random.normal(ks[0], (B, T, Cin), jnp.float32)

    params = {
        "w_conv": 0.3 * jax.random.normal(ks[1], (F_, Cin, K), jnp.float32),
        "b_conv": 0.1 * jax.random.normal(ks[2], (F_,), jnp.float32),
        "gamma": 1.0 + 0.1 * jax.random.normal(ks[3], (F_,), jnp.float32),
        "beta": 0.1 * jax.random.normal(ks[4], (F_,), jnp.float32),
        "w_ih": 0.2 * jax.random.normal(ks[5], (F_, 4 * H), jnp.float32),
        "w_hh": 0.2 * jax.random.normal(ks[6], (H, 4 * H), jnp.float32),
        "b_lstm": 0.1 * jax.random.normal(ks[7], (4 * H,), jnp.float32),
        "w_uh": 0.2 * jax.random.normal(ks[8], (H, 1), jnp.float32),
        "b_uh": 0.1 * jax.random.normal(ks[9], (1,), jnp.float32),
    }

    # time_tile=7 -> Tp=14 splits into 2 tiles/chunks, exercising the parallel stat tiles
    # in Kernel A and the cross-chunk h/c/p/cu carries in Kernel B.
    fwd = jax.jit(lambda xx, pp: conv_lstm_forward(xx, pp, K, S, time_tile=7))
    out = jax.block_until_ready(fwd(x, params))
    assert out.shape == (B, H), out.shape
    assert bool(jnp.all(jnp.isfinite(out)))
    print("KERNEL_OK")
</pallas_src>

<mosaic_0001>
module attributes {stable_mosaic.version = 11 : i64} {
  func.func @_conv_relu_bn_stats_kernel(%arg0: i32, %arg1: memref<32x4xf32, #tpu.memory_space<vmem>>, %arg2: memref<3x4x128xbf16, #tpu.memory_space<vmem>>, %arg3: memref<1x128xf32, #tpu.memory_space<vmem>>, %arg4: memref<1x14x128xbf16, #tpu.memory_space<vmem>>, %arg5: memref<1x2x128xf32, #tpu.memory_space<vmem>>) attributes {dimension_semantics = [#tpu.dimension_semantics<parallel>], iteration_bounds = array<i64: 2>, scalar_prefetch = 0 : i64, scratch_operands = 0 : i64, tpu.core_type = #tpu.core_type<tc>, window_params = [{pipeline_mode = #tpu.pipeline_mode<synchronous>, transform_indices = @transform_0, window_bounds = array<i64: 32, 4>}, {pipeline_mode = #tpu.pipeline_mode<synchronous>, transform_indices = @transform_1, window_bounds = array<i64: 3, 4, 128>}, {pipeline_mode = #tpu.pipeline_mode<synchronous>, transform_indices = @transform_2, window_bounds = array<i64: 1, 128>}, {transform_indices = @transform_3, window_bounds = array<i64: 1, 14, 128>}, {transform_indices = @transform_4, window_bounds = array<i64: 1, 2, 128>}]} {
    %c14_i32 = arith.constant 14 : i32
    %0 = arith.muli %arg0, %c14_i32 : i32
    %1 = tpu.assume_multiple %0, 14 : i32
    %cst = arith.constant 0.000000e+00 : f32
    %2 = vector.broadcast %cst : f32 to vector<14x128xf32>
    %c0_i32 = arith.constant 0 : i32
    %3 = arith.addi %1, %c0_i32 : i32
    %4 = arith.index_cast %3 : i32 to index
    %c0 = arith.constant 0 : index
    %5 = vector.load %arg1[%4, %c0] : memref<32x4xf32, #tpu.memory_space<vmem>>, vector<14x4xf32>
    %6 = arith.truncf %5 : vector<14x4xf32> to vector<14x4xbf16>
    %c0_0 = arith.constant 0 : index
    %c0_1 = arith.constant 0 : index
    %c0_2 = arith.constant 0 : index
    %7 = vector.load %arg2[%c0_0, %c0_1, %c0_2] : memref<3x4x128xbf16, #tpu.memory_space<vmem>>, vector<1x4x128xbf16>
    %8 = vector.shape_cast %7 : vector<1x4x128xbf16> to vector<4x128xbf16>
    %cst_3 = arith.constant dense<0.000000e+00> : vector<14x128xf32>
    %9 = tpu.matmul %6, %8, %cst_3 {dimension_numbers = #tpu.dot_dimension_numbers<[1], [0], [0], [1], [0, 0, 1, 1], [], []>} : vector<14x4xbf16>, vector<4x128xbf16>, vector<14x128xf32> -> vector<14x128xf32>
    %10 = arith.addf %2, %9 : vector<14x128xf32>
    %c2_i32 = arith.constant 2 : i32
    %11 = arith.addi %1, %c2_i32 : i32
    %12 = arith.index_cast %11 : i32 to index
    %c0_4 = arith.constant 0 : index
    %13 = vector.load %arg1[%12, %c0_4] : memref<32x4xf32, #tpu.memory_space<vmem>>, vector<14x4xf32>
    %14 = arith.truncf %13 : vector<14x4xf32> to vector<14x4xbf16>
    %c1 = arith.constant 1 : index
    %c0_5 = arith.constant 0 : index
    %c0_6 = arith.constant 0 : index
    %15 = vector.load %arg2[%c1, %c0_5, %c0_6] : memref<3x4x128xbf16, #tpu.memory_space<vmem>>, vector<1x4x128xbf16>
    %16 = vector.shape_cast %15 : vector<1x4x128xbf16> to vector<4x128xbf16>
    %cst_7 = arith.constant dense<0.000000e+00> : vector<14x128xf32>
    %17 = tpu.matmul %14, %16, %cst_7 {dimension_numbers = #tpu.dot_dimension_numbers<[1], [0], [0], [1], [0, 0, 1, 1], [], []>} : vector<14x4xbf16>, vector<4x128xbf16>, vector<14x128xf32> -> vector<14x128xf32>
    %18 = arith.addf %10, %17 : vector<14x128xf32>
    %c4_i32 = arith.constant 4 : i32
    %19 = arith.addi %1, %c4_i32 : i32
    %20 = arith.index_cast %19 : i32 to index
    %c0_8 = arith.constant 0 : index
    %21 = vector.load %arg1[%20, %c0_8] : memref<32x4xf32, #tpu.memory_space<vmem>>, vector<14x4xf32>
    %22 = arith.truncf %21 : vector<14x4xf32> to vector<14x4xbf16>
    %c2 = arith.constant 2 : index
    %c0_9 = arith.constant 0 : index
    %c0_10 = arith.constant 0 : index
    %23 = vector.load %arg2[%c2, %c0_9, %c0_10] : memref<3x4x128xbf16, #tpu.memory_space<vmem>>, vector<1x4x128xbf16>
    %24 = vector.shape_cast %23 : vector<1x4x128xbf16> to vector<4x128xbf16>
    %cst_11 = arith.constant dense<0.000000e+00> : vector<14x128xf32>
    %25 = tpu.matmul %22, %24, %cst_11 {dimension_numbers = #tpu.dot_dimension_numbers<[1], [0], [0], [1], [0, 0, 1, 1], [], []>} : vector<14x4xbf16>, vector<4x128xbf16>, vector<14x128xf32> -> vector<14x128xf32>
    %26 = arith.addf %18, %25 : vector<14x128xf32>
    %c0_12 = arith.constant 0 : index
    %c0_13 = arith.constant 0 : index
    %27 = vector.load %arg3[%c0_12, %c0_13] : memref<1x128xf32, #tpu.memory_space<vmem>>, vector<1x128xf32>
    %28 = vector.broadcast %27 : vector<1x128xf32> to vector<14x128xf32>
    %29 = arith.addf %26, %28 : vector<14x128xf32>
    %cst_14 = arith.constant 0.000000e+00 : f32
    %30 = vector.broadcast %cst_14 : f32 to vector<14x128xf32>
    %31 = arith.maximumf %29, %30 : vector<14x128xf32>
    %cst_15 = arith.constant dense<0.000000e+00> : vector<128xf32>
    %32 = vector.multi_reduction <add>, %31, %cst_15 [0] : vector<14x128xf32> to vector<128xf32>
    %33 = vector.shape_cast %32 : vector<128xf32> to vector<1x128xf32>
    %34 = arith.mulf %31, %31 : vector<14x128xf32>
    %cst_16 = arith.constant dense<0.000000e+00> : vector<128xf32>
    %35 = vector.multi_reduction <add>, %34, %cst_16 [0] : vector<14x128xf32> to vector<128xf32>
    %36 = vector.shape_cast %35 : vector<128xf32> to vector<1x128xf32>
    %37 = tpu.concatenate %33, %36 in 0 : vector<1x128xf32>, vector<1x128xf32> -> vector<2x128xf32>
    %c0_17 = arith.constant 0 : index
    %c0_18 = arith.constant 0 : index
    %c0_19 = arith.constant 0 : index
    %38 = vector.load %arg5[%c0_17, %c0_18, %c0_19] : memref<1x2x128xf32, #tpu.memory_space<vmem>>, vector<1x2x128xf32>
    %39 = vector.shape_cast %38 : vector<1x2x128xf32> to vector<2x128xf32>
    %40 = vector.shape_cast %37 : vector<2x128xf32> to vector<1x2x128xf32>
    tpu.vector_store %arg5[%c0_17, %c0_18, %c0_19], %40 {strides = array<i32>} : memref<1x2x128xf32, #tpu.memory_space<vmem>>, vector<1x2x128xf32>,
    %41 = arith.truncf %31 : vector<14x128xf32> to vector<14x128xbf16>
    %c0_20 = arith.constant 0 : index
    %c0_21 = arith.constant 0 : index
    %c0_22 = arith.constant 0 : index
    %42 = vector.load %arg4[%c0_20, %c0_21, %c0_22] : memref<1x14x128xbf16, #tpu.memory_space<vmem>>, vector<1x14x128xbf16>
    %43 = vector.shape_cast %42 : vector<1x14x128xbf16> to vector<14x128xbf16>
    %44 = vector.shape_cast %41 : vector<14x128xbf16> to vector<1x14x128xbf16>
    tpu.vector_store %arg4[%c0_20, %c0_21, %c0_22], %44 {strides = array<i32>} : memref<1x14x128xbf16, #tpu.memory_space<vmem>>, vector<1x14x128xbf16>,
    return
  }
  func.func @transform_0(%arg0: i32) -> (i32, i32) {
    %c0_i32 = arith.constant 0 : i32
    %c0_i32_0 = arith.constant 0 : i32
    %c0_i32_1 = arith.constant 0 : i32
    return %c0_i32, %c0_i32_0 : i32, i32
  }
  func.func @transform_1(%arg0: i32) -> (i32, i32, i32) {
    %c0_i32 = arith.constant 0 : i32
    %c0_i32_0 = arith.constant 0 : i32
    %c0_i32_1 = arith.constant 0 : i32
    %c0_i32_2 = arith.constant 0 : i32
    return %c0_i32, %c0_i32_0, %c0_i32_1 : i32, i32, i32
  }
  func.func @transform_2(%arg0: i32) -> (i32, i32) {
    %c0_i32 = arith.constant 0 : i32
    %c0_i32_0 = arith.constant 0 : i32
    %c0_i32_1 = arith.constant 0 : i32
    return %c0_i32, %c0_i32_0 : i32, i32
  }
  func.func @transform_3(%arg0: i32) -> (i32, i32, i32) {
    %c0_i32 = arith.constant 0 : i32
    %c0_i32_0 = arith.constant 0 : i32
    %c0_i32_1 = arith.constant 0 : i32
    return %arg0, %c0_i32, %c0_i32_0 : i32, i32, i32
  }
  func.func @transform_4(%arg0: i32) -> (i32, i32, i32) {
    %c0_i32 = arith.constant 0 : i32
    %c0_i32_0 = arith.constant 0 : i32
    %c0_i32_1 = arith.constant 0 : i32
    return %arg0, %c0_i32, %c0_i32_0 : i32, i32, i32
  }
}

module attributes {stable_mosaic.version = 11 : i64} {
  func.func @_skip_lstm_kernel(%arg0: i32, %arg1: memref<1x14x128xbf16, #tpu.memory_space<vmem>>, %arg2: memref<1x128xf32, #tpu.memory_space<vmem>>, %arg3: memref<1x128xf32, #tpu.memory_space<vmem>>, %arg4: memref<128x512xbf16, #tpu.memory_space<vmem>>, %arg5: memref<128x512xbf16, #tpu.memory_space<vmem>>, %arg6: memref<1x512xf32, #tpu.memory_space<vmem>>, %arg7: memref<1x128xf32, #tpu.memory_space<vmem>>, %arg8: memref<1x1xf32, #tpu.memory_space<vmem>>, %arg9: memref<2x128xf32, #tpu.memory_space<vmem>>, %arg10: memref<14x512xf32, #tpu.memory_space<vmem>>, %arg11: memref<2x128xf32, #tpu.memory_space<vmem>>, %arg12: memref<2x128xf32, #tpu.memory_space<vmem>>, %arg13: memref<2x1xf32, #tpu.memory_space<vmem>>, %arg14: memref<2x1xf32, #tpu.memory_space<vmem>>) attributes {dimension_semantics = [#tpu.dimension_semantics<arbitrary>], iteration_bounds = array<i64: 2>, scalar_prefetch = 0 : i64, scratch_operands = 5 : i64, tpu.core_type = #tpu.core_type<tc>, window_params = [{transform_indices = @transform_0, window_bounds = array<i64: 1, 14, 128>}, {pipeline_mode = #tpu.pipeline_mode<synchronous>, transform_indices = @transform_1, window_bounds = array<i64: 1, 128>}, {pipeline_mode = #tpu.pipeline_mode<synchronous>, transform_indices = @transform_2, window_bounds = array<i64: 1, 128>}, {pipeline_mode = #tpu.pipeline_mode<synchronous>, transform_indices = @transform_3, window_bounds = array<i64: 128, 512>}, {pipeline_mode = #tpu.pipeline_mode<synchronous>, transform_indices = @transform_4, window_bounds = array<i64: 128, 512>}, {pipeline_mode = #tpu.pipeline_mode<synchronous>, transform_indices = @transform_5, window_bounds = array<i64: 1, 512>}, {pipeline_mode = #tpu.pipeline_mode<synchronous>, transform_indices = @transform_6, window_bounds = array<i64: 1, 128>}, {pipeline_mode = #tpu.pipeline_mode<synchronous>, transform_indices = @transform_7, window_bounds = array<i64: 1, 1>}, {pipeline_mode = #tpu.pipeline_mode<synchronous>, transform_indices = @transform_8, window_bounds = array<i64: 2, 128>}]} {
    %c0_i32 = arith.constant 0 : i32
    %0 = arith.cmpi eq, %arg0, %c0_i32 : i32
    %1 = arith.extui %0 : i1 to i32
    %c0_i32_0 = arith.constant 0 : i32
    %2 = arith.cmpi ne, %1, %c0_i32_0 : i32
    scf.if %2 {
      %cst_136 = arith.constant 0.000000e+00 : f32
      %535 = vector.broadcast %cst_136 : f32 to vector<2x128xf32>
      %c0_137 = arith.constant 0 : index
      %c0_138 = arith.constant 0 : index
      %536 = vector.load %arg11[%c0_137, %c0_138] : memref<2x128xf32, #tpu.memory_space<vmem>>, vector<2x128xf32>
      tpu.vector_store %arg11[%c0_137, %c0_138], %535 {strides = array<i32>} : memref<2x128xf32, #tpu.memory_space<vmem>>, vector<2x128xf32>,
      %cst_139 = arith.constant 0.000000e+00 : f32
      %537 = vector.broadcast %cst_139 : f32 to vector<2x128xf32>
      %c0_140 = arith.constant 0 : index
      %c0_141 = arith.constant 0 : index
      %538 = vector.load %arg12[%c0_140, %c0_141] : memref<2x128xf32, #tpu.memory_space<vmem>>, vector<2x128xf32>
      tpu.vector_store %arg12[%c0_140, %c0_141], %537 {strides = array<i32>} : memref<2x128xf32, #tpu.memory_space<vmem>>, vector<2x128xf32>,
      %cst_142 = arith.constant 1.000000e+00 : f32
      %539 = vector.broadcast %cst_142 : f32 to vector<2x1xf32>
      %c0_143 = arith.constant 0 : index
      %c0_144 = arith.constant 0 : index
      %540 = vector.load %arg13[%c0_143, %c0_144] : memref<2x1xf32, #tpu.memory_space<vmem>>, vector<2x1xf32>
      tpu.vector_store %arg13[%c0_143, %c0_144], %539 {strides = array<i32>} : memref<2x1xf32, #tpu.memory_space<vmem>>, vector<2x1xf32>,
      %cst_145 = arith.constant 0.000000e+00 : f32
      %541 = vector.broadcast %cst_145 : f32 to vector<2x1xf32>
      %c0_146 = arith.constant 0 : index
      %c0_147 = arith.constant 0 : index
      %542 = vector.load %arg14[%c0_146, %c0_147] : memref<2x1xf32, #tpu.memory_space<vmem>>, vector<2x1xf32>
      tpu.vector_store %arg14[%c0_146, %c0_147], %541 {strides = array<i32>} : memref<2x1xf32, #tpu.memory_space<vmem>>, vector<2x1xf32>,
    } else {
    }
    %c0 = arith.constant 0 : index
    %c0_1 = arith.constant 0 : index
    %c0_2 = arith.constant 0 : index
    %3 = vector.load %arg1[%c0, %c0_1, %c0_2] : memref<1x14x128xbf16, #tpu.memory_space<vmem>>, vector<1x14x128xbf16>
    %4 = vector.shape_cast %3 : vector<1x14x128xbf16> to vector<14x128xbf16>
    %5 = arith.extf %4 : vector<14x128xbf16> to vector<14x128xf32>
    %c0_3 = arith.constant 0 : index
    %c0_4 = arith.constant 0 : index
    %6 = vector.load %arg2[%c0_3, %c0_4] : memref<1x128xf32, #tpu.memory_space<vmem>>, vector<1x128xf32>
    %7 = vector.broadcast %6 : vector<1x128xf32> to vector<14x128xf32>
    %8 = arith.mulf %5, %7 : vector<14x128xf32>
    %c0_5 = arith.constant 0 : index
    %c0_6 = arith.constant 0 : index
    %9 = vector.load %arg3[%c0_5, %c0_6] : memref<1x128xf32, #tpu.memory_space<vmem>>, vector<1x128xf32>
    %10 = vector.broadcast %9 : vector<1x128xf32> to vector<14x128xf32>
    %11 = arith.addf %8, %10 : vector<14x128xf32>
    %12 = arith.truncf %11 : vector<14x128xf32> to vector<14x128xbf16>
    %c0_7 = arith.constant 0 : index
    %c0_8 = arith.constant 0 : index
    %13 = vector.load %arg4[%c0_7, %c0_8] : memref<128x512xbf16, #tpu.memory_space<vmem>>, vector<128x512xbf16>
    %cst = arith.constant dense<0.000000e+00> : vector<14x512xf32>
    %14 = tpu.matmul %12, %13, %cst {dimension_numbers = #tpu.dot_dimension_numbers<[1], [0], [0], [1], [0, 0, 1, 1], [], []>} : vector<14x128xbf16>, vector<128x512xbf16>, vector<14x512xf32> -> vector<14x512xf32>
    %c0_9 = arith.constant 0 : index
    %c0_10 = arith.constant 0 : index
    %15 = vector.load %arg6[%c0_9, %c0_10] : memref<1x512xf32, #tpu.memory_space<vmem>>, vector<1x512xf32>
    %16 = vector.broadcast %15 : vector<1x512xf32> to vector<14x512xf32>
    %17 = arith.addf %14, %16 : vector<14x512xf32>
    %c0_11 = arith.constant 0 : index
    %c0_12 = arith.constant 0 : index
    %18 = vector.load %arg10[%c0_11, %c0_12] : memref<14x512xf32, #tpu.memory_space<vmem>>, vector<14x512xf32>
    tpu.vector_store %arg10[%c0_11, %c0_12], %17 {strides = array<i32>} : memref<14x512xf32, #tpu.memory_space<vmem>>, vector<14x512xf32>,
    %c0_13 = arith.constant 0 : index
    %c0_14 = arith.constant 0 : index
    %19 = vector.load %arg5[%c0_13, %c0_14] : memref<128x512xbf16, #tpu.memory_space<vmem>>, vector<128x512xbf16>
    %c0_15 = arith.constant 0 : index
    %c0_16 = arith.constant 0 : index
    %20 = vector.load %arg7[%c0_15, %c0_16] : memref<1x128xf32, #tpu.memory_space<vmem>>, vector<1x128xf32>
    %c0_17 = arith.constant 0 : index
    %c0_18 = arith.constant 0 : index
    %21 = vector.load %arg8[%c0_17, %c0_18] : memref<1x1xf32, #tpu.memory_space<vmem>>, vector<1x1xf32>
    %c0_19 = arith.constant 0 : index
    %c0_20 = arith.constant 0 : index
    %22 = vector.load %arg11[%c0_19, %c0_20] : memref<2x128xf32, #tpu.memory_space<vmem>>, vector<2x128xf32>
    %c0_21 = arith.constant 0 : index
    %c0_22 = arith.constant 0 : index
    %23 = vector.load %arg12[%c0_21, %c0_22] : memref<2x128xf32, #tpu.memory_space<vmem>>, vector<2x128xf32>
    %c0_23 = arith.constant 0 : index
    %c0_24 = arith.constant 0 : index
    %24 = vector.load %arg13[%c0_23, %c0_24] : memref<2x1xf32, #tpu.memory_space<vmem>>, vector<2x1xf32>
    %c0_25 = arith.constant 0 : index
    %c0_26 = arith.constant 0 : index
    %25 = vector.load %arg14[%c0_25, %c0_26] : memref<2x1xf32, #tpu.memory_space<vmem>>, vector<2x1xf32>
    %c0_i32_27 = arith.constant 0 : i32
    %c2_i32 = arith.constant 2 : i32
    %26 = arith.muli %c0_i32_27, %c2_i32 : i32
    %27 = arith.index_cast %26 : i32 to index
    %c0_28 = arith.constant 0 : index
    %28 = vector.load %arg10[%27, %c0_28] : memref<14x512xf32, #tpu.memory_space<vmem>>, vector<2x512xf32>
    %29 = arith.truncf %22 : vector<2x128xf32> to vector<2x128xbf16>
    %cst_29 = arith.constant dense<0.000000e+00> : vector<2x512xf32>
    %30 = tpu.matmul %29, %19, %cst_29 {dimension_numbers = #tpu.dot_dimension_numbers<[1], [0], [0], [1], [0, 0, 1, 1], [], []>} : vector<2x128xbf16>, vector<128x512xbf16>, vector<2x512xf32> -> vector<2x512xf32>
    %31 = arith.addf %28, %30 : vector<2x512xf32>
    %32 = vector.extract_strided_slice %31 {offsets = [0, 0], sizes = [2, 128], strides = [1, 1]} : vector<2x512xf32> to vector<2x128xf32>
    %33 = arith.negf %32 : vector<2x128xf32>
    %34 = math.exp %33 : vector<2x128xf32>
    %cst_30 = arith.constant 1.000000e+00 : f32
    %35 = vector.broadcast %cst_30 : f32 to vector<2x128xf32>
    %36 = arith.addf %35, %34 : vector<2x128xf32>
    %37 = arith.divf %35, %36 : vector<2x128xf32>
    %38 = vector.extract_strided_slice %31 {offsets = [0, 128], sizes = [2, 128], strides = [1, 1]} : vector<2x512xf32> to vector<2x128xf32>
    %39 = arith.negf %38 : vector<2x128xf32>
    %40 = math.exp %39 : vector<2x128xf32>
    %cst_31 = arith.constant 1.000000e+00 : f32
    %41 = vector.broadcast %cst_31 : f32 to vector<2x128xf32>
    %42 = arith.addf %41, %40 : vector<2x128xf32>
    %43 = arith.divf %41, %42 : vector<2x128xf32>
    %44 = vector.extract_strided_slice %31 {offsets = [0, 256], sizes = [2, 128], strides = [1, 1]} : vector<2x512xf32> to vector<2x128xf32>
    %45 = math.tanh %44 : vector<2x128xf32>
    %46 = vector.extract_strided_slice %31 {offsets = [0, 384], sizes = [2, 128], strides = [1, 1]} : vector<2x512xf32> to vector<2x128xf32>
    %47 = arith.negf %46 : vector<2x128xf32>
    %48 = math.exp %47 : vector<2x128xf32>
    %cst_32 = arith.constant 1.000000e+00 : f32
    %49 = vector.broadcast %cst_32 : f32 to vector<2x128xf32>
    %50 = arith.addf %49, %48 : vector<2x128xf32>
    %51 = arith.divf %49, %50 : vector<2x128xf32>
    %52 = arith.mulf %43, %23 : vector<2x128xf32>
    %53 = arith.mulf %37, %45 : vector<2x128xf32>
    %54 = arith.addf %52, %53 : vector<2x128xf32>
    %55 = math.tanh %54 : vector<2x128xf32>
    %56 = arith.mulf %51, %55 : vector<2x128xf32>
    %cst_33 = arith.constant 1.000000e+00 : f32
    %57 = vector.broadcast %cst_33 : f32 to vector<2x1xf32>
    %58 = arith.subf %57, %25 : vector<2x1xf32>
    %59 = arith.minimumf %24, %58 : vector<2x1xf32>
    %60 = arith.addf %25, %59 : vector<2x1xf32>
    %cst_34 = arith.constant 5.000000e-01 : f32
    %61 = vector.broadcast %cst_34 : f32 to vector<2x1xf32>
    %62 = arith.cmpf oge, %60, %61 : vector<2x1xf32>
    %63 = arith.extui %62 : vector<2x1xi1> to vector<2x1xi32>
    %64 = arith.sitofp %63 : vector<2x1xi32> to vector<2x1xf32>
    %65 = vector.broadcast %20 : vector<1x128xf32> to vector<2x128xf32>
    %66 = arith.mulf %54, %65 : vector<2x128xf32>
    %cst_35 = arith.constant dense<0.000000e+00> : vector<2xf32>
    %67 = vector.multi_reduction <add>, %66, %cst_35 [1] : vector<2x128xf32> to vector<2xf32>
    %68 = vector.shape_cast %67 : vector<2xf32> to vector<2x1xf32>
    %69 = vector.broadcast %21 : vector<1x1xf32> to vector<2x1xf32>
    %70 = arith.addf %68, %69 : vector<2x1xf32>
    %71 = arith.negf %70 : vector<2x1xf32>
    %72 = math.exp %71 : vector<2x1xf32>
    %cst_36 = arith.constant 1.000000e+00 : f32
    %73 = vector.broadcast %cst_36 : f32 to vector<2x1xf32>
    %74 = arith.addf %73, %72 : vector<2x1xf32>
    %75 = arith.divf %73, %74 : vector<2x1xf32>
    %76 = vector.broadcast %64 : vector<2x1xf32> to vector<2x128xf32>
    %77 = arith.mulf %76, %56 : vector<2x128xf32>
    %cst_37 = arith.constant 1.000000e+00 : f32
    %78 = vector.broadcast %cst_37 : f32 to vector<2x1xf32>
    %79 = arith.subf %78, %64 : vector<2x1xf32>
    %80 = vector.broadcast %79 : vector<2x1xf32> to vector<2x128xf32>
    %81 = arith.mulf %80, %22 : vector<2x128xf32>
    %82 = arith.addf %77, %81 : vector<2x128xf32>
    %83 = vector.broadcast %64 : vector<2x1xf32> to vector<2x128xf32>
    %84 = arith.mulf %83, %54 : vector<2x128xf32>
    %cst_38 = arith.constant 1.000000e+00 : f32
    %85 = vector.broadcast %cst_38 : f32 to vector<2x1xf32>
    %86 = arith.subf %85, %64 : vector<2x1xf32>
    %87 = vector.broadcast %86 : vector<2x1xf32> to vector<2x128xf32>
    %88 = arith.mulf %87, %23 : vector<2x128xf32>
    %89 = arith.addf %84, %88 : vector<2x128xf32>
    %90 = arith.mulf %64, %75 : vector<2x1xf32>
    %cst_39 = arith.constant 1.000000e+00 : f32
    %91 = vector.broadcast %cst_39 : f32 to vector<2x1xf32>
    %92 = arith.subf %91, %64 : vector<2x1xf32>
    %93 = arith.mulf %92, %24 : vector<2x1xf32>
    %94 = arith.addf %90, %93 : vector<2x1xf32>
    %cst_40 = arith.constant 1.000000e+00 : f32
    %95 = vector.broadcast %cst_40 : f32 to vector<2x1xf32>
    %96 = arith.subf %95, %64 : vector<2x1xf32>
    %97 = arith.mulf %96, %60 : vector<2x1xf32>
    %c1_i32 = arith.constant 1 : i32
    %c2_i32_41 = arith.constant 2 : i32
    %98 = arith.muli %c1_i32, %c2_i32_41 : i32
    %99 = arith.index_cast %98 : i32 to index
    %c0_42 = arith.constant 0 : index
    %100 = vector.load %arg10[%99, %c0_42] : memref<14x512xf32, #tpu.memory_space<vmem>>, vector<2x512xf32>
    %101 = arith.truncf %82 : vector<2x128xf32> to vector<2x128xbf16>
    %cst_43 = arith.constant dense<0.000000e+00> : vector<2x512xf32>
    %102 = tpu.matmul %101, %19, %cst_43 {dimension_numbers = #tpu.dot_dimension_numbers<[1], [0], [0], [1], [0, 0, 1, 1], [], []>} : vector<2x128xbf16>, vector<128x512xbf16>, vector<2x512xf32> -> vector<2x512xf32>
    %103 = arith.addf %100, %102 : vector<2x512xf32>
    %104 = vector.extract_strided_slice %103 {offsets = [0, 0], sizes = [2, 128], strides = [1, 1]} : vector<2x512xf32> to vector<2x128xf32>
    %105 = arith.negf %104 : vector<2x128xf32>
    %106 = math.exp %105 : vector<2x128xf32>
    %cst_44 = arith.constant 1.000000e+00 : f32
    %107 = vector.broadcast %cst_44 : f32 to vector<2x128xf32>
    %108 = arith.addf %107, %106 : vector<2x128xf32>
    %109 = arith.divf %107, %108 : vector<2x128xf32>
    %110 = vector.extract_strided_slice %103 {offsets = [0, 128], sizes = [2, 128], strides = [1, 1]} : vector<2x512xf32> to vector<2x128xf32>
    %111 = arith.negf %110 : vector<2x128xf32>
    %112 = math.exp %111 : vector<2x128xf32>
    %cst_45 = arith.constant 1.000000e+00 : f32
    %113 = vector.broadcast %cst_45 : f32 to vector<2x128xf32>
    %114 = arith.addf %113, %112 : vector<2x128xf32>
    %115 = arith.divf %113, %114 : vector<2x128xf32>
    %116 = vector.extract_strided_slice %103 {offsets = [0, 256], sizes = [2, 128], strides = [1, 1]} : vector<2x512xf32> to vector<2x128xf32>
    %117 = math.tanh %116 : vector<2x128xf32>
    %118 = vector.extract_strided_slice %103 {offsets = [0, 384], sizes = [2, 128], strides = [1, 1]} : vector<2x512xf32> to vector<2x128xf32>
    %119 = arith.negf %118 : vector<2x128xf32>
    %120 = math.exp %119 : vector<2x128xf32>
    %cst_46 = arith.constant 1.000000e+00 : f32
    %121 = vector.broadcast %cst_46 : f32 to vector<2x128xf32>
    %122 = arith.addf %121, %120 : vector<2x128xf32>
    %123 = arith.divf %121, %122 : vector<2x128xf32>
    %124 = arith.mulf %115, %89 : vector<2x128xf32>
    %125 = arith.mulf %109, %117 : vector<2x128xf32>
    %126 = arith.addf %124, %125 : vector<2x128xf32>
    %127 = math.tanh %126 : vector<2x128xf32>
    %128 = arith.mulf %123, %127 : vector<2x128xf32>
    %cst_47 = arith.constant 1.000000e+00 : f32
    %129 = vector.broadcast %cst_47 : f32 to vector<2x1xf32>
    %130 = arith.subf %129, %97 : vector<2x1xf32>
    %131 = arith.minimumf %94, %130 : vector<2x1xf32>
    %132 = arith.addf %97, %131 : vector<2x1xf32>
    %cst_48 = arith.constant 5.000000e-01 : f32
    %133 = vector.broadcast %cst_48 : f32 to vector<2x1xf32>
    %134 = arith.cmpf oge, %132, %133 : vector<2x1xf32>
    %135 = arith.extui %134 : vector<2x1xi1> to vector<2x1xi32>
    %136 = arith.sitofp %135 : vector<2x1xi32> to vector<2x1xf32>
    %137 = vector.broadcast %20 : vector<1x128xf32> to vector<2x128xf32>
    %138 = arith.mulf %126, %137 : vector<2x128xf32>
    %cst_49 = arith.constant dense<0.000000e+00> : vector<2xf32>
    %139 = vector.multi_reduction <add>, %138, %cst_49 [1] : vector<2x128xf32> to vector<2xf32>
    %140 = vector.shape_cast %139 : vector<2xf32> to vector<2x1xf32>
    %141 = vector.broadcast %21 : vector<1x1xf32> to vector<2x1xf32>
    %142 = arith.addf %140, %141 : vector<2x1xf32>
    %143 = arith.negf %142 : vector<2x1xf32>
    %144 = math.exp %143 : vector<2x1xf32>
    %cst_50 = arith.constant 1.000000e+00 : f32
    %145 = vector.broadcast %cst_50 : f32 to vector<2x1xf32>
    %146 = arith.addf %145, %144 : vector<2x1xf32>
    %147 = arith.divf %145, %146 : vector<2x1xf32>
    %148 = vector.broadcast %136 : vector<2x1xf32> to vector<2x128xf32>
    %149 = arith.mulf %148, %128 : vector<2x128xf32>
    %cst_51 = arith.constant 1.000000e+00 : f32
    %150 = vector.broadcast %cst_51 : f32 to vector<2x1xf32>
    %151 = arith.subf %150, %136 : vector<2x1xf32>
    %152 = vector.broadcast %151 : vector<2x1xf32> to vector<2x128xf32>
    %153 = arith.mulf %152, %82 : vector<2x128xf32>
    %154 = arith.addf %149, %153 : vector<2x128xf32>
    %155 = vector.broadcast %136 : vector<2x1xf32> to vector<2x128xf32>
    %156 = arith.mulf %155, %126 : vector<2x128xf32>
    %cst_52 = arith.constant 1.000000e+00 : f32
    %157 = vector.broadcast %cst_52 : f32 to vector<2x1xf32>
    %158 = arith.subf %157, %136 : vector<2x1xf32>
    %159 = vector.broadcast %158 : vector<2x1xf32> to vector<2x128xf32>
    %160 = arith.mulf %159, %89 : vector<2x128xf32>
    %161 = arith.addf %156, %160 : vector<2x128xf32>
    %162 = arith.mulf %136, %147 : vector<2x1xf32>
    %cst_53 = arith.constant 1.000000e+00 : f32
    %163 = vector.broadcast %cst_53 : f32 to vector<2x1xf32>
    %164 = arith.subf %163, %136 : vector<2x1xf32>
    %165 = arith.mulf %164, %94 : vector<2x1xf32>
    %166 = arith.addf %162, %165 : vector<2x1xf32>
    %cst_54 = arith.constant 1.000000e+00 : f32
    %167 = vector.broadcast %cst_54 : f32 to vector<2x1xf32>
    %168 = arith.subf %167, %136 : vector<2x1xf32>
    %169 = arith.mulf %168, %132 : vector<2x1xf32>
    %c2_i32_55 = arith.constant 2 : i32
    %c2_i32_56 = arith.constant 2 : i32
    %170 = arith.muli %c2_i32_55, %c2_i32_56 : i32
    %171 = arith.index_cast %170 : i32 to index
    %c0_57 = arith.constant 0 : index
    %172 = vector.load %arg10[%171, %c0_57] : memref<14x512xf32, #tpu.memory_space<vmem>>, vector<2x512xf32>
    %173 = arith.truncf %154 : vector<2x128xf32> to vector<2x128xbf16>
    %cst_58 = arith.constant dense<0.000000e+00> : vector<2x512xf32>
    %174 = tpu.matmul %173, %19, %cst_58 {dimension_numbers = #tpu.dot_dimension_numbers<[1], [0], [0], [1], [0, 0, 1, 1], [], []>} : vector<2x128xbf16>, vector<128x512xbf16>, vector<2x512xf32> -> vector<2x512xf32>
    %175 = arith.addf %172, %174 : vector<2x512xf32>
    %176 = vector.extract_strided_slice %175 {offsets = [0, 0], sizes = [2, 128], strides = [1, 1]} : vector<2x512xf32> to vector<2x128xf32>
    %177 = arith.negf %176 : vector<2x128xf32>
    %178 = math.exp %177 : vector<2x128xf32>
    %cst_59 = arith.constant 1.000000e+00 : f32
    %179 = vector.broadcast %cst_59 : f32 to vector<2x128xf32>
    %180 = arith.addf %179, %178 : vector<2x128xf32>
    %181 = arith.divf %179, %180 : vector<2x128xf32>
    %182 = vector.extract_strided_slice %175 {offsets = [0, 128], sizes = [2, 128], strides = [1, 1]} : vector<2x512xf32> to vector<2x128xf32>
    %183 = arith.negf %182 : vector<2x128xf32>
    %184 = math.exp %183 : vector<2x128xf32>
    %cst_60 = arith.constant 1.000000e+00 : f32
    %185 = vector.broadcast %cst_60 : f32 to vector<2x128xf32>
    %186 = arith.addf %185, %184 : vector<2x128xf32>
    %187 = arith.divf %185, %186 : vector<2x128xf32>
    %188 = vector.extract_strided_slice %175 {offsets = [0, 256], sizes = [2, 128], strides = [1, 1]} : vector<2x512xf32> to vector<2x128xf32>
    %189 = math.tanh %188 : vector<2x128xf32>
    %190 = vector.extract_strided_slice %175 {offsets = [0, 384], sizes = [2, 128], strides = [1, 1]} : vector<2x512xf32> to vector<2x128xf32>
    %191 = arith.negf %190 : vector<2x128xf32>
    %192 = math.exp %191 : vector<2x128xf32>
    %cst_61 = arith.constant 1.000000e+00 : f32
    %193 = vector.broadcast %cst_61 : f32 to vector<2x128xf32>
    %194 = arith.addf %193, %192 : vector<2x128xf32>
    %195 = arith.divf %193, %194 : vector<2x128xf32>
    %196 = arith.mulf %187, %161 : vector<2x128xf32>
    %197 = arith.mulf %181, %189 : vector<2x128xf32>
    %198 = arith.addf %196, %197 : vector<2x128xf32>
    %199 = math.tanh %198 : vector<2x128xf32>
    %200 = arith.mulf %195, %199 : vector<2x128xf32>
    %cst_62 = arith.constant 1.000000e+00 : f32
    %201 = vector.broadcast %cst_62 : f32 to vector<2x1xf32>
    %202 = arith.subf %201, %169 : vector<2x1xf32>
    %203 = arith.minimumf %166, %202 : vector<2x1xf32>
    %204 = arith.addf %169, %203 : vector<2x1xf32>
    %cst_63 = arith.constant 5.000000e-01 : f32
    %205 = vector.broadcast %cst_63 : f32 to vector<2x1xf32>
    %206 = arith.cmpf oge, %204, %205 : vector<2x1xf32>
    %207 = arith.extui %206 : vector<2x1xi1> to vector<2x1xi32>
    %208 = arith.sitofp %207 : vector<2x1xi32> to vector<2x1xf32>
    %209 = vector.broadcast %20 : vector<1x128xf32> to vector<2x128xf32>
    %210 = arith.mulf %198, %209 : vector<2x128xf32>
    %cst_64 = arith.constant dense<0.000000e+00> : vector<2xf32>
    %211 = vector.multi_reduction <add>, %210, %cst_64 [1] : vector<2x128xf32> to vector<2xf32>
    %212 = vector.shape_cast %211 : vector<2xf32> to vector<2x1xf32>
    %213 = vector.broadcast %21 : vector<1x1xf32> to vector<2x1xf32>
    %214 = arith.addf %212, %213 : vector<2x1xf32>
    %215 = arith.negf %214 : vector<2x1xf32>
    %216 = math.exp %215 : vector<2x1xf32>
    %cst_65 = arith.constant 1.000000e+00 : f32
    %217 = vector.broadcast %cst_65 : f32 to vector<2x1xf32>
    %218 = arith.addf %217, %216 : vector<2x1xf32>
    %219 = arith.divf %217, %218 : vector<2x1xf32>
    %220 = vector.broadcast %208 : vector<2x1xf32> to vector<2x128xf32>
    %221 = arith.mulf %220, %200 : vector<2x128xf32>
    %cst_66 = arith.constant 1.000000e+00 : f32
    %222 = vector.broadcast %cst_66 : f32 to vector<2x1xf32>
    %223 = arith.subf %222, %208 : vector<2x1xf32>
    %224 = vector.broadcast %223 : vector<2x1xf32> to vector<2x128xf32>
    %225 = arith.mulf %224, %154 : vector<2x128xf32>
    %226 = arith.addf %221, %225 : vector<2x128xf32>
    %227 = vector.broadcast %208 : vector<2x1xf32> to vector<2x128xf32>
    %228 = arith.mulf %227, %198 : vector<2x128xf32>
    %cst_67 = arith.constant 1.000000e+00 : f32
    %229 = vector.broadcast %cst_67 : f32 to vector<2x1xf32>
    %230 = arith.subf %229, %208 : vector<2x1xf32>
    %231 = vector.broadcast %230 : vector<2x1xf32> to vector<2x128xf32>
    %232 = arith.mulf %231, %161 : vector<2x128xf32>
    %233 = arith.addf %228, %232 : vector<2x128xf32>
    %234 = arith.mulf %208, %219 : vector<2x1xf32>
    %cst_68 = arith.constant 1.000000e+00 : f32
    %235 = vector.broadcast %cst_68 : f32 to vector<2x1xf32>
    %236 = arith.subf %235, %208 : vector<2x1xf32>
    %237 = arith.mulf %236, %166 : vector<2x1xf32>
    %238 = arith.addf %234, %237 : vector<2x1xf32>
    %cst_69 = arith.constant 1.000000e+00 : f32
    %239 = vector.broadcast %cst_69 : f32 to vector<2x1xf32>
    %240 = arith.subf %239, %208 : vector<2x1xf32>
    %241 = arith.mulf %240, %204 : vector<2x1xf32>
    %c3_i32 = arith.constant 3 : i32
    %c2_i32_70 = arith.constant 2 : i32
    %242 = arith.muli %c3_i32, %c2_i32_70 : i32
    %243 = arith.index_cast %242 : i32 to index
    %c0_71 = arith.constant 0 : index
    %244 = vector.load %arg10[%243, %c0_71] : memref<14x512xf32, #tpu.memory_space<vmem>>, vector<2x512xf32>
    %245 = arith.truncf %226 : vector<2x128xf32> to vector<2x128xbf16>
    %cst_72 = arith.constant dense<0.000000e+00> : vector<2x512xf32>
    %246 = tpu.matmul %245, %19, %cst_72 {dimension_numbers = #tpu.dot_dimension_numbers<[1], [0], [0], [1], [0, 0, 1, 1], [], []>} : vector<2x128xbf16>, vector<128x512xbf16>, vector<2x512xf32> -> vector<2x512xf32>
    %247 = arith.addf %244, %246 : vector<2x512xf32>
    %248 = vector.extract_strided_slice %247 {offsets = [0, 0], sizes = [2, 128], strides = [1, 1]} : vector<2x512xf32> to vector<2x128xf32>
    %249 = arith.negf %248 : vector<2x128xf32>
    %250 = math.exp %249 : vector<2x128xf32>
    %cst_73 = arith.constant 1.000000e+00 : f32
    %251 = vector.broadcast %cst_73 : f32 to vector<2x128xf32>
    %252 = arith.addf %251, %250 : vector<2x128xf32>
    %253 = arith.divf %251, %252 : vector<2x128xf32>
    %254 = vector.extract_strided_slice %247 {offsets = [0, 128], sizes = [2, 128], strides = [1, 1]} : vector<2x512xf32> to vector<2x128xf32>
    %255 = arith.negf %254 : vector<2x128xf32>
    %256 = math.exp %255 : vector<2x128xf32>
    %cst_74 = arith.constant 1.000000e+00 : f32
    %257 = vector.broadcast %cst_74 : f32 to vector<2x128xf32>
    %258 = arith.addf %257, %256 : vector<2x128xf32>
    %259 = arith.divf %257, %258 : vector<2x128xf32>
    %260 = vector.extract_strided_slice %247 {offsets = [0, 256], sizes = [2, 128], strides = [1, 1]} : vector<2x512xf32> to vector<2x128xf32>
    %261 = math.tanh %260 : vector<2x128xf32>
    %262 = vector.extract_strided_slice %247 {offsets = [0, 384], sizes = [2, 128], strides = [1, 1]} : vector<2x512xf32> to vector<2x128xf32>
    %263 = arith.negf %262 : vector<2x128xf32>
    %264 = math.exp %263 : vector<2x128xf32>
    %cst_75 = arith.constant 1.000000e+00 : f32
    %265 = vector.broadcast %cst_75 : f32 to vector<2x128xf32>
    %266 = arith.addf %265, %264 : vector<2x128xf32>
    %267 = arith.divf %265, %266 : vector<2x128xf32>
    %268 = arith.mulf %259, %233 : vector<2x128xf32>
    %269 = arith.mulf %253, %261 : vector<2x128xf32>
    %270 = arith.addf %268, %269 : vector<2x128xf32>
    %271 = math.tanh %270 : vector<2x128xf32>
    %272 = arith.mulf %267, %271 : vector<2x128xf32>
    %cst_76 = arith.constant 1.000000e+00 : f32
    %273 = vector.broadcast %cst_76 : f32 to vector<2x1xf32>
    %274 = arith.subf %273, %241 : vector<2x1xf32>
    %275 = arith.minimumf %238, %274 : vector<2x1xf32>
    %276 = arith.addf %241, %275 : vector<2x1xf32>
    %cst_77 = arith.constant 5.000000e-01 : f32
    %277 = vector.broadcast %cst_77 : f32 to vector<2x1xf32>
    %278 = arith.cmpf oge, %276, %277 : vector<2x1xf32>
    %279 = arith.extui %278 : vector<2x1xi1> to vector<2x1xi32>
    %280 = arith.sitofp %279 : vector<2x1xi32> to vector<2x1xf32>
    %281 = vector.broadcast %20 : vector<1x128xf32> to vector<2x128xf32>
    %282 = arith.mulf %270, %281 : vector<2x128xf32>
    %cst_78 = arith.constant dense<0.000000e+00> : vector<2xf32>
    %283 = vector.multi_reduction <add>, %282, %cst_78 [1] : vector<2x128xf32> to vector<2xf32>
    %284 = vector.shape_cast %283 : vector<2xf32> to vector<2x1xf32>
    %285 = vector.broadcast %21 : vector<1x1xf32> to vector<2x1xf32>
    %286 = arith.addf %284, %285 : vector<2x1xf32>
    %287 = arith.negf %286 : vector<2x1xf32>
    %288 = math.exp %287 : vector<2x1xf32>
    %cst_79 = arith.constant 1.000000e+00 : f32
    %289 = vector.broadcast %cst_79 : f32 to vector<2x1xf32>
    %290 = arith.addf %289, %288 : vector<2x1xf32>
    %291 = arith.divf %289, %290 : vector<2x1xf32>
    %292 = vector.broadcast %280 : vector<2x1xf32> to vector<2x128xf32>
    %293 = arith.mulf %292, %272 : vector<2x128xf32>
    %cst_80 = arith.constant 1.000000e+00 : f32
    %294 = vector.broadcast %cst_80 : f32 to vector<2x1xf32>
    %295 = arith.subf %294, %280 : vector<2x1xf32>
    %296 = vector.broadcast %295 : vector<2x1xf32> to vector<2x128xf32>
    %297 = arith.mulf %296, %226 : vector<2x128xf32>
    %298 = arith.addf %293, %297 : vector<2x128xf32>
    %299 = vector.broadcast %280 : vector<2x1xf32> to vector<2x128xf32>
    %300 = arith.mulf %299, %270 : vector<2x128xf32>
    %cst_81 = arith.constant 1.000000e+00 : f32
    %301 = vector.broadcast %cst_81 : f32 to vector<2x1xf32>
    %302 = arith.subf %301, %280 : vector<2x1xf32>
    %303 = vector.broadcast %302 : vector<2x1xf32> to vector<2x128xf32>
    %304 = arith.mulf %303, %233 : vector<2x128xf32>
    %305 = arith.addf %300, %304 : vector<2x128xf32>
    %306 = arith.mulf %280, %291 : vector<2x1xf32>
    %cst_82 = arith.constant 1.000000e+00 : f32
    %307 = vector.broadcast %cst_82 : f32 to vector<2x1xf32>
    %308 = arith.subf %307, %280 : vector<2x1xf32>
    %309 = arith.mulf %308, %238 : vector<2x1xf32>
    %310 = arith.addf %306, %309 : vector<2x1xf32>
    %cst_83 = arith.constant 1.000000e+00 : f32
    %311 = vector.broadcast %cst_83 : f32 to vector<2x1xf32>
    %312 = arith.subf %311, %280 : vector<2x1xf32>
    %313 = arith.mulf %312, %276 : vector<2x1xf32>
    %c4_i32 = arith.constant 4 : i32
    %c2_i32_84 = arith.constant 2 : i32
    %314 = arith.muli %c4_i32, %c2_i32_84 : i32
    %315 = arith.index_cast %314 : i32 to index
    %c0_85 = arith.constant 0 : index
    %316 = vector.load %arg10[%315, %c0_85] : memref<14x512xf32, #tpu.memory_space<vmem>>, vector<2x512xf32>
    %317 = arith.truncf %298 : vector<2x128xf32> to vector<2x128xbf16>
    %cst_86 = arith.constant dense<0.000000e+00> : vector<2x512xf32>
    %318 = tpu.matmul %317, %19, %cst_86 {dimension_numbers = #tpu.dot_dimension_numbers<[1], [0], [0], [1], [0, 0, 1, 1], [], []>} : vector<2x128xbf16>, vector<128x512xbf16>, vector<2x512xf32> -> vector<2x512xf32>
    %319 = arith.addf %316, %318 : vector<2x512xf32>
    %320 = vector.extract_strided_slice %319 {offsets = [0, 0], sizes = [2, 128], strides = [1, 1]} : vector<2x512xf32> to vector<2x128xf32>
    %321 = arith.negf %320 : vector<2x128xf32>
    %322 = math.exp %321 : vector<2x128xf32>
    %cst_87 = arith.constant 1.000000e+00 : f32
    %323 = vector.broadcast %cst_87 : f32 to vector<2x128xf32>
    %324 = arith.addf %323, %322 : vector<2x128xf32>
    %325 = arith.divf %323, %324 : vector<2x128xf32>
    %326 = vector.extract_strided_slice %319 {offsets = [0, 128], sizes = [2, 128], strides = [1, 1]} : vector<2x512xf32> to vector<2x128xf32>
    %327 = arith.negf %326 : vector<2x128xf32>
    %328 = math.exp %327 : vector<2x128xf32>
    %cst_88 = arith.constant 1.000000e+00 : f32
    %329 = vector.broadcast %cst_88 : f32 to vector<2x128xf32>
    %330 = arith.addf %329, %328 : vector<2x128xf32>
    %331 = arith.divf %329, %330 : vector<2x128xf32>
    %332 = vector.extract_strided_slice %319 {offsets = [0, 256], sizes = [2, 128], strides = [1, 1]} : vector<2x512xf32> to vector<2x128xf32>
    %333 = math.tanh %332 : vector<2x128xf32>
    %334 = vector.extract_strided_slice %319 {offsets = [0, 384], sizes = [2, 128], strides = [1, 1]} : vector<2x512xf32> to vector<2x128xf32>
    %335 = arith.negf %334 : vector<2x128xf32>
    %336 = math.exp %335 : vector<2x128xf32>
    %cst_89 = arith.constant 1.000000e+00 : f32
    %337 = vector.broadcast %cst_89 : f32 to vector<2x128xf32>
    %338 = arith.addf %337, %336 : vector<2x128xf32>
    %339 = arith.divf %337, %338 : vector<2x128xf32>
    %340 = arith.mulf %331, %305 : vector<2x128xf32>
    %341 = arith.mulf %325, %333 : vector<2x128xf32>
    %342 = arith.addf %340, %341 : vector<2x128xf32>
    %343 = math.tanh %342 : vector<2x128xf32>
    %344 = arith.mulf %339, %343 : vector<2x128xf32>
    %cst_90 = arith.constant 1.000000e+00 : f32
    %345 = vector.broadcast %cst_90 : f32 to vector<2x1xf32>
    %346 = arith.subf %345, %313 : vector<2x1xf32>
    %347 = arith.minimumf %310, %346 : vector<2x1xf32>
    %348 = arith.addf %313, %347 : vector<2x1xf32>
    %cst_91 = arith.constant 5.000000e-01 : f32
    %349 = vector.broadcast %cst_91 : f32 to vector<2x1xf32>
    %350 = arith.cmpf oge, %348, %349 : vector<2x1xf32>
    %351 = arith.extui %350 : vector<2x1xi1> to vector<2x1xi32>
    %352 = arith.sitofp %351 : vector<2x1xi32> to vector<2x1xf32>
    %353 = vector.broadcast %20 : vector<1x128xf32> to vector<2x128xf32>
    %354 = arith.mulf %342, %353 : vector<2x128xf32>
    %cst_92 = arith.constant dense<0.000000e+00> : vector<2xf32>
    %355 = vector.multi_reduction <add>, %354, %cst_92 [1] : vector<2x128xf32> to vector<2xf32>
    %356 = vector.shape_cast %355 : vector<2xf32> to vector<2x1xf32>
    %357 = vector.broadcast %21 : vector<1x1xf32> to vector<2x1xf32>
    %358 = arith.addf %356, %357 : vector<2x1xf32>
    %359 = arith.negf %358 : vector<2x1xf32>
    %360 = math.exp %359 : vector<2x1xf32>
    %cst_93 = arith.constant 1.000000e+00 : f32
    %361 = vector.broadcast %cst_93 : f32 to vector<2x1xf32>
    %362 = arith.addf %361, %360 : vector<2x1xf32>
    %363 = arith.divf %361, %362 : vector<2x1xf32>
    %364 = vector.broadcast %352 : vector<2x1xf32> to vector<2x128xf32>
    %365 = arith.mulf %364, %344 : vector<2x128xf32>
    %cst_94 = arith.constant 1.000000e+00 : f32
    %366 = vector.broadcast %cst_94 : f32 to vector<2x1xf32>
    %367 = arith.subf %366, %352 : vector<2x1xf32>
    %368 = vector.broadcast %367 : vector<2x1xf32> to vector<2x128xf32>
    %369 = arith.mulf %368, %298 : vector<2x128xf32>
    %370 = arith.addf %365, %369 : vector<2x128xf32>
    %371 = vector.broadcast %352 : vector<2x1xf32> to vector<2x128xf32>
    %372 = arith.mulf %371, %342 : vector<2x128xf32>
    %cst_95 = arith.constant 1.000000e+00 : f32
    %373 = vector.broadcast %cst_95 : f32 to vector<2x1xf32>
    %374 = arith.subf %373, %352 : vector<2x1xf32>
    %375 = vector.broadcast %374 : vector<2x1xf32> to vector<2x128xf32>
    %376 = arith.mulf %375, %305 : vector<2x128xf32>
    %377 = arith.addf %372, %376 : vector<2x128xf32>
    %378 = arith.mulf %352, %363 : vector<2x1xf32>
    %cst_96 = arith.constant 1.000000e+00 : f32
    %379 = vector.broadcast %cst_96 : f32 to vector<2x1xf32>
    %380 = arith.subf %379, %352 : vector<2x1xf32>
    %381 = arith.mulf %380, %310 : vector<2x1xf32>
    %382 = arith.addf %378, %381 : vector<2x1xf32>
    %cst_97 = arith.constant 1.000000e+00 : f32
    %383 = vector.broadcast %cst_97 : f32 to vector<2x1xf32>
    %384 = arith.subf %383, %352 : vector<2x1xf32>
    %385 = arith.mulf %384, %348 : vector<2x1xf32>
    %c5_i32 = arith.constant 5 : i32
    %c2_i32_98 = arith.constant 2 : i32
    %386 = arith.muli %c5_i32, %c2_i32_98 : i32
    %387 = arith.index_cast %386 : i32 to index
    %c0_99 = arith.constant 0 : index
    %388 = vector.load %arg10[%387, %c0_99] : memref<14x512xf32, #tpu.memory_space<vmem>>, vector<2x512xf32>
    %389 = arith.truncf %370 : vector<2x128xf32> to vector<2x128xbf16>
    %cst_100 = arith.constant dense<0.000000e+00> : vector<2x512xf32>
    %390 = tpu.matmul %389, %19, %cst_100 {dimension_numbers = #tpu.dot_dimension_numbers<[1], [0], [0], [1], [0, 0, 1, 1], [], []>} : vector<2x128xbf16>, vector<128x512xbf16>, vector<2x512xf32> -> vector<2x512xf32>
    %391 = arith.addf %388, %390 : vector<2x512xf32>
    %392 = vector.extract_strided_slice %391 {offsets = [0, 0], sizes = [2, 128], strides = [1, 1]} : vector<2x512xf32> to vector<2x128xf32>
    %393 = arith.negf %392 : vector<2x128xf32>
    %394 = math.exp %393 : vector<2x128xf32>
    %cst_101 = arith.constant 1.000000e+00 : f32
    %395 = vector.broadcast %cst_101 : f32 to vector<2x128xf32>
    %396 = arith.addf %395, %394 : vector<2x128xf32>
    %397 = arith.divf %395, %396 : vector<2x128xf32>
    %398 = vector.extract_strided_slice %391 {offsets = [0, 128], sizes = [2, 128], strides = [1, 1]} : vector<2x512xf32> to vector<2x128xf32>
    %399 = arith.negf %398 : vector<2x128xf32>
    %400 = math.exp %399 : vector<2x128xf32>
    %cst_102 = arith.constant 1.000000e+00 : f32
    %401 = vector.broadcast %cst_102 : f32 to vector<2x128xf32>
    %402 = arith.addf %401, %400 : vector<2x128xf32>
    %403 = arith.divf %401, %402 : vector<2x128xf32>
    %404 = vector.extract_strided_slice %391 {offsets = [0, 256], sizes = [2, 128], strides = [1, 1]} : vector<2x512xf32> to vector<2x128xf32>
    %405 = math.tanh %404 : vector<2x128xf32>
    %406 = vector.extract_strided_slice %391 {offsets = [0, 384], sizes = [2, 128], strides = [1, 1]} : vector<2x512xf32> to vector<2x128xf32>
    %407 = arith.negf %406 : vector<2x128xf32>
    %408 = math.exp %407 : vector<2x128xf32>
    %cst_103 = arith.constant 1.000000e+00 : f32
    %409 = vector.broadcast %cst_103 : f32 to vector<2x128xf32>
    %410 = arith.addf %409, %408 : vector<2x128xf32>
    %411 = arith.divf %409, %410 : vector<2x128xf32>
    %412 = arith.mulf %403, %377 : vector<2x128xf32>
    %413 = arith.mulf %397, %405 : vector<2x128xf32>
    %414 = arith.addf %412, %413 : vector<2x128xf32>
    %415 = math.tanh %414 : vector<2x128xf32>
    %416 = arith.mulf %411, %415 : vector<2x128xf32>
    %cst_104 = arith.constant 1.000000e+00 : f32
    %417 = vector.broadcast %cst_104 : f32 to vector<2x1xf32>
    %418 = arith.subf %417, %385 : vector<2x1xf32>
    %419 = arith.minimumf %382, %418 : vector<2x1xf32>
    %420 = arith.addf %385, %419 : vector<2x1xf32>
    %cst_105 = arith.constant 5.000000e-01 : f32
    %421 = vector.broadcast %cst_105 : f32 to vector<2x1xf32>
    %422 = arith.cmpf oge, %420, %421 : vector<2x1xf32>
    %423 = arith.extui %422 : vector<2x1xi1> to vector<2x1xi32>
    %424 = arith.sitofp %423 : vector<2x1xi32> to vector<2x1xf32>
    %425 = vector.broadcast %20 : vector<1x128xf32> to vector<2x128xf32>
    %426 = arith.mulf %414, %425 : vector<2x128xf32>
    %cst_106 = arith.constant dense<0.000000e+00> : vector<2xf32>
    %427 = vector.multi_reduction <add>, %426, %cst_106 [1] : vector<2x128xf32> to vector<2xf32>
    %428 = vector.shape_cast %427 : vector<2xf32> to vector<2x1xf32>
    %429 = vector.broadcast %21 : vector<1x1xf32> to vector<2x1xf32>
    %430 = arith.addf %428, %429 : vector<2x1xf32>
    %431 = arith.negf %430 : vector<2x1xf32>
    %432 = math.exp %431 : vector<2x1xf32>
    %cst_107 = arith.constant 1.000000e+00 : f32
    %433 = vector.broadcast %cst_107 : f32 to vector<2x1xf32>
    %434 = arith.addf %433, %432 : vector<2x1xf32>
    %435 = arith.divf %433, %434 : vector<2x1xf32>
    %436 = vector.broadcast %424 : vector<2x1xf32> to vector<2x128xf32>
    %437 = arith.mulf %436, %416 : vector<2x128xf32>
    %cst_108 = arith.constant 1.000000e+00 : f32
    %438 = vector.broadcast %cst_108 : f32 to vector<2x1xf32>
    %439 = arith.subf %438, %424 : vector<2x1xf32>
    %440 = vector.broadcast %439 : vector<2x1xf32> to vector<2x128xf32>
    %441 = arith.mulf %440, %370 : vector<2x128xf32>
    %442 = arith.addf %437, %441 : vector<2x128xf32>
    %443 = vector.broadcast %424 : vector<2x1xf32> to vector<2x128xf32>
    %444 = arith.mulf %443, %414 : vector<2x128xf32>
    %cst_109 = arith.constant 1.000000e+00 : f32
    %445 = vector.broadcast %cst_109 : f32 to vector<2x1xf32>
    %446 = arith.subf %445, %424 : vector<2x1xf32>
    %447 = vector.broadcast %446 : vector<2x1xf32> to vector<2x128xf32>
    %448 = arith.mulf %447, %377 : vector<2x128xf32>
    %449 = arith.addf %444, %448 : vector<2x128xf32>
    %450 = arith.mulf %424, %435 : vector<2x1xf32>
    %cst_110 = arith.constant 1.000000e+00 : f32
    %451 = vector.broadcast %cst_110 : f32 to vector<2x1xf32>
    %452 = arith.subf %451, %424 : vector<2x1xf32>
    %453 = arith.mulf %452, %382 : vector<2x1xf32>
    %454 = arith.addf %450, %453 : vector<2x1xf32>
    %cst_111 = arith.constant 1.000000e+00 : f32
    %455 = vector.broadcast %cst_111 : f32 to vector<2x1xf32>
    %456 = arith.subf %455, %424 : vector<2x1xf32>
    %457 = arith.mulf %456, %420 : vector<2x1xf32>
    %c6_i32 = arith.constant 6 : i32
    %c2_i32_112 = arith.constant 2 : i32
    %458 = arith.muli %c6_i32, %c2_i32_112 : i32
    %459 = arith.index_cast %458 : i32 to index
    %c0_113 = arith.constant 0 : index
    %460 = vector.load %arg10[%459, %c0_113] : memref<14x512xf32, #tpu.memory_space<vmem>>, vector<2x512xf32>
    %461 = arith.truncf %442 : vector<2x128xf32> to vector<2x128xbf16>
    %cst_114 = arith.constant dense<0.000000e+00> : vector<2x512xf32>
    %462 = tpu.matmul %461, %19, %cst_114 {dimension_numbers = #tpu.dot_dimension_numbers<[1], [0], [0], [1], [0, 0, 1, 1], [], []>} : vector<2x128xbf16>, vector<128x512xbf16>, vector<2x512xf32> -> vector<2x512xf32>
    %463 = arith.addf %460, %462 : vector<2x512xf32>
    %464 = vector.extract_strided_slice %463 {offsets = [0, 0], sizes = [2, 128], strides = [1, 1]} : vector<2x512xf32> to vector<2x128xf32>
    %465 = arith.negf %464 : vector<2x128xf32>
    %466 = math.exp %465 : vector<2x128xf32>
    %cst_115 = arith.constant 1.000000e+00 : f32
    %467 = vector.broadcast %cst_115 : f32 to vector<2x128xf32>
    %468 = arith.addf %467, %466 : vector<2x128xf32>
    %469 = arith.divf %467, %468 : vector<2x128xf32>
    %470 = vector.extract_strided_slice %463 {offsets = [0, 128], sizes = [2, 128], strides = [1, 1]} : vector<2x512xf32> to vector<2x128xf32>
    %471 = arith.negf %470 : vector<2x128xf32>
    %472 = math.exp %471 : vector<2x128xf32>
    %cst_116 = arith.constant 1.000000e+00 : f32
    %473 = vector.broadcast %cst_116 : f32 to vector<2x128xf32>
    %474 = arith.addf %473, %472 : vector<2x128xf32>
    %475 = arith.divf %473, %474 : vector<2x128xf32>
    %476 = vector.extract_strided_slice %463 {offsets = [0, 256], sizes = [2, 128], strides = [1, 1]} : vector<2x512xf32> to vector<2x128xf32>
    %477 = math.tanh %476 : vector<2x128xf32>
    %478 = vector.extract_strided_slice %463 {offsets = [0, 384], sizes = [2, 128], strides = [1, 1]} : vector<2x512xf32> to vector<2x128xf32>
    %479 = arith.negf %478 : vector<2x128xf32>
    %480 = math.exp %479 : vector<2x128xf32>
    %cst_117 = arith.constant 1.000000e+00 : f32
    %481 = vector.broadcast %cst_117 : f32 to vector<2x128xf32>
    %482 = arith.addf %481, %480 : vector<2x128xf32>
    %483 = arith.divf %481, %482 : vector<2x128xf32>
    %484 = arith.mulf %475, %449 : vector<2x128xf32>
    %485 = arith.mulf %469, %477 : vector<2x128xf32>
    %486 = arith.addf %484, %485 : vector<2x128xf32>
    %487 = math.tanh %486 : vector<2x128xf32>
    %488 = arith.mulf %483, %487 : vector<2x128xf32>
    %cst_118 = arith.constant 1.000000e+00 : f32
    %489 = vector.broadcast %cst_118 : f32 to vector<2x1xf32>
    %490 = arith.subf %489, %457 : vector<2x1xf32>
    %491 = arith.minimumf %454, %490 : vector<2x1xf32>
    %492 = arith.addf %457, %491 : vector<2x1xf32>
    %cst_119 = arith.constant 5.000000e-01 : f32
    %493 = vector.broadcast %cst_119 : f32 to vector<2x1xf32>
    %494 = arith.cmpf oge, %492, %493 : vector<2x1xf32>
    %495 = arith.extui %494 : vector<2x1xi1> to vector<2x1xi32>
    %496 = arith.sitofp %495 : vector<2x1xi32> to vector<2x1xf32>
    %497 = vector.broadcast %20 : vector<1x128xf32> to vector<2x128xf32>
    %498 = arith.mulf %486, %497 : vector<2x128xf32>
    %cst_120 = arith.constant dense<0.000000e+00> : vector<2xf32>
    %499 = vector.multi_reduction <add>, %498, %cst_120 [1] : vector<2x128xf32> to vector<2xf32>
    %500 = vector.shape_cast %499 : vector<2xf32> to vector<2x1xf32>
    %501 = vector.broadcast %21 : vector<1x1xf32> to vector<2x1xf32>
    %502 = arith.addf %500, %501 : vector<2x1xf32>
    %503 = arith.negf %502 : vector<2x1xf32>
    %504 = math.exp %503 : vector<2x1xf32>
    %cst_121 = arith.constant 1.000000e+00 : f32
    %505 = vector.broadcast %cst_121 : f32 to vector<2x1xf32>
    %506 = arith.addf %505, %504 : vector<2x1xf32>
    %507 = arith.divf %505, %506 : vector<2x1xf32>
    %508 = vector.broadcast %496 : vector<2x1xf32> to vector<2x128xf32>
    %509 = arith.mulf %508, %488 : vector<2x128xf32>
    %cst_122 = arith.constant 1.000000e+00 : f32
    %510 = vector.broadcast %cst_122 : f32 to vector<2x1xf32>
    %511 = arith.subf %510, %496 : vector<2x1xf32>
    %512 = vector.broadcast %511 : vector<2x1xf32> to vector<2x128xf32>
    %513 = arith.mulf %512, %442 : vector<2x128xf32>
    %514 = arith.addf %509, %513 : vector<2x128xf32>
    %515 = vector.broadcast %496 : vector<2x1xf32> to vector<2x128xf32>
    %516 = arith.mulf %515, %486 : vector<2x128xf32>
    %cst_123 = arith.constant 1.000000e+00 : f32
    %517 = vector.broadcast %cst_123 : f32 to vector<2x1xf32>
    %518 = arith.subf %517, %496 : vector<2x1xf32>
    %519 = vector.broadcast %518 : vector<2x1xf32> to vector<2x128xf32>
    %520 = arith.mulf %519, %449 : vector<2x128xf32>
    %521 = arith.addf %516, %520 : vector<2x128xf32>
    %522 = arith.mulf %496, %507 : vector<2x1xf32>
    %cst_124 = arith.constant 1.000000e+00 : f32
    %523 = vector.broadcast %cst_124 : f32 to vector<2x1xf32>
    %524 = arith.subf %523, %496 : vector<2x1xf32>
    %525 = arith.mulf %524, %454 : vector<2x1xf32>
    %526 = arith.addf %522, %525 : vector<2x1xf32>
    %cst_125 = arith.constant 1.000000e+00 : f32
    %527 = vector.broadcast %cst_125 : f32 to vector<2x1xf32>
    %528 = arith.subf %527, %496 : vector<2x1xf32>
    %529 = arith.mulf %528, %492 : vector<2x1xf32>
    %c7_i32 = arith.constant 7 : i32
    %c0_126 = arith.constant 0 : index
    %c0_127 = arith.constant 0 : index
    %530 = vector.load %arg11[%c0_126, %c0_127] : memref<2x128xf32, #tpu.memory_space<vmem>>, vector<2x128xf32>
    tpu.vector_store %arg11[%c0_126, %c0_127], %514 {strides = array<i32>} : memref<2x128xf32, #tpu.memory_space<vmem>>, vector<2x128xf32>,
    %c0_128 = arith.constant 0 : index
    %c0_129 = arith.constant 0 : index
    %531 = vector.load %arg12[%c0_128, %c0_129] : memref<2x128xf32, #tpu.memory_space<vmem>>, vector<2x128xf32>
    tpu.vector_store %arg12[%c0_128, %c0_129], %521 {strides = array<i32>} : memref<2x128xf32, #tpu.memory_space<vmem>>, vector<2x128xf32>,
    %c0_130 = arith.constant 0 : index
    %c0_131 = arith.constant 0 : index
    %532 = vector.load %arg13[%c0_130, %c0_131] : memref<2x1xf32, #tpu.memory_space<vmem>>, vector<2x1xf32>
    tpu.vector_store %arg13[%c0_130, %c0_131], %526 {strides = array<i32>} : memref<2x1xf32, #tpu.memory_space<vmem>>, vector<2x1xf32>,
    %c0_132 = arith.constant 0 : index
    %c0_133 = arith.constant 0 : index
    %533 = vector.load %arg14[%c0_132, %c0_133] : memref<2x1xf32, #tpu.memory_space<vmem>>, vector<2x1xf32>
    tpu.vector_store %arg14[%c0_132, %c0_133], %529 {strides = array<i32>} : memref<2x1xf32, #tpu.memory_space<vmem>>, vector<2x1xf32>,
    %c0_134 = arith.constant 0 : index
    %c0_135 = arith.constant 0 : index
    %534 = vector.load %arg9[%c0_134, %c0_135] : memref<2x128xf32, #tpu.memory_space<vmem>>, vector<2x128xf32>
    tpu.vector_store %arg9[%c0_134, %c0_135], %514 {strides = array<i32>} : memref<2x128xf32, #tpu.memory_space<vmem>>, vector<2x128xf32>,
    return
  }
  func.func @transform_0(%arg0: i32) -> (i32, i32, i32) {
    %c0_i32 = arith.constant 0 : i32
    %c0_i32_0 = arith.constant 0 : i32
    %c0_i32_1 = arith.constant 0 : i32
    return %arg0, %c0_i32, %c0_i32_0 : i32, i32, i32
  }
  func.func @transform_1(%arg0: i32) -> (i32, i32) {
    %c0_i32 = arith.constant 0 : i32
    %c0_i32_0 = arith.constant 0 : i32
    %c0_i32_1 = arith.constant 0 : i32
    return %c0_i32, %c0_i32_0 : i32, i32
  }
  func.func @transform_2(%arg0: i32) -> (i32, i32) {
    %c0_i32 = arith.constant 0 : i32
    %c0_i32_0 = arith.constant 0 : i32
    %c0_i32_1 = arith.constant 0 : i32
    return %c0_i32, %c0_i32_0 : i32, i32
  }
  func.func @transform_3(%arg0: i32) -> (i32, i32) {
    %c0_i32 = arith.constant 0 : i32
    %c0_i32_0 = arith.constant 0 : i32
    %c0_i32_1 = arith.constant 0 : i32
    return %c0_i32, %c0_i32_0 : i32, i32
  }
  func.func @transform_4(%arg0: i32) -> (i32, i32) {
    %c0_i32 = arith.constant 0 : i32
    %c0_i32_0 = arith.constant 0 : i32
    %c0_i32_1 = arith.constant 0 : i32
    return %c0_i32, %c0_i32_0 : i32, i32
  }
  func.func @transform_5(%arg0: i32) -> (i32, i32) {
    %c0_i32 = arith.constant 0 : i32
    %c0_i32_0 = arith.constant 0 : i32
    %c0_i32_1 = arith.constant 0 : i32
    return %c0_i32, %c0_i32_0 : i32, i32
  }
  func.func @transform_6(%arg0: i32) -> (i32, i32) {
    %c0_i32 = arith.constant 0 : i32
    %c0_i32_0 = arith.constant 0 : i32
    %c0_i32_1 = arith.constant 0 : i32
    return %c0_i32, %c0_i32_0 : i32, i32
  }
  func.func @transform_7(%arg0: i32) -> (i32, i32) {
    %c0_i32 = arith.constant 0 : i32
    %c0_i32_0 = arith.constant 0 : i32
    %c0_i32_1 = arith.constant 0 : i32
    return %c0_i32, %c0_i32_0 : i32, i32
  }
  func.func @transform_8(%arg0: i32) -> (i32, i32) {
    %c0_i32 = arith.constant 0 : i32
    %c0_i32_0 = arith.constant 0 : i32
    %c0_i32_1 = arith.constant 0 : i32
    return %c0_i32, %c0_i32_0 : i32, i32
  }
}

</mosaic_0001>

<bundles_post_ra>
// kernel: _lambda_.2
= control target key start
LH: loop header
LB: loop body
LE: loop exit
PB: predicated region body
PF: predicated region fallthrough
CT: control target
= control target key end

     0   :  { %s451_s15 = smov 0   ;;  %s492_s0 = inlined_call_operand.vmem [shape: f32[32,4], index: 0, kind: input, shape index: {}]   ;;  %s493_s1 = inlined_call_operand.vmem [shape: bf16[3,4,128], index: 1, kind: input, shape index: {}]   ;;  %s494_s2 = inlined_call_operand.vmem [shape: f32[1,128], index: 2, kind: input, shape index: {}]   ;;  %s495_s3 = inlined_call_operand.vmem [shape: bf16[2,14,128], index: 3, kind: output, shape index: {0}]   ;;  %s496_s4 = inlined_call_operand.vmem [shape: f32[2,2,128], index: 4, kind: output, shape index: {1}]  }
   0x1 LB: > { %s457_s16 = sadd.s32 4294967295, %s424_s15   ;;  %p393_p0 = scmp.ge.s32.totalorder %s424_s15, 1  ;;  %s424_s15 = sphi %s451_s15, %s15_s15  }
   0x2   : > { %p155_p1 = scmp.lt.s32.totalorder %s424_s15, 3 }
   0x4   : > { %p156_p2 = pnand %p393_p0, %p155_p1 }
   0x5   : > { %s190_s21 = smul.u32 (!%p156_p2), 14, %s457_s16  ;;  %p180_p3 = scmp.lt.s32.totalorder (!%p156_p2), %s457_s16, 1 }
   0x6   : > { %159 = sbr.rel (%p156_p2) target bundleno = 183 (0xb7), region = 32 }
   0x7   : > { %s191_s26 = scalar_lea.vmem (!%p156_p2), %s492_s0, %s190_s21 }
   0xb   : > { %v399_v0 = vld [vmem:[%s493_s1 + $0x2] sm:$0x3]  ;;  %vm207_vm0 = vcmask 1041408   ;;  %v195_v1 = vld [vmem:[%s493_s1] sm:$0x3]  ;;  %vm203_vm1 = vcmask 31744  }
   0xc   : > { %v209_v2 = vsel %vm207_vm0, %v399_v0, 0  ;;  %v229_v3 = vsel %vm207_vm0, %v195_v1, 0  ;;  %v404_v4 = vld [vmem:[%s493_s1 + $0x4] sm:$0x3]  ;;  %v398_v7 = vld [vmem:[%s191_s26 + $0xa] sm:$0x3f] }
   0xd   : > { %218 = vmatpush.bf16.msra.mxu0 %v209_v2  ;;  %238 = vmatpush.bf16.msra.mxu1 %v229_v3  ;;  %v256_v5 = vsel %vm207_vm0, %v404_v4, 0  ;;  %v397_v6 = vld [vmem:[%s191_s26 + $0x2] sm:$0xff]  ;;  %v403_v12 = vld [vmem:[%s191_s26 + $0xc] sm:$0x3f]  ;;  %s498_s16 = smov (!%p180_p3, %s457_s16), 1  ;;  %vm282_vm2 = vcmask 1045504  }
   0xe   : > { %265 = vmatpush.bf16.msra.mxu2 %v256_v5  ;;  %v192_v8 = vld [vmem:[%s191_s26] sm:$0xff]  ;;  %v200_v9 = vpack.c.bf16 %v398_v7, %v397_v6  ;;  %v193_v10 = vld [vmem:[%s191_s26 + $0x8] sm:$0x3f]  ;;  %s408_s29 = sshll.u32 %s498_s16, 3  ;;  %s396_s7 = sshll.u32 %s498_s16, 1  ;;  %vm301_vm3 = vcmask 1040384  }
   0xf   : > { %v402_v11 = vld [vmem:[%s191_s26 + $0x4] sm:$0xff]  ;;  %v194_v13 = vpack.c.bf16 %v193_v10, %v192_v8  ;;  %v417_v18 = vld [vmem:[%s494_s2] ss:$0 sm:$0xff]  ;;  %s184_s6 = scalar_lea.vmem %s495_s3, %s408_s29  ;;  %s188_s10 = scalar_lea.vmem %s496_s4, %s396_s7 }
  0x10   : > { %v249_v14 = vpack.c.bf16 %v403_v12, %v402_v11  ;;  %400 = vmatmul.msk.bf16.vlgmr.msra.gmra.mxu0 %vm203_vm1, %v200_v9 }
  0x11   : > { %401 = vmatmul.msk.bf16.vlgmr.msra.gmra.mxu1 %vm203_vm1, %v194_v13 }
  0x12   : > { %405 = vmatmul.msk.bf16.vlgmr.msra.gmra.mxu2 %vm203_vm1, %v249_v14 }
  0x8d   : > { %v220_v15 = vpop.f32.mrf.mxu0 }
  0x8e   : > { %v240_v16 = vpop.f32.mrf.mxu1 }
  0x8f   : > { %v241_v17 = vadd.f32 %v240_v16, %v220_v15 }
  0x95   : > { %v267_v19 = vpop.f32.mrf.mxu2  ;;  %v222_v22 = vpop.f32.mrf.mxu0 }
  0x96   : > { %v272_v20 = vadd.f32 %v267_v19, %v241_v17  ;;  %v242_v23 = vpop.f32.mrf.mxu1 }
  0x97   : > { %v243_v26 = vadd.f32 %v242_v23, %v222_v22 }
  0x98   : > { %v278_v21 = vadd.f32 %v417_v18, %v272_v20 }
  0x9a   : > { %v280_v24 = vmax.f32 %v278_v21, 0.0 }
  0x9c   : > { %v304_v25 = vpack.c.bf16 %v280_v24, %v280_v24  ;;  %v291_v34 = vmul.f32 %v280_v24, %v280_v24 }
  0x9d   : > { %v269_v27 = vpop.f32.mrf.mxu2 }
  0x9e   : > { %306 = vst [vmem:[%s184_s6] sm:$0xf] %v304_v25  ;;  %v273_v28 = vadd.f32 %v269_v27, %v243_v26 }
  0xa0   : > { %v279_v29 = vadd.f32 %v417_v18, %v273_v28 }
  0xa2   : > { %v281_v30 = vmax.f32 %v279_v29, 0.0 }
  0xa4   : > { %v283_v31 = vsel %vm282_vm2, %v281_v30, 0.0  ;;  %v292_v32 = vmul.f32 %v281_v30, %v281_v30  ;;  %v305_v33 = vpack.c.bf16 %v281_v30, %v281_v30 }
  0xa5   : > { %v284_v35 = vadd.f32 %v283_v31, %v280_v24 }
  0xa6   : > { %v293_v36 = vsel %vm282_vm2, %v292_v32, 0.0  ;;  %307 = vst [vmem:[%s184_s6 + $0x4] sm:$0x7] %v305_v33 }
  0xa7   : > { %v285_v37 = vrot.slane %v284_v35, 4  ;;  %v294_v38 = vadd.f32 %v293_v36, %v291_v34 }
  0xa9   : > { %v286_v39 = vadd.f32 %v285_v37, %v284_v35  ;;  %v295_v40 = vrot.slane %v294_v38, 4 }
  0xab   : > { %v287_v41 = vrot.slane %v286_v39, 2  ;;  %v296_v42 = vadd.f32 %v295_v40, %v294_v38 }
  0xad   : > { %v288_v43 = vadd.f32 %v287_v41, %v286_v39  ;;  %v297_v44 = vrot.slane %v296_v42, 2 }
  0xaf   : > { %v289_v45 = vrot.slane %v288_v43, 1  ;;  %v298_v46 = vadd.f32 %v297_v44, %v296_v42 }
  0xb1   : > { %v299_v47 = vrot.slane %v298_v46, 1  ;;  %v290_v48 = vadd.f32 %v289_v45, %v288_v43 }
  0xb3   : > { %v300_v49 = vadd.f32 %v299_v47, %v298_v46 }
  0xb5   : > { %v302_v50 = vsel %vm301_vm3, %v290_v48, %v300_v49 }
  0xb6   : > { %303 = vst [vmem:[%s188_s10] sm:$0x3] %v302_v50 }
  0xb7 PF: > { %s15_s15 = sadd.s32 1, %s424_s15  }
  0xb8   : > { %p12_p4 = scmp.ge.s32.totalorder %s15_s15, 4  }
  0xba   :  { %14 = sbr.rel (!%p12_p4) target bundleno = 1 (0x1), region = 76 }

// kernel: _lambda_.3
= control target key start
LH: loop header
LB: loop body
LE: loop exit
PB: predicated region body
PF: predicated region fallthrough
CT: control target
= control target key end

     0   :  { %s3763_s0 = inlined_call_operand.vmem [shape: bf16[2,14,128], index: 0, kind: input, shape index: {}]   ;;  %s3764_s1 = inlined_call_operand.vmem [shape: f32[1,128], index: 1, kind: input, shape index: {}]   ;;  %s3765_s2 = inlined_call_operand.vmem [shape: f32[1,128], index: 2, kind: input, shape index: {}]   ;;  %s3766_s3 = inlined_call_operand.vmem [shape: bf16[128,512], index: 3, kind: input, shape index: {}]   ;;  %s3767_s4 = inlined_call_operand.vmem [shape: bf16[128,512], index: 4, kind: input, shape index: {}]   ;;  %s3768_s5 = inlined_call_operand.vmem [shape: f32[1,512], index: 5, kind: input, shape index: {}]   ;;  %s3769_s6 = inlined_call_operand.vmem [shape: f32[1,128], index: 6, kind: input, shape index: {}]   ;;  %s3770_s7 = inlined_call_operand.<no memory space> [shape: f32[1,1], index: 7, kind: input, shape index: {}]   ;;  %s3771_s8 = inlined_call_operand.hbm [shape: f32[2,128], index: 8, kind: output, shape index: {}]  }
   0x1   :  { %v13_v0 = vstv %s3770_s7 }
   0x2   :  { %14 = vst [vmem:[#allocation7] sm:$0x1] %v13_v0 }
   0x3   :  { %15 = vsyncpa [#allocation9], 0  ;;  %s2821_s29 = smov 0  }
   0x4 LB: > { %s2827_s30 = sadd.s32 4294967295, %s2766_s29   ;;  %p2196_p0 = scmp.ge.s32.totalorder %s2766_s29, 1  ;;  %s2766_s29 = sphi %s2821_s29, %s21_s29  }
   0x5   : > { %p260_p1 = scmp.lt.s32.totalorder %s2766_s29, 3 }
   0x7   : > { %p261_p2 = pnand %p2196_p0, %p260_p1 }
   0x9   : > { %264 = sbr.rel (%p261_p2) target bundleno = 1751 (0x6d7), region = 52 }
   0xe   : > { %p289_p3 = scmp.lt.s32.totalorder %s2827_s30, 1  ;;  %p2199_p4 = scmp.ne.s32.totalorder %s2827_s30, 0 }
  0x10   : > { %s290_s7 = scalar_select %p289_p3, %s2827_s30, 1 }
  0x11   : > { %297 = sbr.rel (%p2199_p4) target bundleno = 27 (0x1b), region = 56 }
  0x12   : > { %s2495_s9 = sshll.u32 %s290_s7, 3 }
  0x13   : > { %s2836_s12 = scalar_lea.vmem %s3763_s0, %s2495_s9 }
  0x16   : > { %vm300_vm0 = vcmask 1024   ;;  %v2768_v1 = vmov 0.0   ;;  %v2769_v2 = vmov 1.0  }
  0x17   : > { %298 = vst [vmem:[#allocation3] sm:$0x3] %v2768_v1 }
  0x18   : > { %299 = vst [vmem:[#allocation4] sm:$0x3] %v2768_v1 }
  0x19   : > { %301 = vst.msk [vmem:[#allocation5] sm:$0x3] %vm300_vm0, %v2769_v2 }
  0x1a   : > { %302 = vst.msk [vmem:[#allocation6] sm:$0x3] %vm300_vm0, %v2768_v1 }
  0x1b PF: > { %v2314_v3 = vld [vmem:[%s3766_s3 + $0xe0] sm:$0xf]  ;;  %v2526_v4 = vld [vmem:[%s3766_s3 + $0xec] sm:$0xf0]  ;;  %v2524_v5 = vld [vmem:[%s3766_s3 + $0xe4] sm:$0xf] }
  0x1c   : > { %v2315_v6 = vor.u32 %v2526_v4, %v2314_v3  ;;  %v2316_v7 = vld [vmem:[%s3766_s3 + $0xf0] sm:$0xf0]  ;;  %v2298_v8 = vld [vmem:[%s3766_s3 + $0xc0] sm:$0xf]  ;;  %v2522_v9 = vld [vmem:[%s3766_s3 + $0xcc] sm:$0xf0] }
  0x1d   : > { %v2319_v10 = vor.u32 %v2524_v5, %v2316_v7  ;;  %v2520_v11 = vld [vmem:[%s3766_s3 + $0xc4] sm:$0xf]  ;;  %v2300_v12 = vld [vmem:[%s3766_s3 + $0xd0] sm:$0xf0]  ;;  %v2525_v13 = vld [vmem:[%s3766_s3 + $0xec] sm:$0xf]  ;;  %v2299_v14 = vor.u32 %v2522_v9, %v2298_v8 }
  0x1e   : > { %522 = vmatpush.bf16.msra.mxu0 %v2315_v6  ;;  %v2324_v15 = vld [vmem:[%s3766_s3 + $0xf8] sm:$0xf0]  ;;  %v2322_v16 = vld [vmem:[%s3766_s3 + $0xe8] sm:$0xf]  ;;  %v2527_v17 = vld [vmem:[%s3766_s3 + $0xf4] sm:$0xf0]  ;;  %v2303_v18 = vor.u32 %v2520_v11, %v2300_v12 }
  0x1f   : > { %536 = vmatpush.bf16.msra.mxu1 %v2319_v10  ;;  %v2327_v19 = vor.u32 %v2525_v13, %v2324_v15  ;;  %v2323_v20 = vor.u32 %v2527_v17, %v2322_v16  ;;  %v2282_v21 = vld [vmem:[%s3766_s3 + $0xa0] sm:$0xf]  ;;  %v2518_v22 = vld [vmem:[%s3766_s3 + $0xac] sm:$0xf0]  ;;  %v2516_v23 = vld [vmem:[%s3766_s3 + $0xa4] sm:$0xf] }
  0x20   : > { %v2284_v24 = vld [vmem:[%s3766_s3 + $0xb0] sm:$0xf0]  ;;  %v2521_v25 = vld [vmem:[%s3766_s3 + $0xcc] sm:$0xf]  ;;  %v2308_v26 = vld [vmem:[%s3766_s3 + $0xd8] sm:$0xf0]  ;;  %v2283_v30 = vor.u32 %v2518_v22, %v2282_v21 }
  0x21   : > { %564 = vmatpush.bf16.msra.mxu3 %v2327_v19  ;;  %550 = vmatpush.bf16.msra.mxu2 %v2323_v20  ;;  %v2311_v27 = vor.u32 %v2521_v25, %v2308_v26  ;;  %v2306_v28 = vld [vmem:[%s3766_s3 + $0xc8] sm:$0xf]  ;;  %v2523_v29 = vld [vmem:[%s3766_s3 + $0xd4] sm:$0xf0]  ;;  %v2266_v32 = vld [vmem:[%s3766_s3 + $0x80] sm:$0xf]  ;;  %v2287_v34 = vor.u32 %v2516_v23, %v2284_v24 }
  0x22   : > { %523 = vmatpush.bf16.msra.mxu0 %v2299_v14  ;;  %v2307_v31 = vor.u32 %v2523_v29, %v2306_v28  ;;  %v2514_v33 = vld [vmem:[%s3766_s3 + $0x8c] sm:$0xf0]  ;;  %v2517_v35 = vld [vmem:[%s3766_s3 + $0xac] sm:$0xf]  ;;  %v2292_v36 = vld [vmem:[%s3766_s3 + $0xb8] sm:$0xf0] }
  0x23   : > { %537 = vmatpush.bf16.msra.mxu1 %v2303_v18  ;;  %v2290_v37 = vld [vmem:[%s3766_s3 + $0xa8] sm:$0xf]  ;;  %v2512_v38 = vld [vmem:[%s3766_s3 + $0x84] sm:$0xf]  ;;  %v2268_v39 = vld [vmem:[%s3766_s3 + $0x90] sm:$0xf0]  ;;  %v2295_v41 = vor.u32 %v2517_v35, %v2292_v36  ;;  %v2267_v44 = vor.u32 %v2514_v33, %v2266_v32 }
  0x24   : > { %v2519_v40 = vld [vmem:[%s3766_s3 + $0xb4] sm:$0xf0]  ;;  %v2513_v43 = vld [vmem:[%s3766_s3 + $0x8c] sm:$0xf]  ;;  %v2276_v45 = vld [vmem:[%s3766_s3 + $0x98] sm:$0xf0]  ;;  %v2271_v48 = vor.u32 %v2512_v38, %v2268_v39 }
  0x25   : > { %565 = vmatpush.bf16.msra.mxu3 %v2311_v27  ;;  %551 = vmatpush.bf16.msra.mxu2 %v2307_v31  ;;  %v2291_v42 = vor.u32 %v2519_v40, %v2290_v37  ;;  %v2274_v46 = vld [vmem:[%s3766_s3 + $0x88] sm:$0xf]  ;;  %v2515_v47 = vld [vmem:[%s3766_s3 + $0x94] sm:$0xf0]  ;;  %v2250_v49 = vld [vmem:[%s3766_s3 + $0x60] sm:$0xf]  ;;  %v2279_v53 = vor.u32 %v2513_v43, %v2276_v45 }
  0x26   : > { %524 = vmatpush.bf16.msra.mxu0 %v2283_v30  ;;  %v2510_v50 = vld [vmem:[%s3766_s3 + $0x6c] sm:$0xf0]  ;;  %v2508_v51 = vld [vmem:[%s3766_s3 + $0x64] sm:$0xf]  ;;  %v2252_v52 = vld [vmem:[%s3766_s3 + $0x70] sm:$0xf0]  ;;  %v2275_v54 = vor.u32 %v2515_v47, %v2274_v46 }
  0x27   : > { %538 = vmatpush.bf16.msra.mxu1 %v2287_v34  ;;  %v2509_v55 = vld [vmem:[%s3766_s3 + $0x6c] sm:$0xf]  ;;  %v2251_v56 = vor.u32 %v2510_v50, %v2250_v49  ;;  %v2260_v57 = vld [vmem:[%s3766_s3 + $0x78] sm:$0xf0]  ;;  %v2258_v58 = vld [vmem:[%s3766_s3 + $0x68] sm:$0xf]  ;;  %v2255_v60 = vor.u32 %v2508_v51, %v2252_v52 }
  0x28   : > { %v2511_v59 = vld [vmem:[%s3766_s3 + $0x74] sm:$0xf0]  ;;  %v2234_v61 = vld [vmem:[%s3766_s3 + $0x40] sm:$0xf]  ;;  %v2506_v62 = vld [vmem:[%s3766_s3 + $0x4c] sm:$0xf0]  ;;  %v2263_v1 = vor.u32 %v2509_v55, %v2260_v57 }
  0x29   : > { %566 = vmatpush.bf16.msra.mxu3 %v2295_v41  ;;  %552 = vmatpush.bf16.msra.mxu2 %v2291_v42  ;;  %v2504_v63 = vld [vmem:[%s3766_s3 + $0x44] sm:$0xf]  ;;  %v2236_v0 = vld [vmem:[%s3766_s3 + $0x50] sm:$0xf0]  ;;  %v2259_v2 = vor.u32 %v2511_v59, %v2258_v58  ;;  %v2505_v3 = vld [vmem:[%s3766_s3 + $0x4c] sm:$0xf]  ;;  %v2235_v4 = vor.u32 %v2506_v62, %v2234_v61 }
  0x2a   : > { %525 = vmatpush.bf16.msra.mxu0 %v2267_v44  ;;  %v2244_v5 = vld [vmem:[%s3766_s3 + $0x58] sm:$0xf0]  ;;  %v2242_v6 = vld [vmem:[%s3766_s3 + $0x48] sm:$0xf]  ;;  %v2507_v7 = vld [vmem:[%s3766_s3 + $0x54] sm:$0xf0]  ;;  %v2239_v8 = vor.u32 %v2504_v63, %v2236_v0 }
  0x2b   : > { %539 = vmatpush.bf16.msra.mxu1 %v2271_v48  ;;  %v2218_v9 = vld [vmem:[%s3766_s3 + $0x20] sm:$0xf]  ;;  %v2502_v10 = vld [vmem:[%s3766_s3 + $0x2c] sm:$0xf0]  ;;  %v2500_v11 = vld [vmem:[%s3766_s3 + $0x24] sm:$0xf]  ;;  %v2247_v13 = vor.u32 %v2505_v3, %v2244_v5  ;;  %v2243_v14 = vor.u32 %v2507_v7, %v2242_v6 }
  0x2c   : > { %v2220_v12 = vld [vmem:[%s3766_s3 + $0x30] sm:$0xf0]  ;;  %v2202_v15 = vld [vmem:[%s3766_s3] sm:$0xf]  ;;  %v2498_v16 = vld [vmem:[%s3766_s3 + $0xc] sm:$0xf0]  ;;  %v2219_v19 = vor.u32 %v2502_v10, %v2218_v9 }
  0x2d   : > { %567 = vmatpush.bf16.msra.mxu3 %v2279_v53  ;;  %553 = vmatpush.bf16.msra.mxu2 %v2275_v54  ;;  %v2501_v17 = vld [vmem:[%s3766_s3 + $0x2c] sm:$0xf]  ;;  %v2228_v18 = vld [vmem:[%s3766_s3 + $0x38] sm:$0xf0]  ;;  %v2496_v20 = vld [vmem:[%s3766_s3 + $0x4] sm:$0xf]  ;;  %v2223_v26 = vor.u32 %v2500_v11, %v2220_v12  ;;  %v2203_v38 = vor.u32 %v2498_v16, %v2202_v15 }
  0x2e   : > { %526 = vmatpush.bf16.msra.mxu0 %v2251_v56  ;;  %v2204_v21 = vld [vmem:[%s3766_s3 + $0x10] sm:$0xf0]  ;;  %v2442_v22 = vld [vmem:[%s3767_s4 + $0xe0] sm:$0xf]  ;;  %v2558_v23 = vld [vmem:[%s3767_s4 + $0xec] sm:$0xf0]  ;;  %v2231_v33 = vor.u32 %v2501_v17, %v2228_v18 }
  0x2f   : > { %540 = vmatpush.bf16.msra.mxu1 %v2255_v60  ;;  %v2226_v24 = vld [vmem:[%s3766_s3 + $0x28] sm:$0xf]  ;;  %v2503_v25 = vld [vmem:[%s3766_s3 + $0x34] sm:$0xf0]  ;;  %v2556_v27 = vld [vmem:[%s3767_s4 + $0xe4] sm:$0xf]  ;;  %v2207_v43 = vor.u32 %v2496_v20, %v2204_v21  ;;  %v3051_v44 = vor.u32 %v2558_v23, %v2442_v22 }
  0x30   : > { %v2444_v28 = vld [vmem:[%s3767_s4 + $0xf0] sm:$0xf0]  ;;  %v303_v29 = vld [vmem:[%s2836_s12] sm:$0xf]  ;;  %v304_v30 = vld [vmem:[%s2836_s12 + $0x4] sm:$0x7]  ;;  %v2227_v34 = vor.u32 %v2503_v25, %v2226_v24 }
  0x31   : > { %568 = vmatpush.bf16.msra.mxu3 %v2263_v1  ;;  %554 = vmatpush.bf16.msra.mxu2 %v2259_v2  ;;  %v305_v31 = vunpack.c.l.bf16 %v303_v29  ;;  %v2582_v32 = vld [vmem:[%s3764_s1] ss:$0 sm:$0xff]  ;;  %v2497_v35 = vld [vmem:[%s3766_s3 + $0xc] sm:$0xf]  ;;  %v306_v36 = vunpack.c.l.bf16 %v304_v30  ;;  %v2212_v39 = vld [vmem:[%s3766_s3 + $0x18] sm:$0xf0]  ;;  %v3059_v48 = vor.u32 %v2556_v27, %v2444_v28 }
  0x32   : > { %527 = vmatpush.bf16.msra.mxu0 %v2235_v4  ;;  %v2583_v37 = vld [vmem:[%s3765_s2] ss:$0 sm:$0xff]  ;;  %v2210_v40 = vld [vmem:[%s3766_s3 + $0x8] sm:$0xf]  ;;  %v2499_v41 = vld [vmem:[%s3766_s3 + $0x14] sm:$0xf0]  ;;  %v2215_v53 = vor.u32 %v2497_v35, %v2212_v39 }
  0x33   : > { %541 = vmatpush.bf16.msra.mxu1 %v2239_v8  ;;  %v311_v42 = vmul.f32 %v2582_v32, %v305_v31  ;;  %v2557_v45 = vld [vmem:[%s3767_s4 + $0xec] sm:$0xf]  ;;  %v2452_v46 = vld [vmem:[%s3767_s4 + $0xf8] sm:$0xf0]  ;;  %v312_v47 = vmul.f32 %v2582_v32, %v306_v36  ;;  %v2426_v49 = vld [vmem:[%s3767_s4 + $0xc0] sm:$0xf]  ;;  %v2211_v55 = vor.u32 %v2499_v41, %v2210_v40 }
  0x34   : > { %v2554_v50 = vld [vmem:[%s3767_s4 + $0xcc] sm:$0xf0]  ;;  %v2552_v51 = vld [vmem:[%s3767_s4 + $0xc4] sm:$0xf]  ;;  %v2428_v54 = vld [vmem:[%s3767_s4 + $0xd0] sm:$0xf0]  ;;  %v3079_v59 = vor.u32 %v2557_v45, %v2452_v46 }
  0x35   : > { %569 = vmatpush.bf16.msra.mxu3 %v2247_v13  ;;  %555 = vmatpush.bf16.msra.mxu2 %v2243_v14  ;;  %v317_v52 = vadd.f32 %v2583_v37, %v311_v42  ;;  %v318_v56 = vadd.f32 %v2583_v37, %v312_v47  ;;  %v2450_v57 = vld [vmem:[%s3767_s4 + $0xe8] sm:$0xf]  ;;  %v2559_v58 = vld [vmem:[%s3767_s4 + $0xf4] sm:$0xf0]  ;;  %v3082_v60 = vor.u32 %v2554_v50, %v2426_v49  ;;  %v2553_v62 = vld [vmem:[%s3767_s4 + $0xcc] sm:$0xf] }
  0x36   : > { %528 = vmatpush.bf16.msra.mxu0 %v2219_v19  ;;  %v2436_v63 = vld [vmem:[%s3767_s4 + $0xd8] sm:$0xf0]  ;;  %v3091_v0 = vor.u32 %v2552_v51, %v2428_v54  ;;  %v3093_v1 = vor.u32 %v2559_v58, %v2450_v57  ;;  %v2410_v2 = vld [vmem:[%s3767_s4 + $0xa0] sm:$0xf]  ;;  %v2550_v3 = vld [vmem:[%s3767_s4 + $0xac] sm:$0xf0] }
  0x37   : > { %542 = vmatpush.bf16.msra.mxu1 %v2223_v26  ;;  %v319_v61 = vpack.c.bf16 %v318_v56, %v317_v52  ;;  %v2548_v4 = vld [vmem:[%s3767_s4 + $0xa4] sm:$0xf]  ;;  %v2412_v5 = vld [vmem:[%s3767_s4 + $0xb0] sm:$0xf0]  ;;  %v2434_v6 = vld [vmem:[%s3767_s4 + $0xc8] sm:$0xf]  ;;  %v3114_v8 = vor.u32 %v2553_v62, %v2436_v63  ;;  %v3117_v9 = vor.u32 %v2550_v3, %v2410_v2 }
  0x38   : > { %v2555_v7 = vld [vmem:[%s3767_s4 + $0xd4] sm:$0xf0]  ;;  %v2549_v10 = vld [vmem:[%s3767_s4 + $0xac] sm:$0xf]  ;;  %v2420_v11 = vld [vmem:[%s3767_s4 + $0xb8] sm:$0xf0]  ;;  %v3127_v12 = vor.u32 %v2548_v4, %v2412_v5 }
  0x39   : > { %570 = vmatpush.bf16.msra.mxu3 %v2231_v33  ;;  %556 = vmatpush.bf16.msra.mxu2 %v2227_v34  ;;  %v3129_v13 = vor.u32 %v2555_v7, %v2434_v6  ;;  %v2394_v14 = vld [vmem:[%s3767_s4 + $0x80] sm:$0xf]  ;;  %v2546_v15 = vld [vmem:[%s3767_s4 + $0x8c] sm:$0xf0]  ;;  %v2544_v16 = vld [vmem:[%s3767_s4 + $0x84] sm:$0xf]  ;;  %v3150_v20 = vor.u32 %v2549_v10, %v2420_v11 }
  0x3a   : > { %529 = vmatpush.bf16.msra.mxu0 %v2203_v38  ;;  %v2396_v17 = vld [vmem:[%s3767_s4 + $0x90] sm:$0xf0]  ;;  %v2418_v18 = vld [vmem:[%s3767_s4 + $0xa8] sm:$0xf]  ;;  %v2551_v19 = vld [vmem:[%s3767_s4 + $0xb4] sm:$0xf0]  ;;  %v3153_v21 = vor.u32 %v2546_v15, %v2394_v14 }
  0x3b   : > { %543 = vmatpush.bf16.msra.mxu1 %v2207_v43  ;;  %v2545_v22 = vld [vmem:[%s3767_s4 + $0x8c] sm:$0xf]  ;;  %v2404_v23 = vld [vmem:[%s3767_s4 + $0x98] sm:$0xf0]  ;;  %v3163_v24 = vor.u32 %v2544_v16, %v2396_v17  ;;  %v3165_v25 = vor.u32 %v2551_v19, %v2418_v18  ;;  %v2378_v26 = vld [vmem:[%s3767_s4 + $0x60] sm:$0xf] }
  0x3c   : > { %v2542_v27 = vld [vmem:[%s3767_s4 + $0x6c] sm:$0xf0]  ;;  %v2540_v28 = vld [vmem:[%s3767_s4 + $0x64] sm:$0xf]  ;;  %v2380_v29 = vld [vmem:[%s3767_s4 + $0x70] sm:$0xf0]  ;;  %v3186_v32 = vor.u32 %v2545_v22, %v2404_v23 }
  0x3d   : > { %571 = vmatpush.bf16.msra.mxu3 %v2215_v53  ;;  %557 = vmatpush.bf16.msra.mxu2 %v2211_v55  ;;  %v2402_v30 = vld [vmem:[%s3767_s4 + $0x88] sm:$0xf]  ;;  %v2547_v31 = vld [vmem:[%s3767_s4 + $0x94] sm:$0xf0]  ;;  %v2362_v33 = vld [vmem:[%s3767_s4 + $0x40] sm:$0xf]  ;;  %v3195_v35 = vor.u32 %v2542_v27, %v2378_v26  ;;  %v3214_v41 = vor.u32 %v2540_v28, %v2380_v29 }
  0x3e   : > { %789 = vmatpush.bf16.msrb.mxu0 %v3051_v44  ;;  %544 = vmatmul.bf16.vlgmr.msra.gmra.mxu1 %v319_v61  ;;  %v2538_v34 = vld [vmem:[%s3767_s4 + $0x4c] sm:$0xf0]  ;;  %v2536_v36 = vld [vmem:[%s3767_s4 + $0x44] sm:$0xf]  ;;  %v2364_v37 = vld [vmem:[%s3767_s4 + $0x50] sm:$0xf0]  ;;  %v3216_v42 = vor.u32 %v2547_v31, %v2402_v30 }
  0x3f   : > { %802 = vmatpush.bf16.msrb.mxu1 %v3059_v48  ;;  %530 = vmatmul.bf16.vlgmr.msra.gmra.mxu0 %v319_v61  ;;  %v2541_v38 = vld [vmem:[%s3767_s4 + $0x6c] sm:$0xf]  ;;  %v2388_v39 = vld [vmem:[%s3767_s4 + $0x78] sm:$0xf0]  ;;  %v2386_v40 = vld [vmem:[%s3767_s4 + $0x68] sm:$0xf]  ;;  %v3227_v51 = vor.u32 %v2538_v34, %v2362_v33  ;;  %v3241_v56 = vor.u32 %v2536_v36, %v2364_v37 }
  0x40   : > { %572 = vmatmul.bf16.vlgmr.msra.gmra.mxu3 %v319_v61  ;;  %558 = vmatmul.bf16.vlgmr.msra.gmra.mxu2 %v319_v61  ;;  %v3218_v43 = vld [vmem:[#allocation5] sm:$0x3]  ;;  %v623_v45 = vld [vmem:[#allocation6] sm:$0x3]  ;;  %v2543_v46 = vld [vmem:[%s3767_s4 + $0x74] sm:$0xf0]  ;;  %v3224_v50 = vor.u32 %v2541_v38, %v2388_v39 }
  0x41   : > { %828 = vmatpush.bf16.msrb.mxu3 %v3079_v59  ;;  %815 = vmatpush.bf16.msrb.mxu2 %v3093_v1  ;;  %v2770_v47 = vmov 0   ;;  %v908_v49 = vsub.f32 1.0, %v623_v45  ;;  %v2346_v52 = vld [vmem:[%s3767_s4 + $0x20] sm:$0xf]  ;;  %v2537_v53 = vld [vmem:[%s3767_s4 + $0x4c] sm:$0xf]  ;;  %v3243_v57 = vor.u32 %v2543_v46, %v2386_v40 }
  0x42   : > { %790 = vmatpush.bf16.msrb.mxu0 %v3082_v60  ;;  %2579 = vset.pattern.permute.xlu0 %v2770_v47  ;;  %v2372_v54 = vld [vmem:[%s3767_s4 + $0x58] sm:$0xf0]  ;;  %v2534_v58 = vld [vmem:[%s3767_s4 + $0x2c] sm:$0xf0]  ;;  %v2532_v61 = vld [vmem:[%s3767_s4 + $0x24] sm:$0xf] }
  0x43   : > { %803 = vmatpush.bf16.msrb.mxu1 %v3091_v0  ;;  %2580 = vset.pattern.permute.xlu1 %v2770_v47  ;;  %v909_v55 = vmin.f32 %v3218_v43, %v908_v49  ;;  %v2348_v62 = vld [vmem:[%s3767_s4 + $0x30] sm:$0xf0]  ;;  %v2370_v63 = vld [vmem:[%s3767_s4 + $0x48] sm:$0xf]  ;;  %v2539_v2 = vld [vmem:[%s3767_s4 + $0x54] sm:$0xf0]  ;;  %v3263_v4 = vor.u32 %v2537_v53, %v2372_v54  ;;  %v3269_v6 = vor.u32 %v2534_v58, %v2346_v52 }
  0x44   : > { %2581 = vset.pattern.permute.xlu2 %v2770_v47  ;;  %v2330_v5 = vld [vmem:[%s3767_s4] sm:$0xf]  ;;  %v2533_v7 = vld [vmem:[%s3767_s4 + $0x2c] sm:$0xf]  ;;  %v2356_v10 = vld [vmem:[%s3767_s4 + $0x38] sm:$0xf0]  ;;  %v3280_v11 = vor.u32 %v2532_v61, %v2348_v62  ;;  %v3282_v14 = vor.u32 %v2539_v2, %v2370_v63 }
  0x45   : > { %829 = vmatpush.bf16.msrb.mxu3 %v3114_v8  ;;  %816 = vmatpush.bf16.msrb.mxu2 %v3129_v13  ;;  %v3260_v3 = vadd.f32 %v909_v55, %v623_v45  ;;  %v2530_v15 = vld [vmem:[%s3767_s4 + $0xc] sm:$0xf0]  ;;  %v2528_v16 = vld [vmem:[%s3767_s4 + $0x4] sm:$0xf]  ;;  %v3772_v17 = vmov 0.0   ;;  %v3304_v26 = vor.u32 %v2533_v7, %v2356_v10  ;;  %vm918_vm12 = vcmask 1041408  }
  0x46   : > { %791 = vmatpush.bf16.msrb.mxu0 %v3117_v9  ;;  %v2332_v19 = vld [vmem:[%s3767_s4 + $0x10] sm:$0xf0]  ;;  %v2354_v22 = vld [vmem:[%s3767_s4 + $0x28] sm:$0xf]  ;;  %v2535_v23 = vld [vmem:[%s3767_s4 + $0x34] sm:$0xf0]  ;;  %v3307_v27 = vor.u32 %v2530_v15, %v2330_v5 }
  0x47   : > { %804 = vmatpush.bf16.msrb.mxu1 %v3127_v12  ;;  %vm911_vm1 = vcmp.ge.f32.partialorder %v3260_v3, 0.5  ;;  %v3309_v28 = vld [vmem:[#allocation3] sm:$0x3]  ;;  %v2529_v29 = vld [vmem:[%s3767_s4 + $0xc] sm:$0xf]  ;;  %v3319_v31 = vor.u32 %v2528_v16, %v2332_v19  ;;  %v3321_v33 = vor.u32 %v2535_v23, %v2354_v22  ;;  %s2772_s11 = smov [#allocation8]  }
  0x48   : > { %v3291_v18 = vsel %vm911_vm1, 1.0, %v3772_v17  ;;  %v2340_v30 = vld [vmem:[%s3767_s4 + $0x18] sm:$0xf0]  ;;  %v2338_v34 = vld [vmem:[%s3767_s4 + $0x8] sm:$0xf]  ;;  %v628_v38 = vpack.c.bf16 %v3309_v28, %v3309_v28  ;;  %s2151_s13 = sshll.u32 %s2772_s11, 4  ;;  %s2152_s13 = int_to_ptr.vmem [resolvable:$true] %s2151_s13 }
  0x49   : > { %830 = vmatpush.bf16.msrb.mxu3 %v3150_v20  ;;  %817 = vmatpush.bf16.msrb.mxu2 %v3165_v25  ;;  %v2531_v36 = vld [vmem:[%s3767_s4 + $0x14] sm:$0xf0]  ;;  %v3330_v37 = vsub.f32 1.0, %v3291_v18  ;;  %v3335_v39 = vor.u32 %v2529_v29, %v2340_v30  ;;  %v352_v45 = vld [vmem:[%s3768_s5] sm:$0xf]  ;;  %s2153_s16 = sshll.u32 %s3771_s8, 4  ;;  %s2154_s16 = int_to_ptr.hbm [resolvable:$true] %s2153_s16 }
  0x4a   : > { %792 = vmatpush.bf16.msrb.mxu0 %v3153_v21  ;;  %947 = vperm.xlu0 %2579, %v3291_v18   ;;  %v3340_v40 = vor.u32 %v2531_v36, %v2338_v34  ;;  %v354_v46 = vperm.slane %v352_v45, 0  ;;  %v355_v47 = vperm.slane %v352_v45, 1  ;;  %v357_v55 = vperm.slane %v352_v45, 3  ;;  %p2564_p5 = scmp.eq.s32.totalorder %s2827_s30, 1 }
  0x4b   : > { %805 = vmatpush.bf16.msrb.mxu1 %v3163_v24  ;;  %v356_v58 = vperm.slane %v352_v45, 2 }
  0x4d   : > { %831 = vmatpush.bf16.msrb.mxu3 %v3186_v32  ;;  %818 = vmatpush.bf16.msrb.mxu2 %v3216_v42 }
  0x4e   : > { %793 = vmatpush.bf16.msrb.mxu0 %v3195_v35 }
  0x4f   : > { %806 = vmatpush.bf16.msrb.mxu1 %v3214_v41 }
  0x51   : > { %832 = vmatpush.bf16.msrb.mxu3 %v3224_v50  ;;  %819 = vmatpush.bf16.msrb.mxu2 %v3243_v57 }
  0x52   : > { %794 = vmatpush.bf16.msrb.mxu0 %v3227_v51  ;;  %954 = vperm.xlu0 %2579, %v3330_v37  }
  0x53   : > { %807 = vmatpush.bf16.msrb.mxu1 %v3241_v56 }
  0x55   : > { %833 = vmatpush.bf16.msrb.mxu3 %v3263_v4  ;;  %820 = vmatpush.bf16.msrb.mxu2 %v3282_v14 }
  0x56   : > { %795 = vmatpush.bf16.msrb.mxu0 %v3269_v6 }
  0x57   : > { %808 = vmatpush.bf16.msrb.mxu1 %v3280_v11 }
  0x59   : > { %834 = vmatpush.bf16.msrb.mxu3 %v3304_v26  ;;  %821 = vmatpush.bf16.msrb.mxu2 %v3321_v33 }
  0x5a   : > { %796 = vmatpush.bf16.msrb.mxu0 %v3307_v27 }
  0x5b   : > { %809 = vmatpush.bf16.msrb.mxu1 %v3319_v31 }
  0x5d   : > { %797 = vmatmul.bf16.vlgmr.msrb.gmra.mxu0 %v628_v38  ;;  %835 = vmatpush.bf16.msrb.mxu3 %v3335_v39 }
  0x5e   : > { %971 = vmatpush.bf16.msra.mxu0 %v3051_v44  ;;  %810 = vmatmul.bf16.vlgmr.msrb.gmra.mxu1 %v628_v38 }
  0x5f   : > { %822 = vmatpush.bf16.msrb.mxu2 %v3340_v40  ;;  %984 = vmatpush.bf16.msra.mxu1 %v3059_v48 }
  0x60   : > { %836 = vmatmul.bf16.vlgmr.msrb.gmra.mxu3 %v628_v38 }
  0x61   : > { %1010 = vmatpush.bf16.msra.mxu3 %v3079_v59 }
  0x62   : > { %972 = vmatpush.bf16.msra.mxu0 %v3082_v60  ;;  %823 = vmatmul.bf16.vlgmr.msrb.gmra.mxu2 %v628_v38 }
  0x63   : > { %997 = vmatpush.bf16.msra.mxu2 %v3093_v1  ;;  %985 = vmatpush.bf16.msra.mxu1 %v3091_v0 }
  0x65   : > { %1011 = vmatpush.bf16.msra.mxu3 %v3114_v8 }
  0x66   : > { %973 = vmatpush.bf16.msra.mxu0 %v3117_v9 }
  0x67   : > { %998 = vmatpush.bf16.msra.mxu2 %v3129_v13  ;;  %986 = vmatpush.bf16.msra.mxu1 %v3127_v12 }
  0x69   : > { %1012 = vmatpush.bf16.msra.mxu3 %v3150_v20 }
  0x6a   : > { %974 = vmatpush.bf16.msra.mxu0 %v3153_v21 }
  0x6b   : > { %999 = vmatpush.bf16.msra.mxu2 %v3165_v25  ;;  %987 = vmatpush.bf16.msra.mxu1 %v3163_v24 }
  0x6d   : > { %1013 = vmatpush.bf16.msra.mxu3 %v3186_v32 }
  0x6e   : > { %975 = vmatpush.bf16.msra.mxu0 %v3195_v35 }
  0x6f   : > { %1000 = vmatpush.bf16.msra.mxu2 %v3216_v42  ;;  %988 = vmatpush.bf16.msra.mxu1 %v3214_v41 }
  0x71   : > { %1014 = vmatpush.bf16.msra.mxu3 %v3224_v50 }
  0x72   : > { %976 = vmatpush.bf16.msra.mxu0 %v3227_v51 }
  0x73   : > { %1001 = vmatpush.bf16.msra.mxu2 %v3243_v57  ;;  %989 = vmatpush.bf16.msra.mxu1 %v3241_v56 }
  0x75   : > { %1015 = vmatpush.bf16.msra.mxu3 %v3263_v4 }
  0x76   : > { %977 = vmatpush.bf16.msra.mxu0 %v3269_v6 }
  0x77   : > { %1002 = vmatpush.bf16.msra.mxu2 %v3282_v14  ;;  %990 = vmatpush.bf16.msra.mxu1 %v3280_v11 }
  0x79   : > { %1016 = vmatpush.bf16.msra.mxu3 %v3304_v26 }
  0x7a   : > { %978 = vmatpush.bf16.msra.mxu0 %v3307_v27 }
  0x7b   : > { %1003 = vmatpush.bf16.msra.mxu2 %v3321_v33  ;;  %991 = vmatpush.bf16.msra.mxu1 %v3319_v31 }
  0x7d   : > { %1017 = vmatpush.bf16.msra.mxu3 %v3335_v39 }
  0x7e   : > { %1171 = vmatpush.bf16.msrb.mxu0 %v3051_v44 }
  0x7f   : > { %1004 = vmatpush.bf16.msra.mxu2 %v3340_v40  ;;  %1184 = vmatpush.bf16.msrb.mxu1 %v3059_v48 }
  0x81   : > { %1210 = vmatpush.bf16.msrb.mxu3 %v3079_v59 }
  0x82   : > { %1172 = vmatpush.bf16.msrb.mxu0 %v3082_v60 }
  0x83   : > { %1197 = vmatpush.bf16.msrb.mxu2 %v3093_v1  ;;  %1185 = vmatpush.bf16.msrb.mxu1 %v3091_v0 }
  0x85   : > { %1211 = vmatpush.bf16.msrb.mxu3 %v3114_v8 }
  0x86   : > { %1173 = vmatpush.bf16.msrb.mxu0 %v3117_v9 }
  0x87   : > { %1198 = vmatpush.bf16.msrb.mxu2 %v3129_v13  ;;  %1186 = vmatpush.bf16.msrb.mxu1 %v3127_v12 }
  0x89   : > { %1212 = vmatpush.bf16.msrb.mxu3 %v3150_v20 }
  0x8a   : > { %1174 = vmatpush.bf16.msrb.mxu0 %v3153_v21 }
  0x8b   : > { %1199 = vmatpush.bf16.msrb.mxu2 %v3165_v25  ;;  %1187 = vmatpush.bf16.msrb.mxu1 %v3163_v24 }
  0x8d   : > { %1213 = vmatpush.bf16.msrb.mxu3 %v3186_v32 }
  0x8e   : > { %1175 = vmatpush.bf16.msrb.mxu0 %v3195_v35 }
  0x8f   : > { %1200 = vmatpush.bf16.msrb.mxu2 %v3216_v42  ;;  %1188 = vmatpush.bf16.msrb.mxu1 %v3214_v41 }
  0x91   : > { %1214 = vmatpush.bf16.msrb.mxu3 %v3224_v50 }
  0x92   : > { %1176 = vmatpush.bf16.msrb.mxu0 %v3227_v51 }
  0x93   : > { %1201 = vmatpush.bf16.msrb.mxu2 %v3243_v57  ;;  %1189 = vmatpush.bf16.msrb.mxu1 %v3241_v56 }
  0x95   : > { %1215 = vmatpush.bf16.msrb.mxu3 %v3263_v4 }
  0x96   : > { %1177 = vmatpush.bf16.msrb.mxu0 %v3269_v6 }
  0x97   : > { %1202 = vmatpush.bf16.msrb.mxu2 %v3282_v14  ;;  %1190 = vmatpush.bf16.msrb.mxu1 %v3280_v11 }
  0x99   : > { %1216 = vmatpush.bf16.msrb.mxu3 %v3304_v26 }
  0x9a   : > { %1178 = vmatpush.bf16.msrb.mxu0 %v3307_v27 }
  0x9b   : > { %1203 = vmatpush.bf16.msrb.mxu2 %v3321_v33  ;;  %1191 = vmatpush.bf16.msrb.mxu1 %v3319_v31 }
  0x9d   : > { %1217 = vmatpush.bf16.msrb.mxu3 %v3335_v39 }
  0x9f   : > { %1204 = vmatpush.bf16.msrb.mxu2 %v3340_v40 }
  0xbb   : > { %v545_v53 = vpop.f32.mrf.mxu1 }
  0xbc   : > { %v531_v49 = vpop.f32.mrf.mxu0  ;;  %v546_v54 = vadd.f32 %v545_v53, %v355_v47 }
  0xbd   : > { %v532_v52 = vadd.f32 %v531_v49, %v354_v46 }
  0xbe   : > { %579 = vst [vmem:[#allocation2] sm:$0xff] %v546_v54 }
  0xbf   : > { %578 = vst [vmem:[#allocation2 + $0x30] sm:$0xff] %v532_v52 }
  0xc3   : > { %v547_v63 = vpop.f32.mrf.mxu1  ;;  %v573_v2 = vpop.f32.mrf.mxu3 }
  0xc4   : > { %v533_v61 = vpop.f32.mrf.mxu0  ;;  %v548_v5 = vadd.f32 %v547_v63, %v355_v47  ;;  %v574_v7 = vadd.f32 %v573_v2, %v357_v55  ;;  %v559_v10 = vpop.f32.mrf.mxu2 }
  0xc5   : > { %v534_v62 = vadd.f32 %v533_v61, %v354_v46  ;;  %v560_v15 = vadd.f32 %v559_v10, %v356_v58  ;;  %v625_v36 = vld [vmem:[#allocation2] sm:$0x3] }
  0xc6   : > { %583 = vst [vmem:[#allocation2 + $0x20] sm:$0x3f] %v548_v5  ;;  %v624_v29 = vld [vmem:[#allocation2 + $0x30] sm:$0x3] }
  0xc7   : > { %582 = vst [vmem:[#allocation2 + $0x8] sm:$0x3f] %v534_v62 }
  0xc8   : > { %581 = vst [vmem:[#allocation2 + $0x10] sm:$0xff] %v574_v7 }
  0xc9   : > { %580 = vst [vmem:[#allocation2 + $0x18] sm:$0xff] %v560_v15 }
  0xcb   : > { %v575_v19 = vpop.f32.mrf.mxu3 }
  0xcc   : > { %v561_v16 = vpop.f32.mrf.mxu2  ;;  %v576_v23 = vadd.f32 %v575_v19, %v357_v55 }
  0xcd   : > { %v562_v22 = vadd.f32 %v561_v16, %v356_v58 }
  0xce   : > { %585 = vst [vmem:[#allocation2 + $0x38] sm:$0x3f] %v576_v23 }
  0xcf   : > { %584 = vst [vmem:[#allocation2 + $0x28] sm:$0x3f] %v562_v22  ;;  %v627_v49 = vld [vmem:[#allocation2 + $0x10] sm:$0x3] }
  0xd0   : > { %v626_v7 = vld [vmem:[#allocation2 + $0x18] sm:$0x3] }
  0xda   : > { %v798_v30 = vpop.f32.mrf.mxu0 }
  0xdb   : > { %v841_v34 = vadd.f32 %v798_v30, %v624_v29  ;;  %v811_v38 = vpop.f32.mrf.mxu1 }
  0xdc   : > { %v842_v45 = vadd.f32 %v811_v38, %v625_v36 }
  0xdd   : > { %v2456_v46 = vmul.f32 -1.442695, %v841_v34 }
  0xde   : > { %v2457_v47 = vmul.f32 -1.442695, %v842_v45 }
  0xdf   : > { %2586 = vpow2.f32 %v2456_v46 }
  0xe0   : > { %2588 = vpow2.f32 %v2457_v47 }
  0xe2   : > { %v800_v52 = vpop.f32.mrf.mxu0 }
  0xe3   : > { %v813_v53 = vpop.f32.mrf.mxu1  ;;  %v837_v54 = vpop.f32.mrf.mxu3 }
  0xe4   : > { %v844_v61 = vadd.f32 %v837_v54, %v627_v49 }
  0xe5   : > { %v2587_v62 = vpop.eup %2586  ;;  %v824_v58 = vpop.f32.mrf.mxu2 }
  0xe6   : > { %v2589_v55 = vpop.eup %2588  ;;  %v848_v63 = vadd.f32 1.0, %v2587_v62  ;;  %v2458_v2 = vmul.f32 -1.442695, %v844_v61  ;;  %v843_v19 = vadd.f32 %v824_v58, %v626_v7 }
  0xe7   : > { %v867_v5 = vadd.f32 1.0, %v2589_v55  ;;  %v3412_v55 = vld [vmem:[#allocation4] sm:$0x3] }
  0xe8   : > { %2590 = vrcp.f32 %v848_v63  ;;  %v858_v45 = vand.u32 2147483647, %v848_v63  ;;  %v860_v46 = vand.u32 2147483648, %v848_v63  ;;  %vm854_vm4 = vweird.f32 %v848_v63 }
  0xe9   : > { %2592 = vrcp.f32 %v867_v5  ;;  %v879_v49 = vand.u32 2147483648, %v867_v5  ;;  %v877_v53 = vand.u32 2147483647, %v867_v5  ;;  %vm873_vm6 = vweird.f32 %v867_v5 }
  0xea   : > { %2594 = vpow2.f32 %v2458_v2  ;;  %v861_v61 = vor.u32 1.1754944e-38, %v860_v46  ;;  %vm859_vm7 = vcmp.eq.f32.partialorder %v858_v45, 8.507059e+37 }
  0xeb   : > { %v839_v10 = vpop.f32.mrf.mxu3  ;;  %2596 = vtanh.f32 %v843_v19  ;;  %v880_v2 = vor.u32 1.1754944e-38, %v879_v49  ;;  %vm878_vm9 = vcmp.eq.f32.partialorder %v877_v53, 8.507059e+37 }
  0xed   : > { %v826_v15 = vpop.f32.mrf.mxu2 }
  0xee   : > { %v2591_v16 = vpop.eup %2590 }
  0xef   : > { %v2593_v22 = vpop.eup %2592  ;;  %v850_v23 = vmul.f32 %v2591_v16, %v848_v63  ;;  %vm855_vm2 = vweird.f32 %v2591_v16 }
  0xf0   : > { %v2595_v29 = vpop.eup %2594  ;;  %v869_v30 = vmul.f32 %v2593_v22, %v867_v5  ;;  %vm874_vm3 = vweird.f32 %v2593_v22  ;;  %vm856_vm5 = vmor %vm854_vm4, %vm855_vm2  ;;  %v3418_v5 = vld [vmem:[%s3769_s6] ss:$0 sm:$0xff] }
  0xf1   : > { %v851_v34 = vsub.f32 1.0, %v850_v23  ;;  %v887_v36 = vadd.f32 1.0, %v2595_v29  ;;  %vm875_vm8 = vmor %vm873_vm6, %vm874_vm3  ;;  %v2597_v7 = vpop.eup %2596 }
  0xf2   : > { %v870_v38 = vsub.f32 1.0, %v869_v30 }
  0xf3   : > { %2598 = vrcp.f32 %v887_v36  ;;  %v852_v47 = vmul.f32 %v2591_v16, %v851_v34  ;;  %v948_v34 = vpop.permute.xlu0 %947  ;;  %vm893_vm10 = vweird.f32 %v887_v36  ;;  %v897_v45 = vand.u32 2147483647, %v887_v36 }
  0xf4   : > { %v871_v52 = vmul.f32 %v2593_v22, %v870_v38 }
  0xf5   : > { %v853_v54 = vadd.f32 %v2591_v16, %v852_v47  ;;  %vm898_vm14 = vcmp.eq.f32.partialorder %v897_v45, 8.507059e+37 }
  0xf6   : > { %v872_v62 = vadd.f32 %v2593_v22, %v871_v52 }
  0xf7   : > { %v857_v58 = vsel %vm856_vm5, %v2591_v16, %v853_v54  ;;  %v899_v16 = vand.u32 2147483648, %v887_v36 }
  0xf8   : > { %v862_v10 = vsel %vm859_vm7, %v861_v61, %v857_v58  ;;  %v876_v15 = vsel %vm875_vm8, %v2593_v22, %v872_v62 }
  0xf9   : > { %v2599_v19 = vpop.eup %2598  ;;  %v904_v23 = vmul.f32 %v2597_v7, %v862_v10  ;;  %v881_v29 = vsel %vm878_vm9, %v880_v2, %v876_v15  ;;  %v900_v52 = vor.u32 1.1754944e-38, %v899_v16 }
  0xfa   : > { %v889_v30 = vmul.f32 %v2599_v19, %v887_v36  ;;  %v903_v63 = vmul.f32 %v881_v29, %v3412_v55  ;;  %vm894_vm11 = vweird.f32 %v2599_v19 }
  0xfb   : > { %vm895_vm13 = vmor %vm893_vm10, %vm894_vm11  ;;  %v3424_v2 = vpop.permute.xlu0 %954 }
  0xfc   : > { %v890_v38 = vsub.f32 1.0, %v889_v30  ;;  %v905_v46 = vadd.f32 %v904_v23, %v903_v63  ;;  %v957_v7 = vmul.f32 %v3424_v2, %v3309_v28  ;;  %v3464_v28 = vld [vmem:[#allocation7] ss:$0 sm:$0xff] }
  0xfe   : > { %v891_v22 = vmul.f32 %v2599_v19, %v890_v38  ;;  %2600 = vtanh.f32 %v905_v46  ;;  %v3420_v47 = vmul.f32 %v948_v34, %v905_v46  ;;  %v917_v49 = vmul.f32 %v3418_v5, %v905_v46 }
 0x100   : > { %v892_v53 = vadd.f32 %v2599_v19, %v891_v22  ;;  %v919_v54 = vsel %vm918_vm12, %v917_v49, 0.0  ;;  %v966_v49 = vld [vmem:[#allocation2 + $0x30] sm:$0xc] }
 0x101   : > { %920 = vadd.xlane.f32.xlu1 %v919_v54 }
 0x102   : > { %v896_v61 = vsel %vm895_vm13, %v2599_v19, %v892_v53 }
 0x103   : > { %v901_v62 = vsel %vm898_vm14, %v900_v52, %v896_v61  ;;  %v967_v61 = vld [vmem:[#allocation2] sm:$0xc] }
 0x104   : > { %v2601_v58 = vpop.eup %2600 }
 0x105   : > { %v907_v36 = vmul.f32 %v2601_v58, %v901_v62 }
 0x107   : > { %v950_v10 = vmul.f32 %v948_v34, %v907_v36 }
 0x109   : > { %v3428_v15 = vadd.f32 %v957_v7, %v950_v10  ;;  %v965_v10 = vmul.f32 %v3330_v37, %v3260_v3  ;;  %v969_v3 = vld [vmem:[#allocation2 + $0x10] sm:$0xc] }
 0x10b   : > { %v970_v23 = vpack.c.bf16 %v3428_v15, %v3428_v15 }
 0x10d   : > { %979 = vmatmul.bf16.vlgmr.msra.gmra.mxu0 %v970_v23  ;;  %992 = vmatmul.bf16.vlgmr.msra.gmra.mxu1 %v970_v23 }
 0x10e   : > { %1005 = vmatmul.bf16.vlgmr.msra.gmra.mxu2 %v970_v23  ;;  %1018 = vmatmul.bf16.vlgmr.msra.gmra.mxu3 %v970_v23 }
 0x10f   : > { %1371 = vmatpush.bf16.msra.mxu0 %v3051_v44  ;;  %1384 = vmatpush.bf16.msra.mxu1 %v3059_v48 }
 0x110   : > { %1397 = vmatpush.bf16.msra.mxu2 %v3093_v1  ;;  %1410 = vmatpush.bf16.msra.mxu3 %v3079_v59 }
 0x113   : > { %1372 = vmatpush.bf16.msra.mxu0 %v3082_v60  ;;  %1385 = vmatpush.bf16.msra.mxu1 %v3091_v0 }
 0x114   : > { %1398 = vmatpush.bf16.msra.mxu2 %v3129_v13  ;;  %1411 = vmatpush.bf16.msra.mxu3 %v3114_v8 }
 0x117   : > { %1373 = vmatpush.bf16.msra.mxu0 %v3117_v9  ;;  %1386 = vmatpush.bf16.msra.mxu1 %v3127_v12 }
 0x118   : > { %1399 = vmatpush.bf16.msra.mxu2 %v3165_v25  ;;  %1412 = vmatpush.bf16.msra.mxu3 %v3150_v20 }
 0x11b   : > { %1374 = vmatpush.bf16.msra.mxu0 %v3153_v21  ;;  %1387 = vmatpush.bf16.msra.mxu1 %v3163_v24 }
 0x11c   : > { %1400 = vmatpush.bf16.msra.mxu2 %v3216_v42  ;;  %1413 = vmatpush.bf16.msra.mxu3 %v3186_v32 }
 0x11f   : > { %1375 = vmatpush.bf16.msra.mxu0 %v3195_v35  ;;  %1388 = vmatpush.bf16.msra.mxu1 %v3214_v41 }
 0x120   : > { %1401 = vmatpush.bf16.msra.mxu2 %v3243_v57  ;;  %1414 = vmatpush.bf16.msra.mxu3 %v3224_v50 }
 0x123   : > { %1376 = vmatpush.bf16.msra.mxu0 %v3227_v51  ;;  %1389 = vmatpush.bf16.msra.mxu1 %v3241_v56 }
 0x124   : > { %1402 = vmatpush.bf16.msra.mxu2 %v3282_v14  ;;  %1415 = vmatpush.bf16.msra.mxu3 %v3263_v4 }
 0x127   : > { %1377 = vmatpush.bf16.msra.mxu0 %v3269_v6  ;;  %1390 = vmatpush.bf16.msra.mxu1 %v3280_v11 }
 0x128   : > { %1403 = vmatpush.bf16.msra.mxu2 %v3321_v33  ;;  %1416 = vmatpush.bf16.msra.mxu3 %v3304_v26 }
 0x12b   : > { %1378 = vmatpush.bf16.msra.mxu0 %v3307_v27  ;;  %1391 = vmatpush.bf16.msra.mxu1 %v3319_v31 }
 0x12c   : > { %1404 = vmatpush.bf16.msra.mxu2 %v3340_v40  ;;  %1417 = vmatpush.bf16.msra.mxu3 %v3335_v39 }
 0x174   : > { %v921_v19 = vpop.xlane.xlu1 %920 }
 0x175   : > { %v925_v29 = vadd.f32 %v3464_v28, %v921_v19 }
 0x177   : > { %v2460_v30 = vmul.f32 -1.442695, %v925_v29 }
 0x179   : > { %2602 = vpow2.f32 %v2460_v30 }
 0x17f   : > { %v2603_v34 = vpop.eup %2602 }
 0x180   : > { %v929_v63 = vadd.f32 1.0, %v2603_v34  ;;  %v963_v34 = vmul.f32 %v3330_v37, %v3218_v43 }
 0x182   : > { %2604 = vrcp.f32 %v929_v63  ;;  %v941_v54 = vand.u32 2147483648, %v929_v63  ;;  %v939_v62 = vand.u32 2147483647, %v929_v63  ;;  %vm935_vm0 = vweird.f32 %v929_v63 }
 0x184   : > { %v942_v30 = vor.u32 1.1754944e-38, %v941_v54  ;;  %vm940_vm2 = vcmp.eq.f32.partialorder %v939_v62, 8.507059e+37 }
 0x188   : > { %v2605_v16 = vpop.eup %2604 }
 0x189   : > { %v931_v38 = vmul.f32 %v2605_v16, %v929_v63  ;;  %vm936_vm15 = vweird.f32 %v2605_v16 }
 0x18a   : > { %v980_v45 = vpop.f32.mrf.mxu0  ;;  %v993_v46 = vpop.f32.mrf.mxu1  ;;  %vm937_vm1 = vmor %vm935_vm0, %vm936_vm15 }
 0x18b   : > { %v932_v22 = vsub.f32 1.0, %v931_v38  ;;  %v1027_v52 = vrot.slane %v980_v45, 6  ;;  %v1028_v53 = vrot.slane %v993_v46, 6 }
 0x18d   : > { %v933_v58 = vmul.f32 %v2605_v16, %v932_v22  ;;  %v1035_v36 = vadd.f32 %v1027_v52, %v966_v49  ;;  %v1036_v7 = vadd.f32 %v1028_v53, %v967_v61  ;;  %v1105_v61 = vsub.f32 1.0, %v965_v10 }
 0x18f   : > { %v2461_v23 = vmul.f32 -1.442695, %v1035_v36  ;;  %v2462_v19 = vmul.f32 -1.442695, %v1036_v7  ;;  %v934_v29 = vadd.f32 %v2605_v16, %v933_v58 }
 0x191   : > { %2606 = vpow2.f32 %v2461_v23  ;;  %v1006_v38 = vpop.f32.mrf.mxu2  ;;  %v1019_v45 = vpop.f32.mrf.mxu3  ;;  %v938_v46 = vsel %vm937_vm1, %v2605_v16, %v934_v29  ;;  %vm1112_vm1 = vcmask 1043458  }
 0x192   : > { %2608 = vpow2.f32 %v2462_v19  ;;  %v1030_v22 = vrot.slane %v1019_v45, 6  ;;  %v982_v49 = vpop.f32.mrf.mxu0  ;;  %v995_v52 = vpop.f32.mrf.mxu1  ;;  %v943_v53 = vsel %vm940_vm2, %v942_v30, %v938_v46  ;;  %v1029_v29 = vrot.slane %v1006_v38, 6  ;;  %v968_v46 = vld [vmem:[#allocation2 + $0x18] sm:$0xc] }
 0x193   : > { %v962_v63 = vmul.f32 %v3291_v18, %v943_v53  ;;  %v3775_v30 = vmov 0.0  }
 0x194   : > { %v1038_v58 = vadd.f32 %v1030_v22, %v969_v3  ;;  %v1037_v38 = vadd.f32 %v1029_v29, %v968_v46 }
 0x195   : > { %v964_v36 = vadd.f32 %v963_v34, %v962_v63 }
 0x196   : > { %v2463_v54 = vmul.f32 -1.442695, %v1038_v58 }
 0x197   : > { %v2607_v7 = vpop.eup %2606  ;;  %v1106_v17 = vmin.f32 %v964_v36, %v1105_v61 }
 0x198   : > { %v2609_v43 = vpop.eup %2608  ;;  %v1042_v37 = vadd.f32 1.0, %v2607_v7  ;;  %2610 = vpow2.f32 %v2463_v54 }
 0x199   : > { %v1061_v23 = vadd.f32 1.0, %v2609_v43  ;;  %v1008_v16 = vpop.f32.mrf.mxu2  ;;  %v1021_v62 = vpop.f32.mrf.mxu3  ;;  %v1107_v19 = vadd.f32 %v1106_v17, %v965_v10  ;;  %v960_v10 = vmul.f32 %v3424_v2, %v3412_v55 }
 0x19a   : > { %2612 = vrcp.f32 %v1042_v37  ;;  %v1054_v7 = vand.u32 2147483648, %v1042_v37  ;;  %v1052_v43 = vand.u32 2147483647, %v1042_v37  ;;  %vm1048_vm6 = vweird.f32 %v1042_v37 }
 0x19b   : > { %2614 = vrcp.f32 %v1061_v23  ;;  %vm1108_vm3 = vcmp.ge.f32.partialorder %v1107_v19, 0.5  ;;  %v3484_v58 = vadd.f32 %v960_v10, %v3420_v47  ;;  %v1073_v16 = vand.u32 2147483648, %v1061_v23 }
 0x19c   : > { %v3473_v45 = vsel %vm1108_vm3, 1.0, %v3775_v30  ;;  %v1055_v29 = vor.u32 1.1754944e-38, %v1054_v7  ;;  %vm1067_vm8 = vweird.f32 %v1061_v23  ;;  %vm1053_vm9 = vcmp.eq.f32.partialorder %v1052_v43, 8.507059e+37 }
 0x19d   : > { %1138 = vperm.xlu1 %2580, %v3473_v45   ;;  %v1145_v18 = vsub.f32 1.0, %v3473_v45  ;;  %v1098_v47 = vrot.slane %v3484_v58, 6  ;;  %v1074_v10 = vor.u32 1.1754944e-38, %v1073_v16 }
 0x19e   : > { %v2611_v34 = vpop.eup %2610 }
 0x19f   : > { %v1081_v22 = vadd.f32 1.0, %v2611_v34  ;;  %1148 = vperm.xlu2 %2581, %v1145_v18   ;;  %v3477_v49 = vmul.f32 %v1145_v18, %v964_v36  ;;  %v3479_v52 = vmul.f32 %v1145_v18, %v1107_v19  ;;  %v1071_v19 = vand.u32 2147483647, %v1061_v23 }
 0x1a0   : > { %v2613_v17 = vpop.eup %2612 }
 0x1a1   : > { %3776 = vst [vmem:[#allocation11_spill] sm:$0xff] %v3479_v52  ;;  %v2615_v53 = vpop.eup %2614  ;;  %v1044_v3 = vmul.f32 %v2613_v17, %v1042_v37  ;;  %2616 = vrcp.f32 %v1081_v22  ;;  %vm1049_vm4 = vweird.f32 %v2613_v17  ;;  %vm1072_vm11 = vcmp.eq.f32.partialorder %v1071_v19, 8.507059e+37 }
 0x1a2   : > { %v1063_v63 = vmul.f32 %v2615_v53, %v1061_v23  ;;  %2618 = vtanh.f32 %v1037_v38  ;;  %vm1068_vm5 = vweird.f32 %v2615_v53  ;;  %vm1050_vm7 = vmor %vm1048_vm6, %vm1049_vm4  ;;  %v1093_v23 = vand.u32 2147483648, %v1081_v22 }
 0x1a3   : > { %v1045_v61 = vsub.f32 1.0, %v1044_v3  ;;  %vm1069_vm10 = vmor %vm1067_vm8, %vm1068_vm5  ;;  %vm1087_vm14 = vweird.f32 %v1081_v22 }
 0x1a4   : > { %v1064_v54 = vsub.f32 1.0, %v1063_v63  ;;  %v1094_v16 = vor.u32 1.1754944e-38, %v1093_v23 }
 0x1a5   : > { %v1046_v36 = vmul.f32 %v2613_v17, %v1045_v61 }
 0x1a6   : > { %v1065_v62 = vmul.f32 %v2615_v53, %v1064_v54 }
 0x1a7   : > { %v2617_v55 = vpop.eup %2616  ;;  %v1047_v2 = vadd.f32 %v2613_v17, %v1046_v36 }
 0x1a8   : > { %v1066_v18 = vadd.f32 %v2615_v53, %v1065_v62  ;;  %v1083_v34 = vmul.f32 %v2617_v55, %v1081_v22  ;;  %v2619_v38 = vpop.eup %2618  ;;  %vm1088_vm13 = vweird.f32 %v2617_v55 }
 0x1a9   : > { %v1051_v46 = vsel %vm1050_vm7, %v2613_v17, %v1047_v2  ;;  %v1091_v17 = vand.u32 2147483647, %v1081_v22  ;;  %vm1089_vm15 = vmor %vm1087_vm14, %vm1088_vm13 }
 0x1aa   : > { %v1056_v3 = vsel %vm1053_vm9, %v1055_v29, %v1051_v46  ;;  %v1070_v63 = vsel %vm1069_vm10, %v2615_v53, %v1066_v18  ;;  %v1084_v61 = vsub.f32 1.0, %v1083_v34 }
 0x1ab   : > { %v1075_v54 = vsel %vm1072_vm11, %v1074_v10, %v1070_v63  ;;  %v1101_v30 = vmul.f32 %v2619_v38, %v1056_v3  ;;  %vm1092_vm0 = vcmp.eq.f32.partialorder %v1091_v17, 8.507059e+37 }
 0x1ac   : > { %v1100_v36 = vmul.f32 %v1098_v47, %v1075_v54  ;;  %v1085_v37 = vmul.f32 %v2617_v55, %v1084_v61 }
 0x1ae   : > { %v3487_v52 = vadd.f32 %v1101_v30, %v1100_v36  ;;  %v1086_v7 = vadd.f32 %v2617_v55, %v1085_v37 }
 0x1b0   : > { %2620 = vtanh.f32 %v3487_v52  ;;  %v1090_v43 = vsel %vm1089_vm15, %v2617_v55, %v1086_v7  ;;  %v1111_v2 = vmul.f32 %v3418_v5, %v3487_v52 }
 0x1b1   : > { %v1095_v62 = vsel %vm1092_vm0, %v1094_v16, %v1090_v43  ;;  %vm1312_vm0 = vcmask 1045508  }
 0x1b2   : > { %v1113_v30 = vsel %vm1112_vm1, %v1111_v2, 0.0 }
 0x1b6   : > { %v2621_v53 = vpop.eup %2620 }
 0x1b7   : > { %v1104_v19 = vmul.f32 %v2621_v53, %v1095_v62 }
 0x1b9   : > { %v1142_v18 = vrot.slane %v1104_v19, 2 }
 0x1c8   : > { %1114 = vadd.xlane.f32.xlu2 %v1113_v30  ;;  %v3777_v30 = vld [vmem:[#allocation11_spill] sm:$0xff] }
 0x1f9   : > { %v3493_v29 = vpop.permute.xlu2 %1148 }
 0x1fa   : > { %v1151_v22 = vmul.f32 %v3493_v29, %v3428_v15 }
 0x20f   : > { %v3495_v34 = vpop.permute.xlu1 %1138 }
 0x210   : > { %v1144_v55 = vmul.f32 %v1142_v18, %v3495_v34  ;;  %v1305_v18 = vsub.f32 1.0, %v3777_v30 }
 0x212   : > { %v3500_v47 = vadd.f32 %v1151_v22, %v1144_v55 }
 0x214   : > { %v1170_v46 = vpack.c.bf16 %v3500_v47, %v3500_v47 }
 0x216   : > { %1179 = vmatmul.bf16.vlgmr.msrb.gmra.mxu0 %v1170_v46  ;;  %1192 = vmatmul.bf16.vlgmr.msrb.gmra.mxu1 %v1170_v46 }
 0x217   : > { %1205 = vmatmul.bf16.vlgmr.msrb.gmra.mxu2 %v1170_v46  ;;  %1218 = vmatmul.bf16.vlgmr.msrb.gmra.mxu3 %v1170_v46  ;;  %v3778_v46 = vmov 0.0  }
 0x218   : > { %1571 = vmatpush.bf16.msrb.mxu0 %v3051_v44  ;;  %1584 = vmatpush.bf16.msrb.mxu1 %v3059_v48 }
 0x219   : > { %1597 = vmatpush.bf16.msrb.mxu2 %v3093_v1  ;;  %1610 = vmatpush.bf16.msrb.mxu3 %v3079_v59 }
 0x21c   : > { %1572 = vmatpush.bf16.msrb.mxu0 %v3082_v60  ;;  %1585 = vmatpush.bf16.msrb.mxu1 %v3091_v0 }
 0x21d   : > { %1598 = vmatpush.bf16.msrb.mxu2 %v3129_v13  ;;  %1611 = vmatpush.bf16.msrb.mxu3 %v3114_v8 }
 0x220   : > { %1573 = vmatpush.bf16.msrb.mxu0 %v3117_v9  ;;  %1586 = vmatpush.bf16.msrb.mxu1 %v3127_v12 }
 0x221   : > { %1599 = vmatpush.bf16.msrb.mxu2 %v3165_v25  ;;  %1612 = vmatpush.bf16.msrb.mxu3 %v3150_v20 }
 0x224   : > { %1574 = vmatpush.bf16.msrb.mxu0 %v3153_v21  ;;  %1587 = vmatpush.bf16.msrb.mxu1 %v3163_v24 }
 0x225   : > { %1600 = vmatpush.bf16.msrb.mxu2 %v3216_v42  ;;  %1613 = vmatpush.bf16.msrb.mxu3 %v3186_v32 }
 0x228   : > { %1575 = vmatpush.bf16.msrb.mxu0 %v3195_v35  ;;  %1588 = vmatpush.bf16.msrb.mxu1 %v3214_v41 }
 0x229   : > { %1601 = vmatpush.bf16.msrb.mxu2 %v3243_v57  ;;  %1614 = vmatpush.bf16.msrb.mxu3 %v3224_v50 }
 0x22c   : > { %1576 = vmatpush.bf16.msrb.mxu0 %v3227_v51  ;;  %1589 = vmatpush.bf16.msrb.mxu1 %v3241_v56 }
 0x22d   : > { %1602 = vmatpush.bf16.msrb.mxu2 %v3282_v14  ;;  %1615 = vmatpush.bf16.msrb.mxu3 %v3263_v4 }
 0x230   : > { %1577 = vmatpush.bf16.msrb.mxu0 %v3269_v6  ;;  %1590 = vmatpush.bf16.msrb.mxu1 %v3280_v11 }
 0x231   : > { %1603 = vmatpush.bf16.msrb.mxu2 %v3321_v33  ;;  %1616 = vmatpush.bf16.msrb.mxu3 %v3304_v26 }
 0x234   : > { %1578 = vmatpush.bf16.msrb.mxu0 %v3307_v27  ;;  %1591 = vmatpush.bf16.msrb.mxu1 %v3319_v31 }
 0x235   : > { %1604 = vmatpush.bf16.msrb.mxu2 %v3340_v40  ;;  %1617 = vmatpush.bf16.msrb.mxu3 %v3335_v39 }
 0x23b   : > { %v1115_v15 = vpop.xlane.xlu2 %1114 }
 0x23c   : > { %v1116_v10 = vadd.f32 %v3464_v28, %v1115_v15 }
 0x23e   : > { %v2465_v38 = vmul.f32 -1.442695, %v1116_v10 }
 0x240   : > { %2622 = vpow2.f32 %v2465_v38 }
 0x246   : > { %v2623_v3 = vpop.eup %2622 }
 0x247   : > { %v1120_v63 = vadd.f32 1.0, %v2623_v3 }
 0x249   : > { %2624 = vrcp.f32 %v1120_v63  ;;  %v1132_v37 = vand.u32 2147483648, %v1120_v63  ;;  %v1130_v23 = vand.u32 2147483647, %v1120_v63  ;;  %vm1126_vm3 = vweird.f32 %v1120_v63 }
 0x24b   : > { %v1133_v43 = vor.u32 1.1754944e-38, %v1132_v37  ;;  %vm1131_vm5 = vcmp.eq.f32.partialorder %v1130_v23, 8.507059e+37 }
 0x24f   : > { %v2625_v61 = vpop.eup %2624 }
 0x250   : > { %v1122_v54 = vmul.f32 %v2625_v61, %v1120_v63  ;;  %vm1127_vm2 = vweird.f32 %v2625_v61 }
 0x251   : > { %vm1128_vm4 = vmor %vm1126_vm3, %vm1127_vm2 }
 0x252   : > { %v1123_v36 = vsub.f32 1.0, %v1122_v54  ;;  %v1166_v54 = vld [vmem:[#allocation2 + $0x30] sm:$0x30] }
 0x254   : > { %v1124_v7 = vmul.f32 %v2625_v61, %v1123_v36  ;;  %v1167_v36 = vld [vmem:[#allocation2] sm:$0x30] }
 0x256   : > { %v1125_v17 = vadd.f32 %v2625_v61, %v1124_v7 }
 0x258   : > { %v1129_v16 = vsel %vm1128_vm4, %v2625_v61, %v1125_v17 }
 0x259   : > { %v1134_v53 = vsel %vm1131_vm5, %v1133_v43, %v1129_v16 }
 0x25a   : > { %v1160_v62 = vrot.slane %v1134_v53, 2 }
 0x25c   : > { %v1162_v19 = vmul.f32 %v3473_v45, %v1160_v62 }
 0x25e   : > { %v1164_v2 = vadd.f32 %v3477_v49, %v1162_v19 }
 0x260   : > { %v1306_v22 = vmin.f32 %v1164_v2, %v1305_v18 }
 0x262   : > { %v1307_v55 = vadd.f32 %v1306_v22, %v3777_v30 }
 0x264   : > { %vm1308_vm6 = vcmp.ge.f32.partialorder %v1307_v55, 0.5 }
 0x265   : > { %v3542_v15 = vsel %vm1308_vm6, 1.0, %v3778_v46 }
 0x266   : > { %1338 = vperm.xlu0 %2579, %v3542_v15   ;;  %v1345_v10 = vsub.f32 1.0, %v3542_v15 }
 0x268   : > { %v3546_v38 = vmul.f32 %v1345_v10, %v1164_v2  ;;  %v3548_v3 = vmul.f32 %v1345_v10, %v1307_v55 }
 0x26e   : > { %1348 = vperm.xlu0 %2579, %v1345_v10  }
 0x293   : > { %v1180_v45 = vpop.f32.mrf.mxu0  ;;  %v1193_v49 = vpop.f32.mrf.mxu1 }
 0x294   : > { %v1227_v63 = vrot.slane %v1180_v45, 4  ;;  %v1228_v61 = vrot.slane %v1193_v49, 4  ;;  %v1168_v49 = vld [vmem:[#allocation2 + $0x18] sm:$0x30] }
 0x296   : > { %v1235_v37 = vadd.f32 %v1227_v63, %v1166_v54  ;;  %v1236_v7 = vadd.f32 %v1228_v61, %v1167_v36  ;;  %v1169_v63 = vld [vmem:[#allocation2 + $0x10] sm:$0x30]  ;;  %v1154_v54 = vrot.slane %v3487_v52, 2 }
 0x298   : > { %v2466_v23 = vmul.f32 -1.442695, %v1235_v37  ;;  %v2467_v17 = vmul.f32 -1.442695, %v1236_v7 }
 0x29a   : > { %2626 = vpow2.f32 %v2466_v23  ;;  %v1206_v43 = vpop.f32.mrf.mxu2  ;;  %v1219_v16 = vpop.f32.mrf.mxu3 }
 0x29b   : > { %2628 = vpow2.f32 %v2467_v17  ;;  %v1182_v53 = vpop.f32.mrf.mxu0  ;;  %v1195_v62 = vpop.f32.mrf.mxu1  ;;  %v1229_v10 = vrot.slane %v1206_v43, 4  ;;  %v1230_v45 = vrot.slane %v1219_v16, 4  ;;  %v1156_v17 = vmul.f32 %v1154_v54, %v3495_v34 }
 0x29c   : > { %v1157_v62 = vmul.f32 %v3493_v29, %v3484_v58 }
 0x29d   : > { %v1237_v36 = vadd.f32 %v1229_v10, %v1168_v49  ;;  %v1238_v37 = vadd.f32 %v1230_v45, %v1169_v63 }
 0x29e   : > { %v3554_v52 = vadd.f32 %v1157_v62, %v1156_v17 }
 0x29f   : > { %v2468_v43 = vmul.f32 -1.442695, %v1238_v37 }
 0x2a0   : > { %v2627_v19 = vpop.eup %2626 }
 0x2a1   : > { %v2629_v2 = vpop.eup %2628  ;;  %v1242_v30 = vadd.f32 1.0, %v2627_v19 }
 0x2a2   : > { %v1261_v18 = vadd.f32 1.0, %v2629_v2  ;;  %v1208_v22 = vpop.f32.mrf.mxu2  ;;  %v1221_v55 = vpop.f32.mrf.mxu3 }
 0x2a3   : > { %2630 = vrcp.f32 %v1242_v30  ;;  %v1254_v16 = vand.u32 2147483648, %v1242_v30  ;;  %v1252_v55 = vand.u32 2147483647, %v1242_v30  ;;  %vm1248_vm9 = vweird.f32 %v1242_v30 }
 0x2a4   : > { %2632 = vrcp.f32 %v1261_v18  ;;  %v1273_v46 = vand.u32 2147483648, %v1261_v18  ;;  %v1271_v45 = vand.u32 2147483647, %v1261_v18  ;;  %vm1267_vm11 = vweird.f32 %v1261_v18 }
 0x2a5   : > { %2634 = vtanh.f32 %v1237_v36  ;;  %v1255_v34 = vor.u32 1.1754944e-38, %v1254_v16  ;;  %vm1253_vm13 = vcmp.eq.f32.partialorder %v1252_v55, 8.507059e+37  ;;  %v1298_v36 = vrot.slane %v3554_v52, 4 }
 0x2a6   : > { %2636 = vpow2.f32 %v2468_v43  ;;  %v1274_v63 = vor.u32 1.1754944e-38, %v1273_v46  ;;  %vm1272_vm15 = vcmp.eq.f32.partialorder %v1271_v45, 8.507059e+37 }
 0x2a9   : > { %v2631_v61 = vpop.eup %2630 }
 0x2aa   : > { %v2633_v7 = vpop.eup %2632  ;;  %v1244_v23 = vmul.f32 %v2631_v61, %v1242_v30  ;;  %vm1249_vm7 = vweird.f32 %v2631_v61 }
 0x2ab   : > { %v1263_v53 = vmul.f32 %v2633_v7, %v1261_v18  ;;  %vm1268_vm8 = vweird.f32 %v2633_v7  ;;  %vm1250_vm10 = vmor %vm1248_vm9, %vm1249_vm7  ;;  %v2635_v54 = vpop.eup %2634 }
 0x2ac   : > { %v1245_v19 = vsub.f32 1.0, %v1244_v23  ;;  %vm1269_vm14 = vmor %vm1267_vm11, %vm1268_vm8 }
 0x2ad   : > { %v1264_v2 = vsub.f32 1.0, %v1263_v53 }
 0x2ae   : > { %v1246_v22 = vmul.f32 %v2631_v61, %v1245_v19  ;;  %v2637_v19 = vpop.eup %2636 }
 0x2af   : > { %v1265_v10 = vmul.f32 %v2633_v7, %v1264_v2  ;;  %v1281_v43 = vadd.f32 1.0, %v2637_v19 }
 0x2b0   : > { %v1247_v49 = vadd.f32 %v2631_v61, %v1246_v22 }
 0x2b1   : > { %v1266_v58 = vadd.f32 %v2633_v7, %v1265_v10  ;;  %2638 = vrcp.f32 %v1281_v43  ;;  %v1293_v55 = vand.u32 2147483648, %v1281_v43  ;;  %vm1287_vm3 = vweird.f32 %v1281_v43 }
 0x2b2   : > { %v1251_v29 = vsel %vm1250_vm10, %v2631_v61, %v1247_v49  ;;  %v1291_v10 = vand.u32 2147483647, %v1281_v43 }
 0x2b3   : > { %v1256_v37 = vsel %vm1253_vm13, %v1255_v34, %v1251_v29  ;;  %v1270_v23 = vsel %vm1269_vm14, %v2633_v7, %v1266_v58  ;;  %v1294_v58 = vor.u32 1.1754944e-38, %v1293_v55 }
 0x2b4   : > { %v1275_v17 = vsel %vm1272_vm15, %v1274_v63, %v1270_v23  ;;  %v1301_v53 = vmul.f32 %v2635_v54, %v1256_v37  ;;  %vm1292_vm5 = vcmp.eq.f32.partialorder %v1291_v10, 8.507059e+37 }
 0x2b5   : > { %v1300_v62 = vmul.f32 %v1298_v36, %v1275_v17 }
 0x2b7   : > { %v1302_v30 = vadd.f32 %v1301_v53, %v1300_v62  ;;  %v2639_v46 = vpop.eup %2638 }
 0x2b8   : > { %v1283_v61 = vmul.f32 %v2639_v46, %v1281_v43  ;;  %vm1288_vm2 = vweird.f32 %v2639_v46 }
 0x2b9   : > { %v1311_v2 = vmul.f32 %v3418_v5, %v1302_v30  ;;  %2640 = vtanh.f32 %v1302_v30  ;;  %vm1289_vm4 = vmor %vm1287_vm3, %vm1288_vm2  ;;  %v1354_v49 = vrot.slane %v1302_v30, 4 }
 0x2ba   : > { %v1284_v16 = vsub.f32 1.0, %v1283_v61 }
 0x2bb   : > { %v1313_v18 = vsel %vm1312_vm0, %v1311_v2, 0.0 }
 0x2bc   : > { %1314 = vadd.xlane.f32.xlu0 %v1313_v18  ;;  %v1285_v22 = vmul.f32 %v2639_v46, %v1284_v16 }
 0x2be   : > { %v1286_v7 = vadd.f32 %v2639_v46, %v1285_v22 }
 0x2bf   : > { %v2641_v34 = vpop.eup %2640 }
 0x2c0   : > { %v1290_v45 = vsel %vm1289_vm4, %v2639_v46, %v1286_v7 }
 0x2c1   : > { %v1295_v63 = vsel %vm1292_vm5, %v1294_v58, %v1290_v45  ;;  %v1505_v58 = vsub.f32 1.0, %v3548_v3 }
 0x2c2   : > { %v1304_v54 = vmul.f32 %v2641_v34, %v1295_v63 }
 0x2c4   : > { %v1342_v36 = vrot.slane %v1304_v54, 4 }
 0x2d8   : > { %v1339_v5 = vpop.permute.xlu0 %1338 }
 0x2d9   : > { %v3559_v29 = vmul.f32 %v1354_v49, %v1339_v5  ;;  %v1344_v23 = vmul.f32 %v1342_v36, %v1339_v5  ;;  %v3779_v36 = vmov 0.0  }
 0x2e0   : > { %v3561_v37 = vpop.permute.xlu0 %1348 }
 0x2e1   : > { %v1351_v17 = vmul.f32 %v3561_v37, %v3500_v47 }
 0x2e3   : > { %v3565_v53 = vadd.f32 %v1351_v17, %v1344_v23 }
 0x2e5   : > { %v1370_v62 = vpack.c.bf16 %v3565_v53, %v3565_v53 }
 0x2e7   : > { %1379 = vmatmul.bf16.vlgmr.msra.gmra.mxu0 %v1370_v62  ;;  %1392 = vmatmul.bf16.vlgmr.msra.gmra.mxu1 %v1370_v62 }
 0x2e8   : > { %1405 = vmatmul.bf16.vlgmr.msra.gmra.mxu2 %v1370_v62  ;;  %1418 = vmatmul.bf16.vlgmr.msra.gmra.mxu3 %v1370_v62 }
 0x2e9   : > { %1746 = vmatpush.bf16.msra.mxu0 %v3051_v44  ;;  %1759 = vmatpush.bf16.msra.mxu1 %v3059_v48 }
 0x2ea   : > { %1772 = vmatpush.bf16.msra.mxu2 %v3093_v1  ;;  %1785 = vmatpush.bf16.msra.mxu3 %v3079_v59 }
 0x2ed   : > { %1747 = vmatpush.bf16.msra.mxu0 %v3082_v60  ;;  %1760 = vmatpush.bf16.msra.mxu1 %v3091_v0 }
 0x2ee   : > { %1773 = vmatpush.bf16.msra.mxu2 %v3129_v13  ;;  %1786 = vmatpush.bf16.msra.mxu3 %v3114_v8 }
 0x2f1   : > { %1748 = vmatpush.bf16.msra.mxu0 %v3117_v9  ;;  %1761 = vmatpush.bf16.msra.mxu1 %v3127_v12 }
 0x2f2   : > { %1774 = vmatpush.bf16.msra.mxu2 %v3165_v25  ;;  %1787 = vmatpush.bf16.msra.mxu3 %v3150_v20 }
 0x2f5   : > { %1749 = vmatpush.bf16.msra.mxu0 %v3153_v21  ;;  %1762 = vmatpush.bf16.msra.mxu1 %v3163_v24 }
 0x2f6   : > { %1775 = vmatpush.bf16.msra.mxu2 %v3216_v42  ;;  %1788 = vmatpush.bf16.msra.mxu3 %v3186_v32 }
 0x2f9   : > { %1750 = vmatpush.bf16.msra.mxu0 %v3195_v35  ;;  %1763 = vmatpush.bf16.msra.mxu1 %v3214_v41 }
 0x2fa   : > { %1776 = vmatpush.bf16.msra.mxu2 %v3243_v57  ;;  %1789 = vmatpush.bf16.msra.mxu3 %v3224_v50 }
 0x2fd   : > { %1751 = vmatpush.bf16.msra.mxu0 %v3227_v51  ;;  %1764 = vmatpush.bf16.msra.mxu1 %v3241_v56 }
 0x2fe   : > { %1777 = vmatpush.bf16.msra.mxu2 %v3282_v14  ;;  %1790 = vmatpush.bf16.msra.mxu3 %v3263_v4 }
 0x301   : > { %1752 = vmatpush.bf16.msra.mxu0 %v3269_v6  ;;  %1765 = vmatpush.bf16.msra.mxu1 %v3280_v11 }
 0x302   : > { %1778 = vmatpush.bf16.msra.mxu2 %v3321_v33  ;;  %1791 = vmatpush.bf16.msra.mxu3 %v3304_v26 }
 0x305   : > { %1753 = vmatpush.bf16.msra.mxu0 %v3307_v27  ;;  %1766 = vmatpush.bf16.msra.mxu1 %v3319_v31 }
 0x306   : > { %1779 = vmatpush.bf16.msra.mxu2 %v3340_v40  ;;  %1792 = vmatpush.bf16.msra.mxu3 %v3335_v39 }
 0x32f   : > { %v1315_v47 = vpop.xlane.xlu0 %1314 }
 0x330   : > { %v1316_v19 = vadd.f32 %v3464_v28, %v1315_v47 }
 0x332   : > { %v2470_v30 = vmul.f32 -1.442695, %v1316_v19 }
 0x334   : > { %2642 = vpow2.f32 %v2470_v30 }
 0x33a   : > { %v2643_v2 = vpop.eup %2642 }
 0x33b   : > { %v1320_v43 = vadd.f32 1.0, %v2643_v2  ;;  %v1366_v2 = vld [vmem:[#allocation2 + $0x30] sm:$0xc0] }
 0x33d   : > { %2644 = vrcp.f32 %v1320_v43  ;;  %v1332_v16 = vand.u32 2147483648, %v1320_v43  ;;  %v1330_v7 = vand.u32 2147483647, %v1320_v43  ;;  %vm1326_vm7 = vweird.f32 %v1320_v43 }
 0x33f   : > { %v1333_v10 = vor.u32 1.1754944e-38, %v1332_v16  ;;  %vm1331_vm9 = vcmp.eq.f32.partialorder %v1330_v7, 8.507059e+37 }
 0x343   : > { %v2645_v18 = vpop.eup %2644 }
 0x344   : > { %v1322_v46 = vmul.f32 %v2645_v18, %v1320_v43  ;;  %vm1327_vm6 = vweird.f32 %v2645_v18  ;;  %v1367_v43 = vld [vmem:[#allocation2] sm:$0xc0] }
 0x345   : > { %vm1328_vm8 = vmor %vm1326_vm7, %vm1327_vm6  ;;  %vm1512_vm6 = vcmask 1047558  }
 0x346   : > { %v1323_v61 = vsub.f32 1.0, %v1322_v46 }
 0x348   : > { %v1324_v22 = vmul.f32 %v2645_v18, %v1323_v61 }
 0x34a   : > { %v1325_v55 = vadd.f32 %v2645_v18, %v1324_v22 }
 0x34c   : > { %v1329_v45 = vsel %vm1328_vm8, %v2645_v18, %v1325_v55 }
 0x34d   : > { %v1334_v49 = vsel %vm1331_vm9, %v1333_v10, %v1329_v45  ;;  %v1369_v45 = vld [vmem:[#allocation2 + $0x10] sm:$0xc0] }
 0x34e   : > { %v1360_v28 = vrot.slane %v1334_v49, 4 }
 0x350   : > { %v1362_v34 = vmul.f32 %v3542_v15, %v1360_v28 }
 0x352   : > { %v1364_v5 = vadd.f32 %v3546_v38, %v1362_v34 }
 0x354   : > { %v1506_v63 = vmin.f32 %v1364_v5, %v1505_v58 }
 0x356   : > { %v1507_v54 = vadd.f32 %v1506_v63, %v3548_v3 }
 0x358   : > { %vm1508_vm10 = vcmp.ge.f32.partialorder %v1507_v54, 0.5 }
 0x359   : > { %v3607_v23 = vsel %vm1508_vm10, 1.0, %v3779_v36 }
 0x35a   : > { %1538 = vperm.xlu1 %2580, %v3607_v23   ;;  %v1545_v17 = vsub.f32 1.0, %v3607_v23 }
 0x35c   : > { %v3611_v62 = vmul.f32 %v1545_v17, %v1364_v5  ;;  %v3613_v47 = vmul.f32 %v1545_v17, %v1507_v54 }
 0x362   : > { %1548 = vperm.xlu1 %2580, %v1545_v17  }
 0x364   : > { %v1380_v15 = vpop.f32.mrf.mxu0  ;;  %v1393_v38 = vpop.f32.mrf.mxu1 }
 0x365   : > { %v1427_v19 = vrot.slane %v1380_v15, 2  ;;  %v1428_v30 = vrot.slane %v1393_v38, 2 }
 0x367   : > { %v1435_v3 = vadd.f32 %v1427_v19, %v1366_v2  ;;  %v1436_v18 = vadd.f32 %v1428_v30, %v1367_v43  ;;  %v1368_v19 = vld [vmem:[#allocation2 + $0x18] sm:$0xc0]  ;;  %v1357_v43 = vmul.f32 %v3561_v37, %v3554_v52 }
 0x369   : > { %v2471_v46 = vmul.f32 -1.442695, %v1435_v3  ;;  %v2472_v61 = vmul.f32 -1.442695, %v1436_v18 }
 0x36b   : > { %2646 = vpow2.f32 %v2471_v46  ;;  %v1406_v16 = vpop.f32.mrf.mxu2  ;;  %v1419_v22 = vpop.f32.mrf.mxu3 }
 0x36c   : > { %2648 = vpow2.f32 %v2472_v61  ;;  %v1430_v7 = vrot.slane %v1419_v22, 2  ;;  %v1382_v55 = vpop.f32.mrf.mxu0  ;;  %v1395_v10 = vpop.f32.mrf.mxu1  ;;  %v1429_v15 = vrot.slane %v1406_v16, 2 }
 0x36e   : > { %v1438_v49 = vadd.f32 %v1430_v7, %v1369_v45  ;;  %v1437_v3 = vadd.f32 %v1429_v15, %v1368_v19  ;;  %v1358_v7 = vadd.f32 %v1357_v43, %v3559_v29 }
 0x370   : > { %v2473_v28 = vmul.f32 -1.442695, %v1438_v49  ;;  %v1498_v15 = vrot.slane %v1358_v7, 2 }
 0x371   : > { %v2647_v34 = vpop.eup %2646 }
 0x372   : > { %v2649_v5 = vpop.eup %2648  ;;  %v1442_v58 = vadd.f32 1.0, %v2647_v34  ;;  %2650 = vpow2.f32 %v2473_v28 }
 0x373   : > { %v1461_v63 = vadd.f32 1.0, %v2649_v5  ;;  %v1408_v54 = vpop.f32.mrf.mxu2  ;;  %v1421_v17 = vpop.f32.mrf.mxu3 }
 0x374   : > { %2652 = vrcp.f32 %v1442_v58  ;;  %v1454_v10 = vand.u32 2147483648, %v1442_v58  ;;  %v1452_v16 = vand.u32 2147483647, %v1442_v58  ;;  %vm1448_vm14 = vweird.f32 %v1442_v58 }
 0x375   : > { %2654 = vrcp.f32 %v1461_v63  ;;  %v1473_v49 = vand.u32 2147483648, %v1461_v63  ;;  %v1471_v34 = vand.u32 2147483647, %v1461_v63  ;;  %vm1467_vm2 = vweird.f32 %v1461_v63 }
 0x376   : > { %v1455_v37 = vor.u32 1.1754944e-38, %v1454_v10  ;;  %vm1453_vm3 = vcmp.eq.f32.partialorder %v1452_v16, 8.507059e+37 }
 0x377   : > { %vm1472_vm5 = vcmp.eq.f32.partialorder %v1471_v34, 8.507059e+37 }
 0x378   : > { %v2651_v38 = vpop.eup %2650 }
 0x379   : > { %v1481_v30 = vadd.f32 1.0, %v2651_v38  ;;  %v1474_v38 = vor.u32 1.1754944e-38, %v1473_v49 }
 0x37a   : > { %v2653_v2 = vpop.eup %2652 }
 0x37b   : > { %v2655_v18 = vpop.eup %2654  ;;  %v1444_v46 = vmul.f32 %v2653_v2, %v1442_v58  ;;  %2656 = vrcp.f32 %v1481_v30  ;;  %vm1449_vm11 = vweird.f32 %v2653_v2  ;;  %v1493_v16 = vand.u32 2147483648, %v1481_v30 }
 0x37c   : > { %v1463_v61 = vmul.f32 %v2655_v18, %v1461_v63  ;;  %2658 = vtanh.f32 %v1437_v3  ;;  %vm1468_vm13 = vweird.f32 %v2655_v18  ;;  %vm1450_vm15 = vmor %vm1448_vm14, %vm1449_vm11  ;;  %v3621_v63 = vld [vmem:[%s3769_s6] ss:$0 sm:$0xff]  ;;  %vm1487_vm8 = vweird.f32 %v1481_v30 }
 0x37d   : > { %v1445_v22 = vsub.f32 1.0, %v1444_v46  ;;  %vm1469_vm4 = vmor %vm1467_vm2, %vm1468_vm13  ;;  %v1494_v34 = vor.u32 1.1754944e-38, %v1493_v16 }
 0x37e   : > { %v1464_v55 = vsub.f32 1.0, %v1463_v61 }
 0x37f   : > { %v1446_v45 = vmul.f32 %v2653_v2, %v1445_v22 }
 0x380   : > { %v1465_v28 = vmul.f32 %v2655_v18, %v1464_v55 }
 0x381   : > { %v2657_v5 = vpop.eup %2656  ;;  %v1447_v52 = vadd.f32 %v2653_v2, %v1446_v45 }
 0x382   : > { %v1466_v54 = vadd.f32 %v2655_v18, %v1465_v28  ;;  %v1483_v17 = vmul.f32 %v2657_v5, %v1481_v30  ;;  %v2659_v19 = vpop.eup %2658  ;;  %vm1488_vm7 = vweird.f32 %v2657_v5 }
 0x383   : > { %v1451_v29 = vsel %vm1450_vm15, %v2653_v2, %v1447_v52  ;;  %vm1489_vm9 = vmor %vm1487_vm8, %vm1488_vm7 }
 0x384   : > { %v1456_v43 = vsel %vm1453_vm3, %v1455_v37, %v1451_v29  ;;  %v1470_v3 = vsel %vm1469_vm4, %v2655_v18, %v1466_v54  ;;  %v1484_v46 = vsub.f32 1.0, %v1483_v17  ;;  %v1491_v18 = vand.u32 2147483647, %v1481_v30 }
 0x385   : > { %v1475_v61 = vsel %vm1472_vm5, %v1474_v38, %v1470_v3  ;;  %v1501_v22 = vmul.f32 %v2659_v19, %v1456_v43 }
 0x386   : > { %v1500_v55 = vmul.f32 %v1498_v15, %v1475_v61  ;;  %v1485_v45 = vmul.f32 %v2657_v5, %v1484_v46  ;;  %vm1492_vm10 = vcmp.eq.f32.partialorder %v1491_v18, 8.507059e+37 }
 0x388   : > { %v1502_v58 = vadd.f32 %v1501_v22, %v1500_v55  ;;  %v1486_v10 = vadd.f32 %v2657_v5, %v1485_v45 }
 0x38a   : > { %v1511_v2 = vmul.f32 %v3621_v63, %v1502_v58  ;;  %2660 = vtanh.f32 %v1502_v58  ;;  %v1490_v28 = vsel %vm1489_vm9, %v2657_v5, %v1486_v10  ;;  %v1554_v17 = vrot.slane %v1502_v58, 6 }
 0x38b   : > { %v1495_v37 = vsel %vm1492_vm10, %v1494_v34, %v1490_v28 }
 0x38c   : > { %v1513_v49 = vsel %vm1512_vm6, %v1511_v2, 0.0 }
 0x38d   : > { %1514 = vadd.xlane.f32.xlu1 %v1513_v49 }
 0x390   : > { %v2661_v52 = vpop.eup %2660 }
 0x391   : > { %v1504_v54 = vmul.f32 %v2661_v52, %v1495_v37  ;;  %v1568_v52 = vld [vmem:[#allocation2 + $0x28] sm:$0x3] }
 0x393   : > { %v1542_v38 = vrot.slane %v1504_v54, 6 }
 0x3cc   : > { %v1539_v15 = vpop.permute.xlu1 %1538 }
 0x3cd   : > { %v1556_v29 = vmul.f32 %v1554_v17, %v1539_v15  ;;  %v1544_v43 = vmul.f32 %v1542_v38, %v1539_v15 }
 0x3d4   : > { %v1549_v19 = vpop.permute.xlu1 %1548 }
 0x3d5   : > { %v1551_v3 = vmul.f32 %v1549_v19, %v3565_v53  ;;  %v1557_v46 = vmul.f32 %v1549_v19, %v1358_v7 }
 0x3d7   : > { %v3625_v61 = vadd.f32 %v1551_v3, %v1544_v43  ;;  %v3627_v30 = vadd.f32 %v1557_v46, %v1556_v29 }
 0x3d9   : > { %v1570_v5 = vpack.c.bf16 %v3625_v61, %v3625_v61 }
 0x3db   : > { %1579 = vmatmul.bf16.vlgmr.msrb.gmra.mxu0 %v1570_v5  ;;  %1592 = vmatmul.bf16.vlgmr.msrb.gmra.mxu1 %v1570_v5 }
 0x3dc   : > { %1605 = vmatmul.bf16.vlgmr.msrb.gmra.mxu2 %v1570_v5  ;;  %1618 = vmatmul.bf16.vlgmr.msrb.gmra.mxu3 %v1570_v5 }
 0x3dd   : > { %1945 = vmatpush.bf16.msrb.mxu0 %v3051_v44  ;;  %1958 = vmatpush.bf16.msrb.mxu1 %v3059_v48  ;;  %v3663_v48 = vld [vmem:[#allocation7] ss:$0 sm:$0xff] }
 0x3de   : > { %1971 = vmatpush.bf16.msrb.mxu2 %v3093_v1  ;;  %1984 = vmatpush.bf16.msrb.mxu3 %v3079_v59 }
 0x3e1   : > { %1946 = vmatpush.bf16.msrb.mxu0 %v3082_v60  ;;  %1959 = vmatpush.bf16.msrb.mxu1 %v3091_v0 }
 0x3e2   : > { %1972 = vmatpush.bf16.msrb.mxu2 %v3129_v13  ;;  %1985 = vmatpush.bf16.msrb.mxu3 %v3114_v8 }
 0x3e5   : > { %1947 = vmatpush.bf16.msrb.mxu0 %v3117_v9  ;;  %1960 = vmatpush.bf16.msrb.mxu1 %v3127_v12 }
 0x3e6   : > { %1973 = vmatpush.bf16.msrb.mxu2 %v3165_v25  ;;  %1986 = vmatpush.bf16.msrb.mxu3 %v3150_v20 }
 0x3e9   : > { %1948 = vmatpush.bf16.msrb.mxu0 %v3153_v21  ;;  %1961 = vmatpush.bf16.msrb.mxu1 %v3163_v24 }
 0x3ea   : > { %1974 = vmatpush.bf16.msrb.mxu2 %v3216_v42  ;;  %1987 = vmatpush.bf16.msrb.mxu3 %v3186_v32 }
 0x3ed   : > { %1949 = vmatpush.bf16.msrb.mxu0 %v3195_v35  ;;  %1962 = vmatpush.bf16.msrb.mxu1 %v3214_v41 }
 0x3ee   : > { %1975 = vmatpush.bf16.msrb.mxu2 %v3243_v57  ;;  %1988 = vmatpush.bf16.msrb.mxu3 %v3224_v50 }
 0x3f1   : > { %1950 = vmatpush.bf16.msrb.mxu0 %v3227_v51  ;;  %1963 = vmatpush.bf16.msrb.mxu1 %v3241_v56  ;;  %v1690_v51 = vsub.f32 1.0, %v3613_v47 }
 0x3f2   : > { %1976 = vmatpush.bf16.msrb.mxu2 %v3282_v14  ;;  %1989 = vmatpush.bf16.msrb.mxu3 %v3263_v4 }
 0x3f5   : > { %1951 = vmatpush.bf16.msrb.mxu0 %v3269_v6  ;;  %1964 = vmatpush.bf16.msrb.mxu1 %v3280_v11 }
 0x3f6   : > { %1977 = vmatpush.bf16.msrb.mxu2 %v3321_v33  ;;  %1990 = vmatpush.bf16.msrb.mxu3 %v3304_v26  ;;  %v1566_v26 = vld [vmem:[#allocation2 + $0x8] sm:$0x3] }
 0x3f9   : > { %1952 = vmatpush.bf16.msrb.mxu0 %v3307_v27  ;;  %1965 = vmatpush.bf16.msrb.mxu1 %v3319_v31  ;;  %v1567_v31 = vld [vmem:[#allocation2 + $0x20] sm:$0x3] }
 0x3fa   : > { %1978 = vmatpush.bf16.msrb.mxu2 %v3340_v40  ;;  %1991 = vmatpush.bf16.msrb.mxu3 %v3335_v39 }
 0x400   : > { %v1515_v44 = vpop.xlane.xlu1 %1514 }
 0x401   : > { %v1516_v59 = vadd.f32 %v3663_v48, %v1515_v44 }
 0x403   : > { %v2475_v60 = vmul.f32 -1.442695, %v1516_v59 }
 0x405   : > { %2662 = vpow2.f32 %v2475_v60 }
 0x40b   : > { %v2663_v0 = vpop.eup %2662 }
 0x40c   : > { %v1520_v1 = vadd.f32 1.0, %v2663_v0 }
 0x40e   : > { %2664 = vrcp.f32 %v1520_v1  ;;  %v1532_v13 = vand.u32 2147483648, %v1520_v1  ;;  %v1530_v21 = vand.u32 2147483647, %v1520_v1  ;;  %vm1526_vm13 = vweird.f32 %v1520_v1 }
 0x410   : > { %v1533_v25 = vor.u32 1.1754944e-38, %v1532_v13  ;;  %vm1531_vm15 = vcmp.eq.f32.partialorder %v1530_v21, 8.507059e+37 }
 0x414   : > { %v2665_v8 = vpop.eup %2664 }
 0x415   : > { %v1522_v9 = vmul.f32 %v2665_v8, %v1520_v1  ;;  %vm1527_vm11 = vweird.f32 %v2665_v8 }
 0x416   : > { %vm1528_vm14 = vmor %vm1526_vm13, %vm1527_vm11 }
 0x417   : > { %v1523_v12 = vsub.f32 1.0, %v1522_v9 }
 0x419   : > { %v1524_v20 = vmul.f32 %v2665_v8, %v1523_v12 }
 0x41b   : > { %v1525_v24 = vadd.f32 %v2665_v8, %v1524_v20 }
 0x41d   : > { %v1529_v32 = vsel %vm1528_vm14, %v2665_v8, %v1525_v24 }
 0x41e   : > { %v1534_v35 = vsel %vm1531_vm15, %v1533_v25, %v1529_v32 }
 0x41f   : > { %v1560_v41 = vrot.slane %v1534_v35, 6 }
 0x421   : > { %v1562_v42 = vmul.f32 %v3607_v23, %v1560_v41 }
 0x423   : > { %v1564_v50 = vadd.f32 %v3611_v62, %v1562_v42 }
 0x425   : > { %v1691_v56 = vmin.f32 %v1564_v50, %v1690_v51 }
 0x427   : > { %v1692_v57 = vadd.f32 %v1691_v56, %v3613_v47  ;;  %v1569_v47 = vld [vmem:[#allocation2 + $0x38] sm:$0x3] }
 0x429   : > { %vm1693_vm2 = vcmp.ge.f32.partialorder %v1692_v57, 0.5 }
 0x42a   : > { %v3671_v4 = vsel %vm1693_vm2, 1.0, %v3779_v36 }
 0x42b   : > { %1722 = vperm.xlu2 %2581, %v3671_v4   ;;  %v1726_v6 = vsub.f32 1.0, %v3671_v4 }
 0x42d   : > { %v3675_v11 = vmul.f32 %v1726_v6, %v1564_v50  ;;  %v3677_v14 = vmul.f32 %v1726_v6, %v1692_v57 }
 0x433   : > { %1729 = vperm.xlu2 %2581, %v1726_v6  }
 0x458   : > { %v1580_v27 = vpop.f32.mrf.mxu0  ;;  %v1593_v33 = vpop.f32.mrf.mxu1 }
 0x459   : > { %v1623_v39 = vadd.f32 %v1580_v27, %v1566_v26  ;;  %v1624_v40 = vadd.f32 %v1593_v33, %v1567_v31 }
 0x45b   : > { %v2476_v53 = vmul.f32 -1.442695, %v1623_v39  ;;  %v2477_v23 = vmul.f32 -1.442695, %v1624_v40 }
 0x45d   : > { %2666 = vpow2.f32 %v2476_v53 }
 0x45e   : > { %2668 = vpow2.f32 %v2477_v23 }
 0x45f   : > { %v1606_v62 = vpop.f32.mrf.mxu2  ;;  %v1619_v7 = vpop.f32.mrf.mxu3 }
 0x460   : > { %v1626_v22 = vadd.f32 %v1619_v7, %v1569_v47  ;;  %v1582_v55 = vpop.f32.mrf.mxu0  ;;  %v1595_v45 = vpop.f32.mrf.mxu1  ;;  %v1625_v17 = vadd.f32 %v1606_v62, %v1568_v52 }
 0x462   : > { %v2478_v58 = vmul.f32 -1.442695, %v1626_v22 }
 0x463   : > { %v2667_v10 = vpop.eup %2666 }
 0x464   : > { %v2669_v2 = vpop.eup %2668  ;;  %v1630_v16 = vadd.f32 1.0, %v2667_v10  ;;  %2670 = vpow2.f32 %v2478_v58 }
 0x465   : > { %v1649_v18 = vadd.f32 1.0, %v2669_v2 }
 0x466   : > { %2672 = vrcp.f32 %v1630_v16  ;;  %v1642_v3 = vand.u32 2147483648, %v1630_v16  ;;  %v1640_v5 = vand.u32 2147483647, %v1630_v16  ;;  %vm1636_vm5 = vweird.f32 %v1630_v16 }
 0x467   : > { %2674 = vrcp.f32 %v1649_v18  ;;  %v1608_v49 = vpop.f32.mrf.mxu2  ;;  %v1621_v28 = vpop.f32.mrf.mxu3  ;;  %v1661_v44 = vand.u32 2147483648, %v1649_v18  ;;  %v1659_v60 = vand.u32 2147483647, %v1649_v18  ;;  %vm1655_vm7 = vweird.f32 %v1649_v18 }
 0x468   : > { %v1643_v1 = vor.u32 1.1754944e-38, %v1642_v3  ;;  %vm1641_vm8 = vcmp.eq.f32.partialorder %v1640_v5, 8.507059e+37 }
 0x469   : > { %v1662_v13 = vor.u32 1.1754944e-38, %v1661_v44  ;;  %vm1660_vm10 = vcmp.eq.f32.partialorder %v1659_v60, 8.507059e+37  ;;  %v1741_v44 = vld [vmem:[#allocation2 + $0x8] sm:$0xc] }
 0x46a   : > { %v2671_v34 = vpop.eup %2670 }
 0x46b   : > { %v1669_v37 = vadd.f32 1.0, %v2671_v34 }
 0x46c   : > { %v2673_v54 = vpop.eup %2672 }
 0x46d   : > { %v2675_v15 = vpop.eup %2674  ;;  %v1632_v29 = vmul.f32 %v2673_v54, %v1630_v16  ;;  %2676 = vrcp.f32 %v1669_v37  ;;  %vm1637_vm3 = vweird.f32 %v2673_v54  ;;  %v1681_v27 = vand.u32 2147483648, %v1669_v37 }
 0x46e   : > { %v1651_v38 = vmul.f32 %v2675_v15, %v1649_v18  ;;  %2678 = vtanh.f32 %v1625_v17  ;;  %vm1656_vm4 = vweird.f32 %v2675_v15  ;;  %vm1638_vm6 = vmor %vm1636_vm5, %vm1637_vm3  ;;  %vm1675_vm13 = vweird.f32 %v1669_v37 }
 0x46f   : > { %v1633_v19 = vsub.f32 1.0, %v1632_v29  ;;  %vm1657_vm9 = vmor %vm1655_vm7, %vm1656_vm4  ;;  %v1679_v31 = vand.u32 2147483647, %v1669_v37  ;;  %v1682_v53 = vor.u32 1.1754944e-38, %v1681_v27 }
 0x470   : > { %v1652_v43 = vsub.f32 1.0, %v1651_v38 }
 0x471   : > { %v1634_v46 = vmul.f32 %v2673_v54, %v1633_v19  ;;  %vm1680_vm15 = vcmp.eq.f32.partialorder %v1679_v31, 8.507059e+37 }
 0x472   : > { %v1653_v59 = vmul.f32 %v2675_v15, %v1652_v43 }
 0x473   : > { %v1635_v0 = vadd.f32 %v2673_v54, %v1634_v46  ;;  %v2677_v9 = vpop.eup %2676 }
 0x474   : > { %v1654_v8 = vadd.f32 %v2675_v15, %v1653_v59  ;;  %v2679_v20 = vpop.eup %2678  ;;  %v1671_v35 = vmul.f32 %v2677_v9, %v1669_v37  ;;  %vm1676_vm11 = vweird.f32 %v2677_v9  ;;  %v1742_v59 = vld [vmem:[#allocation2 + $0x20] sm:$0xc] }
 0x475   : > { %v1639_v12 = vsel %vm1638_vm6, %v2673_v54, %v1635_v0  ;;  %vm1677_vm14 = vmor %vm1675_vm13, %vm1676_vm11  ;;  %v1880_v0 = vsub.f32 1.0, %v3677_v14 }
 0x476   : > { %v1644_v21 = vsel %vm1641_vm8, %v1643_v1, %v1639_v12  ;;  %v1658_v24 = vsel %vm1657_vm9, %v2675_v15, %v1654_v8  ;;  %v1672_v51 = vsub.f32 1.0, %v1671_v35  ;;  %v1744_v35 = vld [vmem:[#allocation2 + $0x38] sm:$0xc] }
 0x477   : > { %v1686_v25 = vmul.f32 %v2679_v20, %v1644_v21  ;;  %v1663_v32 = vsel %vm1660_vm10, %v1662_v13, %v1658_v24 }
 0x478   : > { %v1685_v41 = vmul.f32 %v1663_v32, %v3627_v30  ;;  %v1673_v57 = vmul.f32 %v2677_v9, %v1672_v51 }
 0x47a   : > { %v1687_v42 = vadd.f32 %v1686_v25, %v1685_v41  ;;  %v1674_v6 = vadd.f32 %v2677_v9, %v1673_v57 }
 0x47c   : > { %v1696_v50 = vmul.f32 %v3621_v63, %v1687_v42  ;;  %2680 = vtanh.f32 %v1687_v42  ;;  %v1678_v39 = vsel %vm1677_vm14, %v2677_v9, %v1674_v6 }
 0x47d   : > { %v1683_v23 = vsel %vm1680_vm15, %v1682_v53, %v1678_v39 }
 0x47e   : > { %v1697_v56 = vsel %vm918_vm12, %v1696_v50, 0.0 }
 0x47f   : > { %1698 = vadd.xlane.f32.xlu0 %v1697_v56 }
 0x482   : > { %v2681_v40 = vpop.eup %2680 }
 0x483   : > { %v1689_v62 = vmul.f32 %v2681_v40, %v1683_v23  ;;  %v1743_v40 = vld [vmem:[#allocation2 + $0x28] sm:$0xc] }
 0x485   : > { %v1723_v26 = vpop.permute.xlu2 %1722 }
 0x486   : > { %v1734_v33 = vmul.f32 %v1723_v26, %v1687_v42  ;;  %v1725_v7 = vmul.f32 %v1723_v26, %v1689_v62 }
 0x48d   : > { %v1730_v47 = vpop.permute.xlu2 %1729 }
 0x48e   : > { %v1732_v22 = vmul.f32 %v1730_v47, %v3625_v61  ;;  %v1735_v55 = vmul.f32 %v1730_v47, %v3627_v30 }
 0x490   : > { %v3684_v45 = vadd.f32 %v1732_v22, %v1725_v7  ;;  %v3686_v58 = vadd.f32 %v1735_v55, %v1734_v33 }
 0x492   : > { %v1745_v10 = vpack.c.bf16 %v3684_v45, %v3684_v45 }
 0x494   : > { %1754 = vmatmul.bf16.vlgmr.msra.gmra.mxu0 %v1745_v10  ;;  %1767 = vmatmul.bf16.vlgmr.msra.gmra.mxu1 %v1745_v10 }
 0x495   : > { %1780 = vmatmul.bf16.vlgmr.msra.gmra.mxu2 %v1745_v10  ;;  %1793 = vmatmul.bf16.vlgmr.msra.gmra.mxu3 %v1745_v10 }
 0x4f2   : > { %v1699_v2 = vpop.xlane.xlu0 %1698 }
 0x4f3   : > { %v1700_v16 = vadd.f32 %v3663_v48, %v1699_v2 }
 0x4f5   : > { %v2480_v18 = vmul.f32 -1.442695, %v1700_v16 }
 0x4f7   : > { %2682 = vpow2.f32 %v2480_v18 }
 0x4fd   : > { %v2683_v49 = vpop.eup %2682 }
 0x4fe   : > { %v1704_v61 = vadd.f32 1.0, %v2683_v49 }
 0x500   : > { %2684 = vrcp.f32 %v1704_v61  ;;  %v1716_v52 = vand.u32 2147483648, %v1704_v61  ;;  %v1714_v54 = vand.u32 2147483647, %v1704_v61  ;;  %vm1710_vm2 = vweird.f32 %v1704_v61 }
 0x502   : > { %v1717_v15 = vor.u32 1.1754944e-38, %v1716_v52  ;;  %vm1715_vm4 = vcmp.eq.f32.partialorder %v1714_v54, 8.507059e+37 }
 0x506   : > { %v2685_v30 = vpop.eup %2684 }
 0x507   : > { %v1706_v28 = vmul.f32 %v2685_v30, %v1704_v61  ;;  %vm1711_vm12 = vweird.f32 %v2685_v30 }
 0x508   : > { %vm1712_vm3 = vmor %vm1710_vm2, %vm1711_vm12 }
 0x509   : > { %v1707_v34 = vsub.f32 1.0, %v1706_v28 }
 0x50b   : > { %v1708_v37 = vmul.f32 %v2685_v30, %v1707_v34 }
 0x50d   : > { %v1709_v17 = vadd.f32 %v2685_v30, %v1708_v37 }
 0x50f   : > { %v1713_v29 = vsel %vm1712_vm3, %v2685_v30, %v1709_v17  ;;  %v1873_v17 = vrot.slane %v3686_v58, 6 }
 0x510   : > { %v1718_v38 = vsel %vm1715_vm4, %v1717_v15, %v1713_v29 }
 0x511   : > { %v1755_v19 = vpop.f32.mrf.mxu0  ;;  %v1768_v43 = vpop.f32.mrf.mxu1  ;;  %v1737_v3 = vmul.f32 %v3671_v4, %v1718_v38 }
 0x512   : > { %v1802_v46 = vrot.slane %v1755_v19, 6  ;;  %v1803_v5 = vrot.slane %v1768_v43, 6 }
 0x513   : > { %v1739_v60 = vadd.f32 %v3675_v11, %v1737_v3 }
 0x514   : > { %v1810_v1 = vadd.f32 %v1802_v46, %v1741_v44  ;;  %v1811_v8 = vadd.f32 %v1803_v5, %v1742_v59 }
 0x515   : > { %v1881_v9 = vmin.f32 %v1739_v60, %v1880_v0 }
 0x516   : > { %v2481_v12 = vmul.f32 -1.442695, %v1810_v1  ;;  %v2482_v13 = vmul.f32 -1.442695, %v1811_v8 }
 0x517   : > { %v1882_v20 = vadd.f32 %v1881_v9, %v3677_v14 }
 0x518   : > { %2686 = vpow2.f32 %v2481_v12  ;;  %v1781_v21 = vpop.f32.mrf.mxu2  ;;  %v1794_v24 = vpop.f32.mrf.mxu3 }
 0x519   : > { %2688 = vpow2.f32 %v2482_v13  ;;  %v1805_v4 = vrot.slane %v1794_v24, 6  ;;  %v1757_v25 = vpop.f32.mrf.mxu0  ;;  %v1770_v32 = vpop.f32.mrf.mxu1  ;;  %vm1883_vm5 = vcmp.ge.f32.partialorder %v1882_v20, 0.5  ;;  %v1804_v33 = vrot.slane %v1781_v21, 6 }
 0x51a   : > { %v3696_v11 = vsel %vm1883_vm5, 1.0, %v3779_v36 }
 0x51b   : > { %v1813_v41 = vadd.f32 %v1805_v4, %v1744_v35  ;;  %1912 = vperm.xlu2 %2581, %v3696_v11   ;;  %v1919_v42 = vsub.f32 1.0, %v3696_v11  ;;  %v1812_v62 = vadd.f32 %v1804_v33, %v1743_v40 }
 0x51d   : > { %v2483_v50 = vmul.f32 -1.442695, %v1813_v41  ;;  %1922 = vperm.xlu0 %2579, %v1919_v42   ;;  %v3700_v14 = vmul.f32 %v1919_v42, %v1739_v60  ;;  %v3702_v51 = vmul.f32 %v1919_v42, %v1882_v20 }
 0x51e   : > { %v2687_v56 = vpop.eup %2686 }
 0x51f   : > { %v2689_v57 = vpop.eup %2688  ;;  %v1817_v6 = vadd.f32 1.0, %v2687_v56  ;;  %2690 = vpow2.f32 %v2483_v50 }
 0x520   : > { %v1836_v26 = vadd.f32 1.0, %v2689_v57  ;;  %v1783_v27 = vpop.f32.mrf.mxu2  ;;  %v1796_v31 = vpop.f32.mrf.mxu3 }
 0x521   : > { %2692 = vrcp.f32 %v1817_v6  ;;  %v1829_v2 = vand.u32 2147483648, %v1817_v6  ;;  %v1827_v18 = vand.u32 2147483647, %v1817_v6  ;;  %vm1823_vm8 = vweird.f32 %v1817_v6 }
 0x522   : > { %2694 = vrcp.f32 %v1836_v26  ;;  %v1848_v49 = vand.u32 2147483648, %v1836_v26  ;;  %v1846_v30 = vand.u32 2147483647, %v1836_v26  ;;  %vm1842_vm10 = vweird.f32 %v1836_v26 }
 0x523   : > { %v1830_v52 = vor.u32 1.1754944e-38, %v1829_v2  ;;  %vm1828_vm11 = vcmp.eq.f32.partialorder %v1827_v18, 8.507059e+37  ;;  %v2079_v2 = vsub.f32 1.0, %v3702_v51 }
 0x524   : > { %v1849_v29 = vor.u32 1.1754944e-38, %v1848_v49  ;;  %vm1847_vm14 = vcmp.eq.f32.partialorder %v1846_v30, 8.507059e+37 }
 0x525   : > { %v2691_v39 = vpop.eup %2690 }
 0x526   : > { %v1856_v53 = vadd.f32 1.0, %v2691_v39 }
 0x527   : > { %v2693_v23 = vpop.eup %2692 }
 0x528   : > { %v2695_v47 = vpop.eup %2694  ;;  %v1819_v7 = vmul.f32 %v2693_v23, %v1817_v6  ;;  %2696 = vrcp.f32 %v1856_v53  ;;  %vm1824_vm6 = vweird.f32 %v2693_v23  ;;  %v1868_v1 = vand.u32 2147483648, %v1856_v53 }
 0x529   : > { %v1838_v22 = vmul.f32 %v2695_v47, %v1836_v26  ;;  %2698 = vtanh.f32 %v1812_v62  ;;  %vm1843_vm7 = vweird.f32 %v2695_v47  ;;  %vm1825_vm9 = vmor %vm1823_vm8, %vm1824_vm6  ;;  %vm1862_vm12 = vweird.f32 %v1856_v53 }
 0x52a   : > { %v1820_v55 = vsub.f32 1.0, %v1819_v7  ;;  %vm1844_vm13 = vmor %vm1842_vm10, %vm1843_vm7  ;;  %v1866_v8 = vand.u32 2147483647, %v1856_v53  ;;  %v1869_v12 = vor.u32 1.1754944e-38, %v1868_v1  ;;  %vm2141_vm8 = vcmask 1024  }
 0x52b   : > { %v1839_v10 = vsub.f32 1.0, %v1838_v22 }
 0x52c   : > { %v1821_v16 = vmul.f32 %v2693_v23, %v1820_v55  ;;  %vm1867_vm3 = vcmp.eq.f32.partialorder %v1866_v8, 8.507059e+37 }
 0x52d   : > { %v1840_v61 = vmul.f32 %v2695_v47, %v1839_v10 }
 0x52e   : > { %v2697_v28 = vpop.eup %2696  ;;  %v1822_v34 = vadd.f32 %v2693_v23, %v1821_v16 }
 0x52f   : > { %v1841_v37 = vadd.f32 %v2695_v47, %v1840_v61  ;;  %v1858_v54 = vmul.f32 %v2697_v28, %v1856_v53  ;;  %v2699_v38 = vpop.eup %2698  ;;  %vm1863_vm15 = vweird.f32 %v2697_v28 }
 0x530   : > { %v1826_v15 = vsel %vm1825_vm9, %v2693_v23, %v1822_v34  ;;  %vm1864_vm2 = vmor %vm1862_vm12, %vm1863_vm15 }
 0x531   : > { %v1831_v19 = vsel %vm1828_vm11, %v1830_v52, %v1826_v15  ;;  %v1845_v43 = vsel %vm1844_vm13, %v2695_v47, %v1841_v37  ;;  %v1859_v3 = vsub.f32 1.0, %v1858_v54  ;;  %v1940_v54 = vld [vmem:[#allocation2 + $0x8] sm:$0x30] }
 0x532   : > { %v1850_v46 = vsel %vm1847_vm14, %v1849_v29, %v1845_v43  ;;  %v1876_v5 = vmul.f32 %v2699_v38, %v1831_v19 }
 0x533   : > { %v1875_v44 = vmul.f32 %v1873_v17, %v1850_v46  ;;  %v1860_v59 = vmul.f32 %v2697_v28, %v1859_v3  ;;  %v1941_v17 = vld [vmem:[#allocation2 + $0x20] sm:$0x30] }
 0x535   : > { %v3705_v60 = vadd.f32 %v1876_v5, %v1875_v44  ;;  %v1861_v0 = vadd.f32 %v2697_v28, %v1860_v59  ;;  %v1943_v5 = vld [vmem:[#allocation2 + $0x38] sm:$0x30] }
 0x537   : > { %2700 = vtanh.f32 %v3705_v60  ;;  %v1865_v9 = vsel %vm1864_vm2, %v2697_v28, %v1861_v0  ;;  %v1886_v24 = vmul.f32 %v3621_v63, %v3705_v60 }
 0x538   : > { %v1870_v20 = vsel %vm1867_vm3, %v1869_v12, %v1865_v9 }
 0x539   : > { %v1887_v4 = vsel %vm1112_vm1, %v1886_v24, 0.0  ;;  %v1942_v24 = vld [vmem:[#allocation2 + $0x28] sm:$0x30] }
 0x53d   : > { %v2701_v13 = vpop.eup %2700 }
 0x53e   : > { %v1879_v21 = vmul.f32 %v2701_v13, %v1870_v20 }
 0x540   : > { %v1916_v32 = vrot.slane %v1879_v21, 2 }
 0x544   : > { %1888 = vadd.xlane.f32.xlu2 %v1887_v4 }
 0x575   : > { %v3711_v25 = vpop.permute.xlu2 %1912 }
 0x576   : > { %v1918_v41 = vmul.f32 %v1916_v32, %v3711_v25 }
 0x58f   : > { %v3713_v35 = vpop.permute.xlu0 %1922 }
 0x590   : > { %v1925_v42 = vmul.f32 %v3713_v35, %v3684_v45 }
 0x592   : > { %v3718_v50 = vadd.f32 %v1925_v42, %v1918_v41  ;;  %v1928_v41 = vrot.slane %v3705_v60, 2  ;;  %v1931_v42 = vmul.f32 %v3713_v35, %v3686_v58 }
 0x594   : > { %v1944_v56 = vpack.c.bf16 %v3718_v50, %v3718_v50 }
 0x596   : > { %1953 = vmatmul.bf16.vlgmr.msrb.gmra.mxu0 %v1944_v56  ;;  %1966 = vmatmul.bf16.vlgmr.msrb.gmra.mxu1 %v1944_v56 }
 0x597   : > { %1979 = vmatmul.bf16.vlgmr.msrb.gmra.mxu2 %v1944_v56  ;;  %1992 = vmatmul.bf16.vlgmr.msrb.gmra.mxu3 %v1944_v56 }
 0x5b7   : > { %v1889_v57 = vpop.xlane.xlu2 %1888 }
 0x5b8   : > { %v1890_v6 = vadd.f32 %v3663_v48, %v1889_v57 }
 0x5ba   : > { %v2485_v26 = vmul.f32 -1.442695, %v1890_v6 }
 0x5bc   : > { %2702 = vpow2.f32 %v2485_v26  ;;  %v1930_v26 = vmul.f32 %v1928_v41, %v3711_v25 }
 0x5c2   : > { %v2703_v27 = vpop.eup %2702 }
 0x5c3   : > { %v1894_v31 = vadd.f32 1.0, %v2703_v27 }
 0x5c5   : > { %2704 = vrcp.f32 %v1894_v31  ;;  %v1906_v40 = vand.u32 2147483648, %v1894_v31  ;;  %v1904_v23 = vand.u32 2147483647, %v1894_v31  ;;  %vm1900_vm4 = vweird.f32 %v1894_v31 }
 0x5c7   : > { %v1907_v47 = vor.u32 1.1754944e-38, %v1906_v40  ;;  %vm1905_vm6 = vcmp.eq.f32.partialorder %v1904_v23, 8.507059e+37 }
 0x5cb   : > { %v2705_v33 = vpop.eup %2704 }
 0x5cc   : > { %v1896_v39 = vmul.f32 %v2705_v33, %v1894_v31  ;;  %vm1901_vm1 = vweird.f32 %v2705_v33 }
 0x5cd   : > { %vm1902_vm5 = vmor %vm1900_vm4, %vm1901_vm1 }
 0x5ce   : > { %v1897_v45 = vsub.f32 1.0, %v1896_v39 }
 0x5d0   : > { %v1898_v53 = vmul.f32 %v2705_v33, %v1897_v45 }
 0x5d2   : > { %v1899_v62 = vadd.f32 %v2705_v33, %v1898_v53 }
 0x5d4   : > { %v1903_v7 = vsel %vm1902_vm5, %v2705_v33, %v1899_v62  ;;  %v3738_v33 = vadd.f32 %v1931_v42, %v1930_v26 }
 0x5d5   : > { %v1908_v22 = vsel %vm1905_vm6, %v1907_v47, %v1903_v7 }
 0x5d6   : > { %v1934_v55 = vrot.slane %v1908_v22, 2  ;;  %v2072_v22 = vrot.slane %v3738_v33, 4 }
 0x5d8   : > { %v1936_v10 = vmul.f32 %v3696_v11, %v1934_v55 }
 0x5da   : > { %v1938_v16 = vadd.f32 %v3700_v14, %v1936_v10 }
 0x5dc   : > { %v2080_v18 = vmin.f32 %v1938_v16, %v2079_v2 }
 0x5de   : > { %v2081_v49 = vadd.f32 %v2080_v18, %v3702_v51 }
 0x5e0   : > { %vm2082_vm7 = vcmp.ge.f32.partialorder %v2081_v49, 0.5 }
 0x5e1   : > { %v3728_v61 = vsel %vm2082_vm7, 1.0, %v3779_v36 }
 0x5e2   : > { %v2118_v30 = vsub.f32 1.0, %v3728_v61 }
 0x5e4   : > { %2121 = vperm.xlu0 %2579, %v2118_v30   ;;  %v3731_v28 = vmul.f32 %v2118_v30, %v1938_v16  ;;  %v2138_v34 = vmul.f32 %v2118_v30, %v2081_v49 }
 0x5e6   : > { %2143 = vst.msk [vmem:[#allocation6] sm:$0x3] %vm2141_vm8, %v2138_v34 }
 0x613   : > { %v1954_v11 = vpop.f32.mrf.mxu0  ;;  %v1967_v52 = vpop.f32.mrf.mxu1 }
 0x614   : > { %v2001_v37 = vrot.slane %v1954_v11, 4  ;;  %v2002_v14 = vrot.slane %v1967_v52, 4 }
 0x616   : > { %v2009_v51 = vadd.f32 %v2001_v37, %v1940_v54  ;;  %v2010_v15 = vadd.f32 %v2002_v14, %v1941_v17 }
 0x618   : > { %v2486_v29 = vmul.f32 -1.442695, %v2009_v51  ;;  %v2487_v36 = vmul.f32 -1.442695, %v2010_v15 }
 0x61a   : > { %2706 = vpow2.f32 %v2486_v29  ;;  %v1980_v38 = vpop.f32.mrf.mxu2  ;;  %v1993_v19 = vpop.f32.mrf.mxu3 }
 0x61b   : > { %2708 = vpow2.f32 %v2487_v36  ;;  %v2004_v43 = vrot.slane %v1993_v19, 4  ;;  %v1956_v3 = vpop.f32.mrf.mxu0  ;;  %v1969_v46 = vpop.f32.mrf.mxu1  ;;  %v2003_v20 = vrot.slane %v1980_v38, 4 }
 0x61d   : > { %v2012_v44 = vadd.f32 %v2004_v43, %v1943_v5  ;;  %v2011_v56 = vadd.f32 %v2003_v20, %v1942_v24 }
 0x61f   : > { %v2488_v59 = vmul.f32 -1.442695, %v2012_v44 }
 0x620   : > { %v2707_v0 = vpop.eup %2706 }
 0x621   : > { %v2709_v1 = vpop.eup %2708  ;;  %v2016_v8 = vadd.f32 1.0, %v2707_v0  ;;  %2710 = vpow2.f32 %v2488_v59 }
 0x622   : > { %v2035_v9 = vadd.f32 1.0, %v2709_v1  ;;  %v1982_v12 = vpop.f32.mrf.mxu2  ;;  %v1995_v13 = vpop.f32.mrf.mxu3 }
 0x623   : > { %2712 = vrcp.f32 %v2016_v8  ;;  %v2028_v45 = vand.u32 2147483648, %v2016_v8  ;;  %v2026_v53 = vand.u32 2147483647, %v2016_v8  ;;  %vm2022_vm11 = vweird.f32 %v2016_v8 }
 0x624   : > { %2714 = vrcp.f32 %v2035_v9  ;;  %v2047_v60 = vand.u32 2147483648, %v2035_v9  ;;  %v2045_v58 = vand.u32 2147483647, %v2035_v9  ;;  %vm2041_vm14 = vweird.f32 %v2035_v9 }
 0x625   : > { %v2029_v47 = vor.u32 1.1754944e-38, %v2028_v45  ;;  %vm2027_vm15 = vcmp.eq.f32.partialorder %v2026_v53, 8.507059e+37 }
 0x626   : > { %v2048_v10 = vor.u32 1.1754944e-38, %v2047_v60  ;;  %vm2046_vm2 = vcmp.eq.f32.partialorder %v2045_v58, 8.507059e+37 }
 0x627   : > { %v2711_v21 = vpop.eup %2710 }
 0x628   : > { %v2055_v4 = vadd.f32 1.0, %v2711_v21 }
 0x629   : > { %v2713_v32 = vpop.eup %2712 }
 0x62a   : > { %v2715_v57 = vpop.eup %2714  ;;  %v2018_v6 = vmul.f32 %v2713_v32, %v2016_v8  ;;  %2716 = vrcp.f32 %v2055_v4  ;;  %vm2023_vm9 = vweird.f32 %v2713_v32  ;;  %v2067_v17 = vand.u32 2147483648, %v2055_v4 }
 0x62b   : > { %v2037_v27 = vmul.f32 %v2715_v57, %v2035_v9  ;;  %2718 = vtanh.f32 %v2011_v56  ;;  %vm2042_vm10 = vweird.f32 %v2715_v57  ;;  %vm2024_vm13 = vmor %vm2022_vm11, %vm2023_vm9  ;;  %vm2061_vm1 = vweird.f32 %v2055_v4 }
 0x62c   : > { %v2019_v31 = vsub.f32 1.0, %v2018_v6  ;;  %vm2043_vm12 = vmor %vm2041_vm14, %vm2042_vm10  ;;  %v2065_v51 = vand.u32 2147483647, %v2055_v4  ;;  %v2068_v36 = vor.u32 1.1754944e-38, %v2067_v17 }
 0x62d   : > { %v2038_v39 = vsub.f32 1.0, %v2037_v27 }
 0x62e   : > { %v2020_v40 = vmul.f32 %v2713_v32, %v2019_v31  ;;  %vm2066_vm5 = vcmp.eq.f32.partialorder %v2065_v51, 8.507059e+37 }
 0x62f   : > { %v2039_v23 = vmul.f32 %v2715_v57, %v2038_v39 }
 0x630   : > { %v2717_v35 = vpop.eup %2716  ;;  %v2021_v62 = vadd.f32 %v2713_v32, %v2020_v40 }
 0x631   : > { %v2040_v25 = vadd.f32 %v2715_v57, %v2039_v23  ;;  %v2057_v7 = vmul.f32 %v2717_v35, %v2055_v4  ;;  %v2719_v2 = vpop.eup %2718  ;;  %vm2062_vm3 = vweird.f32 %v2717_v35 }
 0x632   : > { %v2025_v55 = vsel %vm2024_vm13, %v2713_v32, %v2021_v62  ;;  %vm2063_vm4 = vmor %vm2061_vm1, %vm2062_vm3 }
 0x633   : > { %v2030_v16 = vsel %vm2027_vm15, %v2029_v47, %v2025_v55  ;;  %v2044_v18 = vsel %vm2043_vm12, %v2715_v57, %v2040_v25  ;;  %v2058_v49 = vsub.f32 1.0, %v2057_v7 }
 0x634   : > { %v2049_v30 = vsel %vm2046_vm2, %v2048_v10, %v2044_v18  ;;  %v2075_v34 = vmul.f32 %v2719_v2, %v2030_v16 }
 0x635   : > { %v2074_v11 = vmul.f32 %v2072_v22, %v2049_v30  ;;  %v2059_v52 = vmul.f32 %v2717_v35, %v2058_v49 }
 0x637   : > { %v2076_v37 = vadd.f32 %v2075_v34, %v2074_v11  ;;  %v2060_v14 = vadd.f32 %v2717_v35, %v2059_v52 }
 0x639   : > { %v2085_v54 = vmul.f32 %v3621_v63, %v2076_v37  ;;  %2720 = vtanh.f32 %v2076_v37  ;;  %v2064_v29 = vsel %vm2063_vm4, %v2717_v35, %v2060_v14  ;;  %v2127_v9 = vrot.slane %v2076_v37, 4 }
 0x63a   : > { %v2069_v19 = vsel %vm2066_vm5, %v2068_v36, %v2064_v29 }
 0x63b   : > { %v2086_v15 = vsel %vm1312_vm0, %v2085_v54, 0.0 }
 0x63c   : > { %2087 = vadd.xlane.f32.xlu1 %v2086_v15 }
 0x63f   : > { %v2721_v38 = vpop.eup %2720 }
 0x640   : > { %v2078_v43 = vmul.f32 %v2721_v38, %v2069_v19 }
 0x642   : > { %v2115_v12 = vrot.slane %v2078_v43, 4 }
 0x655   : > { %2111 = vperm.xlu1 %2580, %v3728_v61  }
 0x656   : > { %v2122_v0 = vpop.permute.xlu0 %2121 }
 0x657   : > { %v2124_v13 = vmul.f32 %v2122_v0, %v3718_v50  ;;  %v2130_v20 = vmul.f32 %v2122_v0, %v3738_v33 }
 0x6af   : > { %v2088_v3 = vpop.xlane.xlu1 %2087 }
 0x6b0   : > { %v2089_v46 = vadd.f32 %v3663_v48, %v2088_v3 }
 0x6b2   : > { %v2490_v63 = vmul.f32 -1.442695, %v2089_v46 }
 0x6b4   : > { %2722 = vpow2.f32 %v2490_v63 }
 0x6ba   : > { %v2723_v5 = vpop.eup %2722 }
 0x6bb   : > { %v2093_v44 = vadd.f32 1.0, %v2723_v5 }
 0x6bd   : > { %2724 = vrcp.f32 %v2093_v44  ;;  %v2103_v21 = vand.u32 2147483647, %v2093_v44  ;;  %v2105_v24 = vand.u32 2147483648, %v2093_v44  ;;  %vm2099_vm6 = vweird.f32 %v2093_v44 }
 0x6bf   : > { %v2106_v57 = vor.u32 1.1754944e-38, %v2105_v24  ;;  %vm2104_vm9 = vcmp.eq.f32.partialorder %v2103_v21, 8.507059e+37 }
 0x6c3   : > { %v2725_v59 = vpop.eup %2724 }
 0x6c4   : > { %v2095_v1 = vmul.f32 %v2725_v59, %v2093_v44  ;;  %vm2100_vm0 = vweird.f32 %v2725_v59 }
 0x6c5   : > { %vm2101_vm7 = vmor %vm2099_vm6, %vm2100_vm0 }
 0x6c6   : > { %v2096_v8 = vsub.f32 1.0, %v2095_v1 }
 0x6c7   : > { %v2112_v4 = vpop.permute.xlu1 %2111 }
 0x6c8   : > { %v2097_v48 = vmul.f32 %v2725_v59, %v2096_v8  ;;  %v2117_v32 = vmul.f32 %v2115_v12, %v2112_v4  ;;  %v2129_v41 = vmul.f32 %v2127_v9, %v2112_v4 }
 0x6ca   : > { %v2098_v42 = vadd.f32 %v2725_v59, %v2097_v48  ;;  %v2125_v50 = vadd.f32 %v2124_v13, %v2117_v32  ;;  %v2131_v56 = vadd.f32 %v2130_v20, %v2129_v41 }
 0x6cc   : > { %v2102_v6 = vsel %vm2101_vm7, %v2725_v59, %v2098_v42  ;;  %2139 = vst [vmem:[#allocation3] sm:$0x3] %v2125_v50 }
 0x6cd   : > { %v2107_v26 = vsel %vm2104_vm9, %v2106_v57, %v2102_v6  ;;  %2140 = vst [vmem:[#allocation4] sm:$0x3] %v2131_v56 }
 0x6ce   : > { %v2133_v27 = vrot.slane %v2107_v26, 4  ;;  %2144 = vst [vmem:[#allocation8] sm:$0x3] %v2125_v50 }
 0x6cf   : > { %2561 = dma.vmem_to_hbm [thread:$0]  (%p2564_p5), %s2152_s13, 32, %s2154_s16, [#allocation9]  }
 0x6d0   : > { %v2135_v31 = vmul.f32 %v3728_v61, %v2133_v27 }
 0x6d2   : > { %v2137_v33 = vadd.f32 %v3731_v28, %v2135_v31 }
 0x6d4   : > { %2142 = vst.msk [vmem:[#allocation5] sm:$0x3] %vm2141_vm8, %v2137_v33 }
 0x6d5   : > { %2761 = dma.done.wait (%p2564_p5), [#allocation9], 32  }
 0x6d6   : > { %2763 = vsyncadd (%p2564_p5), [#allocation9], 4294967264 }
 0x6d7 PF: > { %s21_s29 = sadd.s32 1, %s2766_s29  }
 0x6d8   : > { %p18_p6 = scmp.ge.s32.totalorder %s21_s29, 4  }
 0x6da   :  { %20 = sbr.rel (!%p18_p6) target bundleno = 4 (0x4), region = 83 }
 0x6df   :  { %2167 = vsyncpa [#allocation9], 1 }
 0x6e0   :  { %2169 = vsyncpa [#allocation9 + $0x1], 1 }

</bundles_post_ra>
